<compile_context>
chip_gen: v6e
topology: v6e:2x2x1
jax: 0.10.0
libtpu: 0.0.40
codegen_flags: <defaults>
</compile_context>

<pallas_src>
import functools

import jax
import jax.numpy as jnp
from jax.experimental import pallas as pl
from jax.experimental.pallas import tpu as pltpu


# ----------------------------------------------------------------------------
# Fused kernel: all LSTM layers + FC epilogue in one invocation (grid=(1,))
# ----------------------------------------------------------------------------
def _fused_lstm_kernel(*refs, num_layers, seq_len, batch_p, hidden_p):
    # refs layout:
    #   [0]                      x            (T*Bp, Dp)
    #   [1 + 3*l .. 3*l+3]       per layer:   w_ih^T (in_p, 4Hp), w_hh^T (Hp, 4Hp), b (1, 4Hp)
    #   [1 + 3*L], [2 + 3*L]     w_fc^T (Hp, 128), b_fc (1, 128)
    #   [3 + 3*L]                out          (L*Bp, 128)
    #   [4 + 3*L ..]             scratch:     proj (T*Bp, 4Hp), seq_a, seq_b (T*Bp, Hp)
    x_ref = refs[0]
    pos = 1
    layer_refs = []
    for _ in range(num_layers):
        layer_refs.append(refs[pos:pos + 3])
        pos += 3
    wfc_ref, bfc_ref = refs[pos], refs[pos + 1]
    pos += 2
    out_ref = refs[pos]
    pos += 1
    proj_sc, seq_a, seq_b = refs[pos], refs[pos + 1], refs[pos + 2]

    T, B, H = seq_len, batch_p, hidden_p
    seq_bufs = (seq_a, seq_b)

    for l in range(num_layers):
        wih_ref, whh_ref, b_ref = layer_refs[l]
        src = x_ref if l == 0 else seq_bufs[(l - 1) % 2]
        dst = seq_bufs[l % 2]

        # Hoisted input projection: one MXU-friendly matmul for the full
        # sequence; only the hidden recurrence stays on the serial path.
        proj_sc[...] = (
            jnp.dot(src[...], wih_ref[...], preferred_element_type=jnp.float32)
            + b_ref[...]
        )

        whh = whh_ref[...]                                   # (Hp, 4Hp), resident
        h = jnp.zeros((B, H), jnp.float32)
        c = jnp.zeros((B, H), jnp.float32)

        for t in range(T):                                   # static unrolled loop
            gates = proj_sc[pl.ds(t * B, B), :] + jnp.dot(
                h, whh, preferred_element_type=jnp.float32)  # (Bp, 4Hp)
            # Gate blocks are Hp(=128)-lane aligned: pure VPU/EUP slices.
            i_g = jax.nn.sigmoid(gates[:, 0 * H:1 * H])
            f_g = jax.nn.sigmoid(gates[:, 1 * H:2 * H])
            g_g = jnp.tanh(gates[:, 2 * H:3 * H])
            o_g = jax.nn.sigmoid(gates[:, 3 * H:4 * H])
            c = f_g * c + i_g * g_g
            h = o_g * jnp.tanh(c)
            if l + 1 < num_layers:                           # next layer's input
                dst[pl.ds(t * B, B), :] = h

        # Fused FC epilogue on this layer's final hidden state (hn[l]):
        # lane-dense (Bp, 128) store, no masked partial writes.
        out_ref[pl.ds(l * B, B), :] = (
            jnp.dot(h, wfc_ref[...], preferred_element_type=jnp.float32)
            + bfc_ref[...]
        )
    # TODO(synk): PyTorch applies dropout(p=0.2) between LSTM layers in training
    # mode; deterministic eval-mode semantics are implemented here.


# ----------------------------------------------------------------------------
# Parameter construction (PyTorch-style uniform(-1/sqrt(H), 1/sqrt(H)))
# ----------------------------------------------------------------------------
def init_params(key, input_size, hidden_size, num_layers):
    k = 1.0 / jnp.sqrt(hidden_size)
    params = {"lstm": []}
    for layer in range(num_layers):
        in_dim = input_size if layer == 0 else hidden_size
        key, k1, k2, k3, k4 = jax.random.split(key, 5)
        w_ih = jax.random.uniform(k1, (4 * hidden_size, in_dim), jnp.float32, -k, k)
        w_hh = jax.random.uniform(k2, (4 * hidden_size, hidden_size), jnp.float32, -k, k)
        b_ih = jax.random.uniform(k3, (4 * hidden_size,), jnp.float32, -k, k)
        b_hh = jax.random.uniform(k4, (4 * hidden_size,), jnp.float32, -k, k)
        params["lstm"].append((w_ih, w_hh, b_ih, b_hh))
    key, k5, k6 = jax.random.split(key, 3)
    w_fc = jax.random.uniform(k5, (1, hidden_size), jnp.float32, -k, k)
    b_fc = jax.random.uniform(k6, (1,), jnp.float32, -k, k)
    params["fc"] = (w_fc, b_fc)
    return params


# ----------------------------------------------------------------------------
# Padding to the kernel's lane/sublane-aligned layout
# ----------------------------------------------------------------------------
def _round_up(x, m):
    return ((x + m - 1) // m) * m


def _pad_lstm_layer(w_ih, w_hh, b_ih, b_hh, in_dim_p, H, Hp):
    in_dim = w_ih.shape[1]
    wih_t = jnp.zeros((in_dim_p, 4 * Hp), jnp.float32)
    whh_t = jnp.zeros((Hp, 4 * Hp), jnp.float32)
    bias = jnp.zeros((1, 4 * Hp), jnp.float32)
    bsum = b_ih + b_hh
    for g in range(4):           # PyTorch gate order: i, f, g, o
        wih_t = wih_t.at[:in_dim, g * Hp:g * Hp + H].set(w_ih[g * H:(g + 1) * H, :].T)
        whh_t = whh_t.at[:H, g * Hp:g * Hp + H].set(w_hh[g * H:(g + 1) * H, :].T)
        bias = bias.at[0, g * Hp:g * Hp + H].set(bsum[g * H:(g + 1) * H])
    return wih_t, whh_t, bias


def _pad_fc(w_fc, b_fc, H, Hp, out_p=128):
    wfc_t = jnp.zeros((Hp, out_p), jnp.float32).at[:H, 0].set(w_fc[0, :])
    bfc = jnp.zeros((1, out_p), jnp.float32).at[0, 0].set(b_fc[0])
    return wfc_t, bfc


# ----------------------------------------------------------------------------
# Forward pass equivalent to get_LSTM.forward
# ----------------------------------------------------------------------------
def get_lstm_forward(x, params, hidden_size, num_layers):
    # x: (batch, seq, input_size), batch_first=True like the PyTorch module.
    B, T, D = x.shape
    Bp = _round_up(max(B, 8), 8)          # pad batch to >= one f32 sublane tile
    Hp = _round_up(hidden_size, 128)      # pad each gate block to full lanes
    Dp = _round_up(D, 128)
    OUTW = 128                            # lane-dense FC output slab

    # Pack input: time-major, padded, flattened to (T*Bp, Dp).
    x_tbd = jnp.transpose(x, (1, 0, 2)).astype(jnp.float32)       # (T, B, D)
    x_p = jnp.zeros((T, Bp, Dp), jnp.float32).at[:, :B, :D].set(x_tbd)
    x_flat = x_p.reshape(T * Bp, Dp)

    flat_inputs = [x_flat]
    in_specs = [pl.BlockSpec((T * Bp, Dp), lambda i: (0, 0))]
    for layer in range(num_layers):
        w_ih, w_hh, b_ih, b_hh = params["lstm"][layer]
        in_dim_p = Dp if layer == 0 else Hp
        wih_t, whh_t, bias = _pad_lstm_layer(w_ih, w_hh, b_ih, b_hh,
                                             in_dim_p, hidden_size, Hp)
        flat_inputs += [wih_t, whh_t, bias]
        in_specs += [
            pl.BlockSpec((in_dim_p, 4 * Hp), lambda i: (0, 0)),
            pl.BlockSpec((Hp, 4 * Hp), lambda i: (0, 0)),
            pl.BlockSpec((1, 4 * Hp), lambda i: (0, 0)),
        ]
    w_fc, b_fc = params["fc"]
    wfc_t, bfc = _pad_fc(w_fc, b_fc, hidden_size, Hp, OUTW)
    flat_inputs += [wfc_t, bfc]
    in_specs += [pl.BlockSpec((Hp, OUTW), lambda i: (0, 0)),
                 pl.BlockSpec((1, OUTW), lambda i: (0, 0))]

    kernel = functools.partial(
        _fused_lstm_kernel,
        num_layers=num_layers, seq_len=T, batch_p=Bp, hidden_p=Hp)

    out_p = pl.pallas_call(
        kernel,
        out_shape=jax.ShapeDtypeStruct((num_layers * Bp, OUTW), jnp.float32),
        grid_spec=pltpu.PrefetchScalarGridSpec(
            num_scalar_prefetch=0,
            grid=(1,),
            in_specs=in_specs,
            out_specs=pl.BlockSpec((num_layers * Bp, OUTW), lambda i: (0, 0)),
            scratch_shapes=[
                pltpu.VMEM((T * Bp, 4 * Hp), jnp.float32),  # hoisted input projection
                pltpu.VMEM((T * Bp, Hp), jnp.float32),      # inter-layer seq (ping)
                pltpu.VMEM((T * Bp, Hp), jnp.float32),      # inter-layer seq (pong)
            ],
        ),
        compiler_params=pltpu.CompilerParams(
            dimension_semantics=("arbitrary",)),
    )(*flat_inputs)

    # (L*Bp, 128) -> hn[l] rows, real batch, FC column 0 -> (L*B, 1, 1)
    out = out_p.reshape(num_layers, Bp, OUTW)[:, :B, 0]
    return out.reshape(num_layers * B, 1, 1)


# ----------------------------------------------------------------------------
# Pure-JAX reference (mirrors the PyTorch module in eval mode)
# ----------------------------------------------------------------------------
def _reference_forward(x, params, hidden_size, num_layers):
    B, T, D = x.shape
    H = hidden_size
    inp = x.astype(jnp.float32)
    h_last = []
    for layer in range(num_layers):
        w_ih, w_hh, b_ih, b_hh = params["lstm"][layer]
        h = jnp.zeros((B, H), jnp.float32)
        c = jnp.zeros((B, H), jnp.float32)
        outs = []
        for t in range(T):
            g = inp[:, t, :] @ w_ih.T + h @ w_hh.T + b_ih + b_hh
            i_g = jax.nn.sigmoid(g[:, 0 * H:1 * H])
            f_g = jax.nn.sigmoid(g[:, 1 * H:2 * H])
            g_g = jnp.tanh(g[:, 2 * H:3 * H])
            o_g = jax.nn.sigmoid(g[:, 3 * H:4 * H])
            c = f_g * c + i_g * g_g
            h = o_g * jnp.tanh(c)
            outs.append(h)
        inp = jnp.stack(outs, axis=1)
        h_last.append(h)
    hn = jnp.stack(h_last, axis=0).reshape(-1, H)
    w_fc, b_fc = params["fc"]
    return (hn @ w_fc.T + b_fc)[:, :, None]


if __name__ == "__main__":
    batch = 2
    seq = 8
    input_size = 16
    hidden_size = 32
    num_layers = 2

    key = jax.random.PRNGKey(0)
    key, xkey, pkey = jax.random.split(key, 3)
    x = jax.random.normal(xkey, (batch, seq, input_size), jnp.float32)
    params = init_params(pkey, input_size, hidden_size, num_layers)

    out = get_lstm_forward(x, params, hidden_size, num_layers)
    jax.block_until_ready(out)
    assert out.shape == (num_layers * batch, 1, 1), out.shape

    ref = _reference_forward(x, params, hidden_size, num_layers)
    err = float(jnp.max(jnp.abs(out - ref)))
    assert err < 1e-2, f"max abs err {err}"
    print("KERNEL_OK")
</pallas_src>

<mosaic_0001>
module attributes {stable_mosaic.version = 11 : i64} {
  func.func @_fused_lstm_kernel(%arg0: i32, %arg1: memref<64x128xf32, #tpu.memory_space<vmem>>, %arg2: memref<128x512xf32, #tpu.memory_space<vmem>>, %arg3: memref<128x512xf32, #tpu.memory_space<vmem>>, %arg4: memref<1x512xf32, #tpu.memory_space<vmem>>, %arg5: memref<128x512xf32, #tpu.memory_space<vmem>>, %arg6: memref<128x512xf32, #tpu.memory_space<vmem>>, %arg7: memref<1x512xf32, #tpu.memory_space<vmem>>, %arg8: memref<128x128xf32, #tpu.memory_space<vmem>>, %arg9: memref<1x128xf32, #tpu.memory_space<vmem>>, %arg10: memref<16x128xf32, #tpu.memory_space<vmem>>, %arg11: memref<64x512xf32, #tpu.memory_space<vmem>>, %arg12: memref<64x128xf32, #tpu.memory_space<vmem>>, %arg13: memref<64x128xf32, #tpu.memory_space<vmem>>) attributes {dimension_semantics = [#tpu.dimension_semantics<arbitrary>], iteration_bounds = array<i64: 1>, scalar_prefetch = 0 : i64, scratch_operands = 3 : i64, tpu.core_type = #tpu.core_type<tc>, window_params = [{pipeline_mode = #tpu.pipeline_mode<synchronous>, transform_indices = @transform_0, window_bounds = array<i64: 64, 128>}, {pipeline_mode = #tpu.pipeline_mode<synchronous>, transform_indices = @transform_1, window_bounds = array<i64: 128, 512>}, {pipeline_mode = #tpu.pipeline_mode<synchronous>, transform_indices = @transform_2, window_bounds = array<i64: 128, 512>}, {pipeline_mode = #tpu.pipeline_mode<synchronous>, transform_indices = @transform_3, window_bounds = array<i64: 1, 512>}, {pipeline_mode = #tpu.pipeline_mode<synchronous>, transform_indices = @transform_4, window_bounds = array<i64: 128, 512>}, {pipeline_mode = #tpu.pipeline_mode<synchronous>, transform_indices = @transform_5, window_bounds = array<i64: 128, 512>}, {pipeline_mode = #tpu.pipeline_mode<synchronous>, transform_indices = @transform_6, window_bounds = array<i64: 1, 512>}, {pipeline_mode = #tpu.pipeline_mode<synchronous>, transform_indices = @transform_7, window_bounds = array<i64: 128, 128>}, {pipeline_mode = #tpu.pipeline_mode<synchronous>, transform_indices = @transform_8, window_bounds = array<i64: 1, 128>}, {pipeline_mode = #tpu.pipeline_mode<synchronous>, transform_indices = @transform_9, window_bounds = array<i64: 16, 128>}]} {
    %c0 = arith.constant 0 : index
    %c0_0 = arith.constant 0 : index
    %0 = vector.load %arg1[%c0, %c0_0] : memref<64x128xf32, #tpu.memory_space<vmem>>, vector<64x128xf32>
    %c0_1 = arith.constant 0 : index
    %c0_2 = arith.constant 0 : index
    %1 = vector.load %arg2[%c0_1, %c0_2] : memref<128x512xf32, #tpu.memory_space<vmem>>, vector<128x512xf32>
    %cst = arith.constant dense<0.000000e+00> : vector<64x512xf32>
    %2 = tpu.matmul %0, %1, %cst {dimension_numbers = #tpu.dot_dimension_numbers<[1], [0], [0], [1], [0, 0, 1, 1], [], []>} : vector<64x128xf32>, vector<128x512xf32>, vector<64x512xf32> -> vector<64x512xf32>
    %c0_3 = arith.constant 0 : index
    %c0_4 = arith.constant 0 : index
    %3 = vector.load %arg4[%c0_3, %c0_4] : memref<1x512xf32, #tpu.memory_space<vmem>>, vector<1x512xf32>
    %4 = vector.broadcast %3 : vector<1x512xf32> to vector<64x512xf32>
    %5 = arith.addf %2, %4 : vector<64x512xf32>
    %c0_5 = arith.constant 0 : index
    %c0_6 = arith.constant 0 : index
    %6 = vector.load %arg11[%c0_5, %c0_6] : memref<64x512xf32, #tpu.memory_space<vmem>>, vector<64x512xf32>
    tpu.vector_store %arg11[%c0_5, %c0_6], %5 {strides = array<i32>} : memref<64x512xf32, #tpu.memory_space<vmem>>, vector<64x512xf32>,
    %c0_7 = arith.constant 0 : index
    %c0_8 = arith.constant 0 : index
    %7 = vector.load %arg3[%c0_7, %c0_8] : memref<128x512xf32, #tpu.memory_space<vmem>>, vector<128x512xf32>
    %cst_9 = arith.constant 0.000000e+00 : f32
    %8 = vector.broadcast %cst_9 : f32 to vector<8x128xf32>
    %cst_10 = arith.constant 0.000000e+00 : f32
    %9 = vector.broadcast %cst_10 : f32 to vector<8x128xf32>
    %c0_11 = arith.constant 0 : index
    %c0_12 = arith.constant 0 : index
    %10 = vector.load %arg11[%c0_11, %c0_12] : memref<64x512xf32, #tpu.memory_space<vmem>>, vector<8x512xf32>
    %cst_13 = arith.constant dense<0.000000e+00> : vector<8x512xf32>
    %11 = tpu.matmul %8, %7, %cst_13 {dimension_numbers = #tpu.dot_dimension_numbers<[1], [0], [0], [1], [0, 0, 1, 1], [], []>} : vector<8x128xf32>, vector<128x512xf32>, vector<8x512xf32> -> vector<8x512xf32>
    %12 = arith.addf %10, %11 : vector<8x512xf32>
    %13 = vector.extract_strided_slice %12 {offsets = [0, 0], sizes = [8, 128], strides = [1, 1]} : vector<8x512xf32> to vector<8x128xf32>
    %14 = arith.negf %13 : vector<8x128xf32>
    %15 = math.exp %14 : vector<8x128xf32>
    %cst_14 = arith.constant 1.000000e+00 : f32
    %16 = vector.broadcast %cst_14 : f32 to vector<8x128xf32>
    %17 = arith.addf %16, %15 : vector<8x128xf32>
    %18 = arith.divf %16, %17 : vector<8x128xf32>
    %19 = vector.extract_strided_slice %12 {offsets = [0, 128], sizes = [8, 128], strides = [1, 1]} : vector<8x512xf32> to vector<8x128xf32>
    %20 = arith.negf %19 : vector<8x128xf32>
    %21 = math.exp %20 : vector<8x128xf32>
    %cst_15 = arith.constant 1.000000e+00 : f32
    %22 = vector.broadcast %cst_15 : f32 to vector<8x128xf32>
    %23 = arith.addf %22, %21 : vector<8x128xf32>
    %24 = arith.divf %22, %23 : vector<8x128xf32>
    %25 = vector.extract_strided_slice %12 {offsets = [0, 256], sizes = [8, 128], strides = [1, 1]} : vector<8x512xf32> to vector<8x128xf32>
    %26 = math.tanh %25 : vector<8x128xf32>
    %27 = vector.extract_strided_slice %12 {offsets = [0, 384], sizes = [8, 128], strides = [1, 1]} : vector<8x512xf32> to vector<8x128xf32>
    %28 = arith.negf %27 : vector<8x128xf32>
    %29 = math.exp %28 : vector<8x128xf32>
    %cst_16 = arith.constant 1.000000e+00 : f32
    %30 = vector.broadcast %cst_16 : f32 to vector<8x128xf32>
    %31 = arith.addf %30, %29 : vector<8x128xf32>
    %32 = arith.divf %30, %31 : vector<8x128xf32>
    %33 = arith.mulf %24, %9 : vector<8x128xf32>
    %34 = arith.mulf %18, %26 : vector<8x128xf32>
    %35 = arith.addf %33, %34 : vector<8x128xf32>
    %36 = math.tanh %35 : vector<8x128xf32>
    %37 = arith.mulf %32, %36 : vector<8x128xf32>
    %c0_17 = arith.constant 0 : index
    %c0_18 = arith.constant 0 : index
    %38 = vector.load %arg12[%c0_17, %c0_18] : memref<64x128xf32, #tpu.memory_space<vmem>>, vector<8x128xf32>
    tpu.vector_store %arg12[%c0_17, %c0_18], %37 {strides = array<i32>} : memref<64x128xf32, #tpu.memory_space<vmem>>, vector<8x128xf32>,
    %c8 = arith.constant 8 : index
    %c0_19 = arith.constant 0 : index
    %39 = vector.load %arg11[%c8, %c0_19] : memref<64x512xf32, #tpu.memory_space<vmem>>, vector<8x512xf32>
    %cst_20 = arith.constant dense<0.000000e+00> : vector<8x512xf32>
    %40 = tpu.matmul %37, %7, %cst_20 {dimension_numbers = #tpu.dot_dimension_numbers<[1], [0], [0], [1], [0, 0, 1, 1], [], []>} : vector<8x128xf32>, vector<128x512xf32>, vector<8x512xf32> -> vector<8x512xf32>
    %41 = arith.addf %39, %40 : vector<8x512xf32>
    %42 = vector.extract_strided_slice %41 {offsets = [0, 0], sizes = [8, 128], strides = [1, 1]} : vector<8x512xf32> to vector<8x128xf32>
    %43 = arith.negf %42 : vector<8x128xf32>
    %44 = math.exp %43 : vector<8x128xf32>
    %cst_21 = arith.constant 1.000000e+00 : f32
    %45 = vector.broadcast %cst_21 : f32 to vector<8x128xf32>
    %46 = arith.addf %45, %44 : vector<8x128xf32>
    %47 = arith.divf %45, %46 : vector<8x128xf32>
    %48 = vector.extract_strided_slice %41 {offsets = [0, 128], sizes = [8, 128], strides = [1, 1]} : vector<8x512xf32> to vector<8x128xf32>
    %49 = arith.negf %48 : vector<8x128xf32>
    %50 = math.exp %49 : vector<8x128xf32>
    %cst_22 = arith.constant 1.000000e+00 : f32
    %51 = vector.broadcast %cst_22 : f32 to vector<8x128xf32>
    %52 = arith.addf %51, %50 : vector<8x128xf32>
    %53 = arith.divf %51, %52 : vector<8x128xf32>
    %54 = vector.extract_strided_slice %41 {offsets = [0, 256], sizes = [8, 128], strides = [1, 1]} : vector<8x512xf32> to vector<8x128xf32>
    %55 = math.tanh %54 : vector<8x128xf32>
    %56 = vector.extract_strided_slice %41 {offsets = [0, 384], sizes = [8, 128], strides = [1, 1]} : vector<8x512xf32> to vector<8x128xf32>
    %57 = arith.negf %56 : vector<8x128xf32>
    %58 = math.exp %57 : vector<8x128xf32>
    %cst_23 = arith.constant 1.000000e+00 : f32
    %59 = vector.broadcast %cst_23 : f32 to vector<8x128xf32>
    %60 = arith.addf %59, %58 : vector<8x128xf32>
    %61 = arith.divf %59, %60 : vector<8x128xf32>
    %62 = arith.mulf %53, %35 : vector<8x128xf32>
    %63 = arith.mulf %47, %55 : vector<8x128xf32>
    %64 = arith.addf %62, %63 : vector<8x128xf32>
    %65 = math.tanh %64 : vector<8x128xf32>
    %66 = arith.mulf %61, %65 : vector<8x128xf32>
    %c8_24 = arith.constant 8 : index
    %c0_25 = arith.constant 0 : index
    %67 = vector.load %arg12[%c8_24, %c0_25] : memref<64x128xf32, #tpu.memory_space<vmem>>, vector<8x128xf32>
    tpu.vector_store %arg12[%c8_24, %c0_25], %66 {strides = array<i32>} : memref<64x128xf32, #tpu.memory_space<vmem>>, vector<8x128xf32>,
    %c16 = arith.constant 16 : index
    %c0_26 = arith.constant 0 : index
    %68 = vector.load %arg11[%c16, %c0_26] : memref<64x512xf32, #tpu.memory_space<vmem>>, vector<8x512xf32>
    %cst_27 = arith.constant dense<0.000000e+00> : vector<8x512xf32>
    %69 = tpu.matmul %66, %7, %cst_27 {dimension_numbers = #tpu.dot_dimension_numbers<[1], [0], [0], [1], [0, 0, 1, 1], [], []>} : vector<8x128xf32>, vector<128x512xf32>, vector<8x512xf32> -> vector<8x512xf32>
    %70 = arith.addf %68, %69 : vector<8x512xf32>
    %71 = vector.extract_strided_slice %70 {offsets = [0, 0], sizes = [8, 128], strides = [1, 1]} : vector<8x512xf32> to vector<8x128xf32>
    %72 = arith.negf %71 : vector<8x128xf32>
    %73 = math.exp %72 : vector<8x128xf32>
    %cst_28 = arith.constant 1.000000e+00 : f32
    %74 = vector.broadcast %cst_28 : f32 to vector<8x128xf32>
    %75 = arith.addf %74, %73 : vector<8x128xf32>
    %76 = arith.divf %74, %75 : vector<8x128xf32>
    %77 = vector.extract_strided_slice %70 {offsets = [0, 128], sizes = [8, 128], strides = [1, 1]} : vector<8x512xf32> to vector<8x128xf32>
    %78 = arith.negf %77 : vector<8x128xf32>
    %79 = math.exp %78 : vector<8x128xf32>
    %cst_29 = arith.constant 1.000000e+00 : f32
    %80 = vector.broadcast %cst_29 : f32 to vector<8x128xf32>
    %81 = arith.addf %80, %79 : vector<8x128xf32>
    %82 = arith.divf %80, %81 : vector<8x128xf32>
    %83 = vector.extract_strided_slice %70 {offsets = [0, 256], sizes = [8, 128], strides = [1, 1]} : vector<8x512xf32> to vector<8x128xf32>
    %84 = math.tanh %83 : vector<8x128xf32>
    %85 = vector.extract_strided_slice %70 {offsets = [0, 384], sizes = [8, 128], strides = [1, 1]} : vector<8x512xf32> to vector<8x128xf32>
    %86 = arith.negf %85 : vector<8x128xf32>
    %87 = math.exp %86 : vector<8x128xf32>
    %cst_30 = arith.constant 1.000000e+00 : f32
    %88 = vector.broadcast %cst_30 : f32 to vector<8x128xf32>
    %89 = arith.addf %88, %87 : vector<8x128xf32>
    %90 = arith.divf %88, %89 : vector<8x128xf32>
    %91 = arith.mulf %82, %64 : vector<8x128xf32>
    %92 = arith.mulf %76, %84 : vector<8x128xf32>
    %93 = arith.addf %91, %92 : vector<8x128xf32>
    %94 = math.tanh %93 : vector<8x128xf32>
    %95 = arith.mulf %90, %94 : vector<8x128xf32>
    %c16_31 = arith.constant 16 : index
    %c0_32 = arith.constant 0 : index
    %96 = vector.load %arg12[%c16_31, %c0_32] : memref<64x128xf32, #tpu.memory_space<vmem>>, vector<8x128xf32>
    tpu.vector_store %arg12[%c16_31, %c0_32], %95 {strides = array<i32>} : memref<64x128xf32, #tpu.memory_space<vmem>>, vector<8x128xf32>,
    %c24 = arith.constant 24 : index
    %c0_33 = arith.constant 0 : index
    %97 = vector.load %arg11[%c24, %c0_33] : memref<64x512xf32, #tpu.memory_space<vmem>>, vector<8x512xf32>
    %cst_34 = arith.constant dense<0.000000e+00> : vector<8x512xf32>
    %98 = tpu.matmul %95, %7, %cst_34 {dimension_numbers = #tpu.dot_dimension_numbers<[1], [0], [0], [1], [0, 0, 1, 1], [], []>} : vector<8x128xf32>, vector<128x512xf32>, vector<8x512xf32> -> vector<8x512xf32>
    %99 = arith.addf %97, %98 : vector<8x512xf32>
    %100 = vector.extract_strided_slice %99 {offsets = [0, 0], sizes = [8, 128], strides = [1, 1]} : vector<8x512xf32> to vector<8x128xf32>
    %101 = arith.negf %100 : vector<8x128xf32>
    %102 = math.exp %101 : vector<8x128xf32>
    %cst_35 = arith.constant 1.000000e+00 : f32
    %103 = vector.broadcast %cst_35 : f32 to vector<8x128xf32>
    %104 = arith.addf %103, %102 : vector<8x128xf32>
    %105 = arith.divf %103, %104 : vector<8x128xf32>
    %106 = vector.extract_strided_slice %99 {offsets = [0, 128], sizes = [8, 128], strides = [1, 1]} : vector<8x512xf32> to vector<8x128xf32>
    %107 = arith.negf %106 : vector<8x128xf32>
    %108 = math.exp %107 : vector<8x128xf32>
    %cst_36 = arith.constant 1.000000e+00 : f32
    %109 = vector.broadcast %cst_36 : f32 to vector<8x128xf32>
    %110 = arith.addf %109, %108 : vector<8x128xf32>
    %111 = arith.divf %109, %110 : vector<8x128xf32>
    %112 = vector.extract_strided_slice %99 {offsets = [0, 256], sizes = [8, 128], strides = [1, 1]} : vector<8x512xf32> to vector<8x128xf32>
    %113 = math.tanh %112 : vector<8x128xf32>
    %114 = vector.extract_strided_slice %99 {offsets = [0, 384], sizes = [8, 128], strides = [1, 1]} : vector<8x512xf32> to vector<8x128xf32>
    %115 = arith.negf %114 : vector<8x128xf32>
    %116 = math.exp %115 : vector<8x128xf32>
    %cst_37 = arith.constant 1.000000e+00 : f32
    %117 = vector.broadcast %cst_37 : f32 to vector<8x128xf32>
    %118 = arith.addf %117, %116 : vector<8x128xf32>
    %119 = arith.divf %117, %118 : vector<8x128xf32>
    %120 = arith.mulf %111, %93 : vector<8x128xf32>
    %121 = arith.mulf %105, %113 : vector<8x128xf32>
    %122 = arith.addf %120, %121 : vector<8x128xf32>
    %123 = math.tanh %122 : vector<8x128xf32>
    %124 = arith.mulf %119, %123 : vector<8x128xf32>
    %c24_38 = arith.constant 24 : index
    %c0_39 = arith.constant 0 : index
    %125 = vector.load %arg12[%c24_38, %c0_39] : memref<64x128xf32, #tpu.memory_space<vmem>>, vector<8x128xf32>
    tpu.vector_store %arg12[%c24_38, %c0_39], %124 {strides = array<i32>} : memref<64x128xf32, #tpu.memory_space<vmem>>, vector<8x128xf32>,
    %c32 = arith.constant 32 : index
    %c0_40 = arith.constant 0 : index
    %126 = vector.load %arg11[%c32, %c0_40] : memref<64x512xf32, #tpu.memory_space<vmem>>, vector<8x512xf32>
    %cst_41 = arith.constant dense<0.000000e+00> : vector<8x512xf32>
    %127 = tpu.matmul %124, %7, %cst_41 {dimension_numbers = #tpu.dot_dimension_numbers<[1], [0], [0], [1], [0, 0, 1, 1], [], []>} : vector<8x128xf32>, vector<128x512xf32>, vector<8x512xf32> -> vector<8x512xf32>
    %128 = arith.addf %126, %127 : vector<8x512xf32>
    %129 = vector.extract_strided_slice %128 {offsets = [0, 0], sizes = [8, 128], strides = [1, 1]} : vector<8x512xf32> to vector<8x128xf32>
    %130 = arith.negf %129 : vector<8x128xf32>
    %131 = math.exp %130 : vector<8x128xf32>
    %cst_42 = arith.constant 1.000000e+00 : f32
    %132 = vector.broadcast %cst_42 : f32 to vector<8x128xf32>
    %133 = arith.addf %132, %131 : vector<8x128xf32>
    %134 = arith.divf %132, %133 : vector<8x128xf32>
    %135 = vector.extract_strided_slice %128 {offsets = [0, 128], sizes = [8, 128], strides = [1, 1]} : vector<8x512xf32> to vector<8x128xf32>
    %136 = arith.negf %135 : vector<8x128xf32>
    %137 = math.exp %136 : vector<8x128xf32>
    %cst_43 = arith.constant 1.000000e+00 : f32
    %138 = vector.broadcast %cst_43 : f32 to vector<8x128xf32>
    %139 = arith.addf %138, %137 : vector<8x128xf32>
    %140 = arith.divf %138, %139 : vector<8x128xf32>
    %141 = vector.extract_strided_slice %128 {offsets = [0, 256], sizes = [8, 128], strides = [1, 1]} : vector<8x512xf32> to vector<8x128xf32>
    %142 = math.tanh %141 : vector<8x128xf32>
    %143 = vector.extract_strided_slice %128 {offsets = [0, 384], sizes = [8, 128], strides = [1, 1]} : vector<8x512xf32> to vector<8x128xf32>
    %144 = arith.negf %143 : vector<8x128xf32>
    %145 = math.exp %144 : vector<8x128xf32>
    %cst_44 = arith.constant 1.000000e+00 : f32
    %146 = vector.broadcast %cst_44 : f32 to vector<8x128xf32>
    %147 = arith.addf %146, %145 : vector<8x128xf32>
    %148 = arith.divf %146, %147 : vector<8x128xf32>
    %149 = arith.mulf %140, %122 : vector<8x128xf32>
    %150 = arith.mulf %134, %142 : vector<8x128xf32>
    %151 = arith.addf %149, %150 : vector<8x128xf32>
    %152 = math.tanh %151 : vector<8x128xf32>
    %153 = arith.mulf %148, %152 : vector<8x128xf32>
    %c32_45 = arith.constant 32 : index
    %c0_46 = arith.constant 0 : index
    %154 = vector.load %arg12[%c32_45, %c0_46] : memref<64x128xf32, #tpu.memory_space<vmem>>, vector<8x128xf32>
    tpu.vector_store %arg12[%c32_45, %c0_46], %153 {strides = array<i32>} : memref<64x128xf32, #tpu.memory_space<vmem>>, vector<8x128xf32>,
    %c40 = arith.constant 40 : index
    %c0_47 = arith.constant 0 : index
    %155 = vector.load %arg11[%c40, %c0_47] : memref<64x512xf32, #tpu.memory_space<vmem>>, vector<8x512xf32>
    %cst_48 = arith.constant dense<0.000000e+00> : vector<8x512xf32>
    %156 = tpu.matmul %153, %7, %cst_48 {dimension_numbers = #tpu.dot_dimension_numbers<[1], [0], [0], [1], [0, 0, 1, 1], [], []>} : vector<8x128xf32>, vector<128x512xf32>, vector<8x512xf32> -> vector<8x512xf32>
    %157 = arith.addf %155, %156 : vector<8x512xf32>
    %158 = vector.extract_strided_slice %157 {offsets = [0, 0], sizes = [8, 128], strides = [1, 1]} : vector<8x512xf32> to vector<8x128xf32>
    %159 = arith.negf %158 : vector<8x128xf32>
    %160 = math.exp %159 : vector<8x128xf32>
    %cst_49 = arith.constant 1.000000e+00 : f32
    %161 = vector.broadcast %cst_49 : f32 to vector<8x128xf32>
    %162 = arith.addf %161, %160 : vector<8x128xf32>
    %163 = arith.divf %161, %162 : vector<8x128xf32>
    %164 = vector.extract_strided_slice %157 {offsets = [0, 128], sizes = [8, 128], strides = [1, 1]} : vector<8x512xf32> to vector<8x128xf32>
    %165 = arith.negf %164 : vector<8x128xf32>
    %166 = math.exp %165 : vector<8x128xf32>
    %cst_50 = arith.constant 1.000000e+00 : f32
    %167 = vector.broadcast %cst_50 : f32 to vector<8x128xf32>
    %168 = arith.addf %167, %166 : vector<8x128xf32>
    %169 = arith.divf %167, %168 : vector<8x128xf32>
    %170 = vector.extract_strided_slice %157 {offsets = [0, 256], sizes = [8, 128], strides = [1, 1]} : vector<8x512xf32> to vector<8x128xf32>
    %171 = math.tanh %170 : vector<8x128xf32>
    %172 = vector.extract_strided_slice %157 {offsets = [0, 384], sizes = [8, 128], strides = [1, 1]} : vector<8x512xf32> to vector<8x128xf32>
    %173 = arith.negf %172 : vector<8x128xf32>
    %174 = math.exp %173 : vector<8x128xf32>
    %cst_51 = arith.constant 1.000000e+00 : f32
    %175 = vector.broadcast %cst_51 : f32 to vector<8x128xf32>
    %176 = arith.addf %175, %174 : vector<8x128xf32>
    %177 = arith.divf %175, %176 : vector<8x128xf32>
    %178 = arith.mulf %169, %151 : vector<8x128xf32>
    %179 = arith.mulf %163, %171 : vector<8x128xf32>
    %180 = arith.addf %178, %179 : vector<8x128xf32>
    %181 = math.tanh %180 : vector<8x128xf32>
    %182 = arith.mulf %177, %181 : vector<8x128xf32>
    %c40_52 = arith.constant 40 : index
    %c0_53 = arith.constant 0 : index
    %183 = vector.load %arg12[%c40_52, %c0_53] : memref<64x128xf32, #tpu.memory_space<vmem>>, vector<8x128xf32>
    tpu.vector_store %arg12[%c40_52, %c0_53], %182 {strides = array<i32>} : memref<64x128xf32, #tpu.memory_space<vmem>>, vector<8x128xf32>,
    %c48 = arith.constant 48 : index
    %c0_54 = arith.constant 0 : index
    %184 = vector.load %arg11[%c48, %c0_54] : memref<64x512xf32, #tpu.memory_space<vmem>>, vector<8x512xf32>
    %cst_55 = arith.constant dense<0.000000e+00> : vector<8x512xf32>
    %185 = tpu.matmul %182, %7, %cst_55 {dimension_numbers = #tpu.dot_dimension_numbers<[1], [0], [0], [1], [0, 0, 1, 1], [], []>} : vector<8x128xf32>, vector<128x512xf32>, vector<8x512xf32> -> vector<8x512xf32>
    %186 = arith.addf %184, %185 : vector<8x512xf32>
    %187 = vector.extract_strided_slice %186 {offsets = [0, 0], sizes = [8, 128], strides = [1, 1]} : vector<8x512xf32> to vector<8x128xf32>
    %188 = arith.negf %187 : vector<8x128xf32>
    %189 = math.exp %188 : vector<8x128xf32>
    %cst_56 = arith.constant 1.000000e+00 : f32
    %190 = vector.broadcast %cst_56 : f32 to vector<8x128xf32>
    %191 = arith.addf %190, %189 : vector<8x128xf32>
    %192 = arith.divf %190, %191 : vector<8x128xf32>
    %193 = vector.extract_strided_slice %186 {offsets = [0, 128], sizes = [8, 128], strides = [1, 1]} : vector<8x512xf32> to vector<8x128xf32>
    %194 = arith.negf %193 : vector<8x128xf32>
    %195 = math.exp %194 : vector<8x128xf32>
    %cst_57 = arith.constant 1.000000e+00 : f32
    %196 = vector.broadcast %cst_57 : f32 to vector<8x128xf32>
    %197 = arith.addf %196, %195 : vector<8x128xf32>
    %198 = arith.divf %196, %197 : vector<8x128xf32>
    %199 = vector.extract_strided_slice %186 {offsets = [0, 256], sizes = [8, 128], strides = [1, 1]} : vector<8x512xf32> to vector<8x128xf32>
    %200 = math.tanh %199 : vector<8x128xf32>
    %201 = vector.extract_strided_slice %186 {offsets = [0, 384], sizes = [8, 128], strides = [1, 1]} : vector<8x512xf32> to vector<8x128xf32>
    %202 = arith.negf %201 : vector<8x128xf32>
    %203 = math.exp %202 : vector<8x128xf32>
    %cst_58 = arith.constant 1.000000e+00 : f32
    %204 = vector.broadcast %cst_58 : f32 to vector<8x128xf32>
    %205 = arith.addf %204, %203 : vector<8x128xf32>
    %206 = arith.divf %204, %205 : vector<8x128xf32>
    %207 = arith.mulf %198, %180 : vector<8x128xf32>
    %208 = arith.mulf %192, %200 : vector<8x128xf32>
    %209 = arith.addf %207, %208 : vector<8x128xf32>
    %210 = math.tanh %209 : vector<8x128xf32>
    %211 = arith.mulf %206, %210 : vector<8x128xf32>
    %c48_59 = arith.constant 48 : index
    %c0_60 = arith.constant 0 : index
    %212 = vector.load %arg12[%c48_59, %c0_60] : memref<64x128xf32, #tpu.memory_space<vmem>>, vector<8x128xf32>
    tpu.vector_store %arg12[%c48_59, %c0_60], %211 {strides = array<i32>} : memref<64x128xf32, #tpu.memory_space<vmem>>, vector<8x128xf32>,
    %c56 = arith.constant 56 : index
    %c0_61 = arith.constant 0 : index
    %213 = vector.load %arg11[%c56, %c0_61] : memref<64x512xf32, #tpu.memory_space<vmem>>, vector<8x512xf32>
    %cst_62 = arith.constant dense<0.000000e+00> : vector<8x512xf32>
    %214 = tpu.matmul %211, %7, %cst_62 {dimension_numbers = #tpu.dot_dimension_numbers<[1], [0], [0], [1], [0, 0, 1, 1], [], []>} : vector<8x128xf32>, vector<128x512xf32>, vector<8x512xf32> -> vector<8x512xf32>
    %215 = arith.addf %213, %214 : vector<8x512xf32>
    %216 = vector.extract_strided_slice %215 {offsets = [0, 0], sizes = [8, 128], strides = [1, 1]} : vector<8x512xf32> to vector<8x128xf32>
    %217 = arith.negf %216 : vector<8x128xf32>
    %218 = math.exp %217 : vector<8x128xf32>
    %cst_63 = arith.constant 1.000000e+00 : f32
    %219 = vector.broadcast %cst_63 : f32 to vector<8x128xf32>
    %220 = arith.addf %219, %218 : vector<8x128xf32>
    %221 = arith.divf %219, %220 : vector<8x128xf32>
    %222 = vector.extract_strided_slice %215 {offsets = [0, 128], sizes = [8, 128], strides = [1, 1]} : vector<8x512xf32> to vector<8x128xf32>
    %223 = arith.negf %222 : vector<8x128xf32>
    %224 = math.exp %223 : vector<8x128xf32>
    %cst_64 = arith.constant 1.000000e+00 : f32
    %225 = vector.broadcast %cst_64 : f32 to vector<8x128xf32>
    %226 = arith.addf %225, %224 : vector<8x128xf32>
    %227 = arith.divf %225, %226 : vector<8x128xf32>
    %228 = vector.extract_strided_slice %215 {offsets = [0, 256], sizes = [8, 128], strides = [1, 1]} : vector<8x512xf32> to vector<8x128xf32>
    %229 = math.tanh %228 : vector<8x128xf32>
    %230 = vector.extract_strided_slice %215 {offsets = [0, 384], sizes = [8, 128], strides = [1, 1]} : vector<8x512xf32> to vector<8x128xf32>
    %231 = arith.negf %230 : vector<8x128xf32>
    %232 = math.exp %231 : vector<8x128xf32>
    %cst_65 = arith.constant 1.000000e+00 : f32
    %233 = vector.broadcast %cst_65 : f32 to vector<8x128xf32>
    %234 = arith.addf %233, %232 : vector<8x128xf32>
    %235 = arith.divf %233, %234 : vector<8x128xf32>
    %236 = arith.mulf %227, %209 : vector<8x128xf32>
    %237 = arith.mulf %221, %229 : vector<8x128xf32>
    %238 = arith.addf %236, %237 : vector<8x128xf32>
    %239 = math.tanh %238 : vector<8x128xf32>
    %240 = arith.mulf %235, %239 : vector<8x128xf32>
    %c56_66 = arith.constant 56 : index
    %c0_67 = arith.constant 0 : index
    %241 = vector.load %arg12[%c56_66, %c0_67] : memref<64x128xf32, #tpu.memory_space<vmem>>, vector<8x128xf32>
    tpu.vector_store %arg12[%c56_66, %c0_67], %240 {strides = array<i32>} : memref<64x128xf32, #tpu.memory_space<vmem>>, vector<8x128xf32>,
    %c0_68 = arith.constant 0 : index
    %c0_69 = arith.constant 0 : index
    %242 = vector.load %arg8[%c0_68, %c0_69] : memref<128x128xf32, #tpu.memory_space<vmem>>, vector<128x128xf32>
    %cst_70 = arith.constant dense<0.000000e+00> : vector<8x128xf32>
    %243 = tpu.matmul %240, %242, %cst_70 {dimension_numbers = #tpu.dot_dimension_numbers<[1], [0], [0], [1], [0, 0, 1, 1], [], []>} : vector<8x128xf32>, vector<128x128xf32>, vector<8x128xf32> -> vector<8x128xf32>
    %c0_71 = arith.constant 0 : index
    %c0_72 = arith.constant 0 : index
    %244 = vector.load %arg9[%c0_71, %c0_72] : memref<1x128xf32, #tpu.memory_space<vmem>>, vector<1x128xf32>
    %245 = vector.broadcast %244 : vector<1x128xf32> to vector<8x128xf32>
    %246 = arith.addf %243, %245 : vector<8x128xf32>
    %c0_73 = arith.constant 0 : index
    %c0_74 = arith.constant 0 : index
    %247 = vector.load %arg10[%c0_73, %c0_74] : memref<16x128xf32, #tpu.memory_space<vmem>>, vector<8x128xf32>
    tpu.vector_store %arg10[%c0_73, %c0_74], %246 {strides = array<i32>} : memref<16x128xf32, #tpu.memory_space<vmem>>, vector<8x128xf32>,
    %c0_75 = arith.constant 0 : index
    %c0_76 = arith.constant 0 : index
    %248 = vector.load %arg12[%c0_75, %c0_76] : memref<64x128xf32, #tpu.memory_space<vmem>>, vector<64x128xf32>
    %c0_77 = arith.constant 0 : index
    %c0_78 = arith.constant 0 : index
    %249 = vector.load %arg5[%c0_77, %c0_78] : memref<128x512xf32, #tpu.memory_space<vmem>>, vector<128x512xf32>
    %cst_79 = arith.constant dense<0.000000e+00> : vector<64x512xf32>
    %250 = tpu.matmul %248, %249, %cst_79 {dimension_numbers = #tpu.dot_dimension_numbers<[1], [0], [0], [1], [0, 0, 1, 1], [], []>} : vector<64x128xf32>, vector<128x512xf32>, vector<64x512xf32> -> vector<64x512xf32>
    %c0_80 = arith.constant 0 : index
    %c0_81 = arith.constant 0 : index
    %251 = vector.load %arg7[%c0_80, %c0_81] : memref<1x512xf32, #tpu.memory_space<vmem>>, vector<1x512xf32>
    %252 = vector.broadcast %251 : vector<1x512xf32> to vector<64x512xf32>
    %253 = arith.addf %250, %252 : vector<64x512xf32>
    %c0_82 = arith.constant 0 : index
    %c0_83 = arith.constant 0 : index
    %254 = vector.load %arg11[%c0_82, %c0_83] : memref<64x512xf32, #tpu.memory_space<vmem>>, vector<64x512xf32>
    tpu.vector_store %arg11[%c0_82, %c0_83], %253 {strides = array<i32>} : memref<64x512xf32, #tpu.memory_space<vmem>>, vector<64x512xf32>,
    %c0_84 = arith.constant 0 : index
    %c0_85 = arith.constant 0 : index
    %255 = vector.load %arg6[%c0_84, %c0_85] : memref<128x512xf32, #tpu.memory_space<vmem>>, vector<128x512xf32>
    %cst_86 = arith.constant 0.000000e+00 : f32
    %256 = vector.broadcast %cst_86 : f32 to vector<8x128xf32>
    %cst_87 = arith.constant 0.000000e+00 : f32
    %257 = vector.broadcast %cst_87 : f32 to vector<8x128xf32>
    %c0_88 = arith.constant 0 : index
    %c0_89 = arith.constant 0 : index
    %258 = vector.load %arg11[%c0_88, %c0_89] : memref<64x512xf32, #tpu.memory_space<vmem>>, vector<8x512xf32>
    %cst_90 = arith.constant dense<0.000000e+00> : vector<8x512xf32>
    %259 = tpu.matmul %256, %255, %cst_90 {dimension_numbers = #tpu.dot_dimension_numbers<[1], [0], [0], [1], [0, 0, 1, 1], [], []>} : vector<8x128xf32>, vector<128x512xf32>, vector<8x512xf32> -> vector<8x512xf32>
    %260 = arith.addf %258, %259 : vector<8x512xf32>
    %261 = vector.extract_strided_slice %260 {offsets = [0, 0], sizes = [8, 128], strides = [1, 1]} : vector<8x512xf32> to vector<8x128xf32>
    %262 = arith.negf %261 : vector<8x128xf32>
    %263 = math.exp %262 : vector<8x128xf32>
    %cst_91 = arith.constant 1.000000e+00 : f32
    %264 = vector.broadcast %cst_91 : f32 to vector<8x128xf32>
    %265 = arith.addf %264, %263 : vector<8x128xf32>
    %266 = arith.divf %264, %265 : vector<8x128xf32>
    %267 = vector.extract_strided_slice %260 {offsets = [0, 128], sizes = [8, 128], strides = [1, 1]} : vector<8x512xf32> to vector<8x128xf32>
    %268 = arith.negf %267 : vector<8x128xf32>
    %269 = math.exp %268 : vector<8x128xf32>
    %cst_92 = arith.constant 1.000000e+00 : f32
    %270 = vector.broadcast %cst_92 : f32 to vector<8x128xf32>
    %271 = arith.addf %270, %269 : vector<8x128xf32>
    %272 = arith.divf %270, %271 : vector<8x128xf32>
    %273 = vector.extract_strided_slice %260 {offsets = [0, 256], sizes = [8, 128], strides = [1, 1]} : vector<8x512xf32> to vector<8x128xf32>
    %274 = math.tanh %273 : vector<8x128xf32>
    %275 = vector.extract_strided_slice %260 {offsets = [0, 384], sizes = [8, 128], strides = [1, 1]} : vector<8x512xf32> to vector<8x128xf32>
    %276 = arith.negf %275 : vector<8x128xf32>
    %277 = math.exp %276 : vector<8x128xf32>
    %cst_93 = arith.constant 1.000000e+00 : f32
    %278 = vector.broadcast %cst_93 : f32 to vector<8x128xf32>
    %279 = arith.addf %278, %277 : vector<8x128xf32>
    %280 = arith.divf %278, %279 : vector<8x128xf32>
    %281 = arith.mulf %272, %257 : vector<8x128xf32>
    %282 = arith.mulf %266, %274 : vector<8x128xf32>
    %283 = arith.addf %281, %282 : vector<8x128xf32>
    %284 = math.tanh %283 : vector<8x128xf32>
    %285 = arith.mulf %280, %284 : vector<8x128xf32>
    %c8_94 = arith.constant 8 : index
    %c0_95 = arith.constant 0 : index
    %286 = vector.load %arg11[%c8_94, %c0_95] : memref<64x512xf32, #tpu.memory_space<vmem>>, vector<8x512xf32>
    %cst_96 = arith.constant dense<0.000000e+00> : vector<8x512xf32>
    %287 = tpu.matmul %285, %255, %cst_96 {dimension_numbers = #tpu.dot_dimension_numbers<[1], [0], [0], [1], [0, 0, 1, 1], [], []>} : vector<8x128xf32>, vector<128x512xf32>, vector<8x512xf32> -> vector<8x512xf32>
    %288 = arith.addf %286, %287 : vector<8x512xf32>
    %289 = vector.extract_strided_slice %288 {offsets = [0, 0], sizes = [8, 128], strides = [1, 1]} : vector<8x512xf32> to vector<8x128xf32>
    %290 = arith.negf %289 : vector<8x128xf32>
    %291 = math.exp %290 : vector<8x128xf32>
    %cst_97 = arith.constant 1.000000e+00 : f32
    %292 = vector.broadcast %cst_97 : f32 to vector<8x128xf32>
    %293 = arith.addf %292, %291 : vector<8x128xf32>
    %294 = arith.divf %292, %293 : vector<8x128xf32>
    %295 = vector.extract_strided_slice %288 {offsets = [0, 128], sizes = [8, 128], strides = [1, 1]} : vector<8x512xf32> to vector<8x128xf32>
    %296 = arith.negf %295 : vector<8x128xf32>
    %297 = math.exp %296 : vector<8x128xf32>
    %cst_98 = arith.constant 1.000000e+00 : f32
    %298 = vector.broadcast %cst_98 : f32 to vector<8x128xf32>
    %299 = arith.addf %298, %297 : vector<8x128xf32>
    %300 = arith.divf %298, %299 : vector<8x128xf32>
    %301 = vector.extract_strided_slice %288 {offsets = [0, 256], sizes = [8, 128], strides = [1, 1]} : vector<8x512xf32> to vector<8x128xf32>
    %302 = math.tanh %301 : vector<8x128xf32>
    %303 = vector.extract_strided_slice %288 {offsets = [0, 384], sizes = [8, 128], strides = [1, 1]} : vector<8x512xf32> to vector<8x128xf32>
    %304 = arith.negf %303 : vector<8x128xf32>
    %305 = math.exp %304 : vector<8x128xf32>
    %cst_99 = arith.constant 1.000000e+00 : f32
    %306 = vector.broadcast %cst_99 : f32 to vector<8x128xf32>
    %307 = arith.addf %306, %305 : vector<8x128xf32>
    %308 = arith.divf %306, %307 : vector<8x128xf32>
    %309 = arith.mulf %300, %283 : vector<8x128xf32>
    %310 = arith.mulf %294, %302 : vector<8x128xf32>
    %311 = arith.addf %309, %310 : vector<8x128xf32>
    %312 = math.tanh %311 : vector<8x128xf32>
    %313 = arith.mulf %308, %312 : vector<8x128xf32>
    %c16_100 = arith.constant 16 : index
    %c0_101 = arith.constant 0 : index
    %314 = vector.load %arg11[%c16_100, %c0_101] : memref<64x512xf32, #tpu.memory_space<vmem>>, vector<8x512xf32>
    %cst_102 = arith.constant dense<0.000000e+00> : vector<8x512xf32>
    %315 = tpu.matmul %313, %255, %cst_102 {dimension_numbers = #tpu.dot_dimension_numbers<[1], [0], [0], [1], [0, 0, 1, 1], [], []>} : vector<8x128xf32>, vector<128x512xf32>, vector<8x512xf32> -> vector<8x512xf32>
    %316 = arith.addf %314, %315 : vector<8x512xf32>
    %317 = vector.extract_strided_slice %316 {offsets = [0, 0], sizes = [8, 128], strides = [1, 1]} : vector<8x512xf32> to vector<8x128xf32>
    %318 = arith.negf %317 : vector<8x128xf32>
    %319 = math.exp %318 : vector<8x128xf32>
    %cst_103 = arith.constant 1.000000e+00 : f32
    %320 = vector.broadcast %cst_103 : f32 to vector<8x128xf32>
    %321 = arith.addf %320, %319 : vector<8x128xf32>
    %322 = arith.divf %320, %321 : vector<8x128xf32>
    %323 = vector.extract_strided_slice %316 {offsets = [0, 128], sizes = [8, 128], strides = [1, 1]} : vector<8x512xf32> to vector<8x128xf32>
    %324 = arith.negf %323 : vector<8x128xf32>
    %325 = math.exp %324 : vector<8x128xf32>
    %cst_104 = arith.constant 1.000000e+00 : f32
    %326 = vector.broadcast %cst_104 : f32 to vector<8x128xf32>
    %327 = arith.addf %326, %325 : vector<8x128xf32>
    %328 = arith.divf %326, %327 : vector<8x128xf32>
    %329 = vector.extract_strided_slice %316 {offsets = [0, 256], sizes = [8, 128], strides = [1, 1]} : vector<8x512xf32> to vector<8x128xf32>
    %330 = math.tanh %329 : vector<8x128xf32>
    %331 = vector.extract_strided_slice %316 {offsets = [0, 384], sizes = [8, 128], strides = [1, 1]} : vector<8x512xf32> to vector<8x128xf32>
    %332 = arith.negf %331 : vector<8x128xf32>
    %333 = math.exp %332 : vector<8x128xf32>
    %cst_105 = arith.constant 1.000000e+00 : f32
    %334 = vector.broadcast %cst_105 : f32 to vector<8x128xf32>
    %335 = arith.addf %334, %333 : vector<8x128xf32>
    %336 = arith.divf %334, %335 : vector<8x128xf32>
    %337 = arith.mulf %328, %311 : vector<8x128xf32>
    %338 = arith.mulf %322, %330 : vector<8x128xf32>
    %339 = arith.addf %337, %338 : vector<8x128xf32>
    %340 = math.tanh %339 : vector<8x128xf32>
    %341 = arith.mulf %336, %340 : vector<8x128xf32>
    %c24_106 = arith.constant 24 : index
    %c0_107 = arith.constant 0 : index
    %342 = vector.load %arg11[%c24_106, %c0_107] : memref<64x512xf32, #tpu.memory_space<vmem>>, vector<8x512xf32>
    %cst_108 = arith.constant dense<0.000000e+00> : vector<8x512xf32>
    %343 = tpu.matmul %341, %255, %cst_108 {dimension_numbers = #tpu.dot_dimension_numbers<[1], [0], [0], [1], [0, 0, 1, 1], [], []>} : vector<8x128xf32>, vector<128x512xf32>, vector<8x512xf32> -> vector<8x512xf32>
    %344 = arith.addf %342, %343 : vector<8x512xf32>
    %345 = vector.extract_strided_slice %344 {offsets = [0, 0], sizes = [8, 128], strides = [1, 1]} : vector<8x512xf32> to vector<8x128xf32>
    %346 = arith.negf %345 : vector<8x128xf32>
    %347 = math.exp %346 : vector<8x128xf32>
    %cst_109 = arith.constant 1.000000e+00 : f32
    %348 = vector.broadcast %cst_109 : f32 to vector<8x128xf32>
    %349 = arith.addf %348, %347 : vector<8x128xf32>
    %350 = arith.divf %348, %349 : vector<8x128xf32>
    %351 = vector.extract_strided_slice %344 {offsets = [0, 128], sizes = [8, 128], strides = [1, 1]} : vector<8x512xf32> to vector<8x128xf32>
    %352 = arith.negf %351 : vector<8x128xf32>
    %353 = math.exp %352 : vector<8x128xf32>
    %cst_110 = arith.constant 1.000000e+00 : f32
    %354 = vector.broadcast %cst_110 : f32 to vector<8x128xf32>
    %355 = arith.addf %354, %353 : vector<8x128xf32>
    %356 = arith.divf %354, %355 : vector<8x128xf32>
    %357 = vector.extract_strided_slice %344 {offsets = [0, 256], sizes = [8, 128], strides = [1, 1]} : vector<8x512xf32> to vector<8x128xf32>
    %358 = math.tanh %357 : vector<8x128xf32>
    %359 = vector.extract_strided_slice %344 {offsets = [0, 384], sizes = [8, 128], strides = [1, 1]} : vector<8x512xf32> to vector<8x128xf32>
    %360 = arith.negf %359 : vector<8x128xf32>
    %361 = math.exp %360 : vector<8x128xf32>
    %cst_111 = arith.constant 1.000000e+00 : f32
    %362 = vector.broadcast %cst_111 : f32 to vector<8x128xf32>
    %363 = arith.addf %362, %361 : vector<8x128xf32>
    %364 = arith.divf %362, %363 : vector<8x128xf32>
    %365 = arith.mulf %356, %339 : vector<8x128xf32>
    %366 = arith.mulf %350, %358 : vector<8x128xf32>
    %367 = arith.addf %365, %366 : vector<8x128xf32>
    %368 = math.tanh %367 : vector<8x128xf32>
    %369 = arith.mulf %364, %368 : vector<8x128xf32>
    %c32_112 = arith.constant 32 : index
    %c0_113 = arith.constant 0 : index
    %370 = vector.load %arg11[%c32_112, %c0_113] : memref<64x512xf32, #tpu.memory_space<vmem>>, vector<8x512xf32>
    %cst_114 = arith.constant dense<0.000000e+00> : vector<8x512xf32>
    %371 = tpu.matmul %369, %255, %cst_114 {dimension_numbers = #tpu.dot_dimension_numbers<[1], [0], [0], [1], [0, 0, 1, 1], [], []>} : vector<8x128xf32>, vector<128x512xf32>, vector<8x512xf32> -> vector<8x512xf32>
    %372 = arith.addf %370, %371 : vector<8x512xf32>
    %373 = vector.extract_strided_slice %372 {offsets = [0, 0], sizes = [8, 128], strides = [1, 1]} : vector<8x512xf32> to vector<8x128xf32>
    %374 = arith.negf %373 : vector<8x128xf32>
    %375 = math.exp %374 : vector<8x128xf32>
    %cst_115 = arith.constant 1.000000e+00 : f32
    %376 = vector.broadcast %cst_115 : f32 to vector<8x128xf32>
    %377 = arith.addf %376, %375 : vector<8x128xf32>
    %378 = arith.divf %376, %377 : vector<8x128xf32>
    %379 = vector.extract_strided_slice %372 {offsets = [0, 128], sizes = [8, 128], strides = [1, 1]} : vector<8x512xf32> to vector<8x128xf32>
    %380 = arith.negf %379 : vector<8x128xf32>
    %381 = math.exp %380 : vector<8x128xf32>
    %cst_116 = arith.constant 1.000000e+00 : f32
    %382 = vector.broadcast %cst_116 : f32 to vector<8x128xf32>
    %383 = arith.addf %382, %381 : vector<8x128xf32>
    %384 = arith.divf %382, %383 : vector<8x128xf32>
    %385 = vector.extract_strided_slice %372 {offsets = [0, 256], sizes = [8, 128], strides = [1, 1]} : vector<8x512xf32> to vector<8x128xf32>
    %386 = math.tanh %385 : vector<8x128xf32>
    %387 = vector.extract_strided_slice %372 {offsets = [0, 384], sizes = [8, 128], strides = [1, 1]} : vector<8x512xf32> to vector<8x128xf32>
    %388 = arith.negf %387 : vector<8x128xf32>
    %389 = math.exp %388 : vector<8x128xf32>
    %cst_117 = arith.constant 1.000000e+00 : f32
    %390 = vector.broadcast %cst_117 : f32 to vector<8x128xf32>
    %391 = arith.addf %390, %389 : vector<8x128xf32>
    %392 = arith.divf %390, %391 : vector<8x128xf32>
    %393 = arith.mulf %384, %367 : vector<8x128xf32>
    %394 = arith.mulf %378, %386 : vector<8x128xf32>
    %395 = arith.addf %393, %394 : vector<8x128xf32>
    %396 = math.tanh %395 : vector<8x128xf32>
    %397 = arith.mulf %392, %396 : vector<8x128xf32>
    %c40_118 = arith.constant 40 : index
    %c0_119 = arith.constant 0 : index
    %398 = vector.load %arg11[%c40_118, %c0_119] : memref<64x512xf32, #tpu.memory_space<vmem>>, vector<8x512xf32>
    %cst_120 = arith.constant dense<0.000000e+00> : vector<8x512xf32>
    %399 = tpu.matmul %397, %255, %cst_120 {dimension_numbers = #tpu.dot_dimension_numbers<[1], [0], [0], [1], [0, 0, 1, 1], [], []>} : vector<8x128xf32>, vector<128x512xf32>, vector<8x512xf32> -> vector<8x512xf32>
    %400 = arith.addf %398, %399 : vector<8x512xf32>
    %401 = vector.extract_strided_slice %400 {offsets = [0, 0], sizes = [8, 128], strides = [1, 1]} : vector<8x512xf32> to vector<8x128xf32>
    %402 = arith.negf %401 : vector<8x128xf32>
    %403 = math.exp %402 : vector<8x128xf32>
    %cst_121 = arith.constant 1.000000e+00 : f32
    %404 = vector.broadcast %cst_121 : f32 to vector<8x128xf32>
    %405 = arith.addf %404, %403 : vector<8x128xf32>
    %406 = arith.divf %404, %405 : vector<8x128xf32>
    %407 = vector.extract_strided_slice %400 {offsets = [0, 128], sizes = [8, 128], strides = [1, 1]} : vector<8x512xf32> to vector<8x128xf32>
    %408 = arith.negf %407 : vector<8x128xf32>
    %409 = math.exp %408 : vector<8x128xf32>
    %cst_122 = arith.constant 1.000000e+00 : f32
    %410 = vector.broadcast %cst_122 : f32 to vector<8x128xf32>
    %411 = arith.addf %410, %409 : vector<8x128xf32>
    %412 = arith.divf %410, %411 : vector<8x128xf32>
    %413 = vector.extract_strided_slice %400 {offsets = [0, 256], sizes = [8, 128], strides = [1, 1]} : vector<8x512xf32> to vector<8x128xf32>
    %414 = math.tanh %413 : vector<8x128xf32>
    %415 = vector.extract_strided_slice %400 {offsets = [0, 384], sizes = [8, 128], strides = [1, 1]} : vector<8x512xf32> to vector<8x128xf32>
    %416 = arith.negf %415 : vector<8x128xf32>
    %417 = math.exp %416 : vector<8x128xf32>
    %cst_123 = arith.constant 1.000000e+00 : f32
    %418 = vector.broadcast %cst_123 : f32 to vector<8x128xf32>
    %419 = arith.addf %418, %417 : vector<8x128xf32>
    %420 = arith.divf %418, %419 : vector<8x128xf32>
    %421 = arith.mulf %412, %395 : vector<8x128xf32>
    %422 = arith.mulf %406, %414 : vector<8x128xf32>
    %423 = arith.addf %421, %422 : vector<8x128xf32>
    %424 = math.tanh %423 : vector<8x128xf32>
    %425 = arith.mulf %420, %424 : vector<8x128xf32>
    %c48_124 = arith.constant 48 : index
    %c0_125 = arith.constant 0 : index
    %426 = vector.load %arg11[%c48_124, %c0_125] : memref<64x512xf32, #tpu.memory_space<vmem>>, vector<8x512xf32>
    %cst_126 = arith.constant dense<0.000000e+00> : vector<8x512xf32>
    %427 = tpu.matmul %425, %255, %cst_126 {dimension_numbers = #tpu.dot_dimension_numbers<[1], [0], [0], [1], [0, 0, 1, 1], [], []>} : vector<8x128xf32>, vector<128x512xf32>, vector<8x512xf32> -> vector<8x512xf32>
    %428 = arith.addf %426, %427 : vector<8x512xf32>
    %429 = vector.extract_strided_slice %428 {offsets = [0, 0], sizes = [8, 128], strides = [1, 1]} : vector<8x512xf32> to vector<8x128xf32>
    %430 = arith.negf %429 : vector<8x128xf32>
    %431 = math.exp %430 : vector<8x128xf32>
    %cst_127 = arith.constant 1.000000e+00 : f32
    %432 = vector.broadcast %cst_127 : f32 to vector<8x128xf32>
    %433 = arith.addf %432, %431 : vector<8x128xf32>
    %434 = arith.divf %432, %433 : vector<8x128xf32>
    %435 = vector.extract_strided_slice %428 {offsets = [0, 128], sizes = [8, 128], strides = [1, 1]} : vector<8x512xf32> to vector<8x128xf32>
    %436 = arith.negf %435 : vector<8x128xf32>
    %437 = math.exp %436 : vector<8x128xf32>
    %cst_128 = arith.constant 1.000000e+00 : f32
    %438 = vector.broadcast %cst_128 : f32 to vector<8x128xf32>
    %439 = arith.addf %438, %437 : vector<8x128xf32>
    %440 = arith.divf %438, %439 : vector<8x128xf32>
    %441 = vector.extract_strided_slice %428 {offsets = [0, 256], sizes = [8, 128], strides = [1, 1]} : vector<8x512xf32> to vector<8x128xf32>
    %442 = math.tanh %441 : vector<8x128xf32>
    %443 = vector.extract_strided_slice %428 {offsets = [0, 384], sizes = [8, 128], strides = [1, 1]} : vector<8x512xf32> to vector<8x128xf32>
    %444 = arith.negf %443 : vector<8x128xf32>
    %445 = math.exp %444 : vector<8x128xf32>
    %cst_129 = arith.constant 1.000000e+00 : f32
    %446 = vector.broadcast %cst_129 : f32 to vector<8x128xf32>
    %447 = arith.addf %446, %445 : vector<8x128xf32>
    %448 = arith.divf %446, %447 : vector<8x128xf32>
    %449 = arith.mulf %440, %423 : vector<8x128xf32>
    %450 = arith.mulf %434, %442 : vector<8x128xf32>
    %451 = arith.addf %449, %450 : vector<8x128xf32>
    %452 = math.tanh %451 : vector<8x128xf32>
    %453 = arith.mulf %448, %452 : vector<8x128xf32>
    %c56_130 = arith.constant 56 : index
    %c0_131 = arith.constant 0 : index
    %454 = vector.load %arg11[%c56_130, %c0_131] : memref<64x512xf32, #tpu.memory_space<vmem>>, vector<8x512xf32>
    %cst_132 = arith.constant dense<0.000000e+00> : vector<8x512xf32>
    %455 = tpu.matmul %453, %255, %cst_132 {dimension_numbers = #tpu.dot_dimension_numbers<[1], [0], [0], [1], [0, 0, 1, 1], [], []>} : vector<8x128xf32>, vector<128x512xf32>, vector<8x512xf32> -> vector<8x512xf32>
    %456 = arith.addf %454, %455 : vector<8x512xf32>
    %457 = vector.extract_strided_slice %456 {offsets = [0, 0], sizes = [8, 128], strides = [1, 1]} : vector<8x512xf32> to vector<8x128xf32>
    %458 = arith.negf %457 : vector<8x128xf32>
    %459 = math.exp %458 : vector<8x128xf32>
    %cst_133 = arith.constant 1.000000e+00 : f32
    %460 = vector.broadcast %cst_133 : f32 to vector<8x128xf32>
    %461 = arith.addf %460, %459 : vector<8x128xf32>
    %462 = arith.divf %460, %461 : vector<8x128xf32>
    %463 = vector.extract_strided_slice %456 {offsets = [0, 128], sizes = [8, 128], strides = [1, 1]} : vector<8x512xf32> to vector<8x128xf32>
    %464 = arith.negf %463 : vector<8x128xf32>
    %465 = math.exp %464 : vector<8x128xf32>
    %cst_134 = arith.constant 1.000000e+00 : f32
    %466 = vector.broadcast %cst_134 : f32 to vector<8x128xf32>
    %467 = arith.addf %466, %465 : vector<8x128xf32>
    %468 = arith.divf %466, %467 : vector<8x128xf32>
    %469 = vector.extract_strided_slice %456 {offsets = [0, 256], sizes = [8, 128], strides = [1, 1]} : vector<8x512xf32> to vector<8x128xf32>
    %470 = math.tanh %469 : vector<8x128xf32>
    %471 = vector.extract_strided_slice %456 {offsets = [0, 384], sizes = [8, 128], strides = [1, 1]} : vector<8x512xf32> to vector<8x128xf32>
    %472 = arith.negf %471 : vector<8x128xf32>
    %473 = math.exp %472 : vector<8x128xf32>
    %cst_135 = arith.constant 1.000000e+00 : f32
    %474 = vector.broadcast %cst_135 : f32 to vector<8x128xf32>
    %475 = arith.addf %474, %473 : vector<8x128xf32>
    %476 = arith.divf %474, %475 : vector<8x128xf32>
    %477 = arith.mulf %468, %451 : vector<8x128xf32>
    %478 = arith.mulf %462, %470 : vector<8x128xf32>
    %479 = arith.addf %477, %478 : vector<8x128xf32>
    %480 = math.tanh %479 : vector<8x128xf32>
    %481 = arith.mulf %476, %480 : vector<8x128xf32>
    %c0_136 = arith.constant 0 : index
    %c0_137 = arith.constant 0 : index
    %482 = vector.load %arg8[%c0_136, %c0_137] : memref<128x128xf32, #tpu.memory_space<vmem>>, vector<128x128xf32>
    %cst_138 = arith.constant dense<0.000000e+00> : vector<8x128xf32>
    %483 = tpu.matmul %481, %482, %cst_138 {dimension_numbers = #tpu.dot_dimension_numbers<[1], [0], [0], [1], [0, 0, 1, 1], [], []>} : vector<8x128xf32>, vector<128x128xf32>, vector<8x128xf32> -> vector<8x128xf32>
    %c0_139 = arith.constant 0 : index
    %c0_140 = arith.constant 0 : index
    %484 = vector.load %arg9[%c0_139, %c0_140] : memref<1x128xf32, #tpu.memory_space<vmem>>, vector<1x128xf32>
    %485 = vector.broadcast %484 : vector<1x128xf32> to vector<8x128xf32>
    %486 = arith.addf %483, %485 : vector<8x128xf32>
    %c8_141 = arith.constant 8 : index
    %c0_142 = arith.constant 0 : index
    %487 = vector.load %arg10[%c8_141, %c0_142] : memref<16x128xf32, #tpu.memory_space<vmem>>, vector<8x128xf32>
    tpu.vector_store %arg10[%c8_141, %c0_142], %486 {strides = array<i32>} : memref<16x128xf32, #tpu.memory_space<vmem>>, vector<8x128xf32>,
    return
  }
  func.func @transform_0(%arg0: i32) -> (i32, i32) {
    %c0_i32 = arith.constant 0 : i32
    %c0_i32_0 = arith.constant 0 : i32
    %c0_i32_1 = arith.constant 0 : i32
    return %c0_i32, %c0_i32_0 : i32, i32
  }
  func.func @transform_1(%arg0: i32) -> (i32, i32) {
    %c0_i32 = arith.constant 0 : i32
    %c0_i32_0 = arith.constant 0 : i32
    %c0_i32_1 = arith.constant 0 : i32
    return %c0_i32, %c0_i32_0 : i32, i32
  }
  func.func @transform_2(%arg0: i32) -> (i32, i32) {
    %c0_i32 = arith.constant 0 : i32
    %c0_i32_0 = arith.constant 0 : i32
    %c0_i32_1 = arith.constant 0 : i32
    return %c0_i32, %c0_i32_0 : i32, i32
  }
  func.func @transform_3(%arg0: i32) -> (i32, i32) {
    %c0_i32 = arith.constant 0 : i32
    %c0_i32_0 = arith.constant 0 : i32
    %c0_i32_1 = arith.constant 0 : i32
    return %c0_i32, %c0_i32_0 : i32, i32
  }
  func.func @transform_4(%arg0: i32) -> (i32, i32) {
    %c0_i32 = arith.constant 0 : i32
    %c0_i32_0 = arith.constant 0 : i32
    %c0_i32_1 = arith.constant 0 : i32
    return %c0_i32, %c0_i32_0 : i32, i32
  }
  func.func @transform_5(%arg0: i32) -> (i32, i32) {
    %c0_i32 = arith.constant 0 : i32
    %c0_i32_0 = arith.constant 0 : i32
    %c0_i32_1 = arith.constant 0 : i32
    return %c0_i32, %c0_i32_0 : i32, i32
  }
  func.func @transform_6(%arg0: i32) -> (i32, i32) {
    %c0_i32 = arith.constant 0 : i32
    %c0_i32_0 = arith.constant 0 : i32
    %c0_i32_1 = arith.constant 0 : i32
    return %c0_i32, %c0_i32_0 : i32, i32
  }
  func.func @transform_7(%arg0: i32) -> (i32, i32) {
    %c0_i32 = arith.constant 0 : i32
    %c0_i32_0 = arith.constant 0 : i32
    %c0_i32_1 = arith.constant 0 : i32
    return %c0_i32, %c0_i32_0 : i32, i32
  }
  func.func @transform_8(%arg0: i32) -> (i32, i32) {
    %c0_i32 = arith.constant 0 : i32
    %c0_i32_0 = arith.constant 0 : i32
    %c0_i32_1 = arith.constant 0 : i32
    return %c0_i32, %c0_i32_0 : i32, i32
  }
  func.func @transform_9(%arg0: i32) -> (i32, i32) {
    %c0_i32 = arith.constant 0 : i32
    %c0_i32_0 = arith.constant 0 : i32
    %c0_i32_1 = arith.constant 0 : i32
    return %c0_i32, %c0_i32_0 : i32, i32
  }
}

</mosaic_0001>

<bundles_post_ra>
// kernel: tpu_custom_call.1
= control target key start
LH: loop header
LB: loop body
LE: loop exit
PB: predicated region body
PF: predicated region fallthrough
CT: control target
= control target key end

     0   :  { %14 = vsyncpa [#allocation6], 0  ;;  %s6750_s0 = inlined_call_operand.hbm [shape: f32[64,128], index: 0, kind: input, shape index: {}]   ;;  %s6751_s1 = inlined_call_operand.hbm [shape: f32[128,512], index: 1, kind: input, shape index: {}]   ;;  %s6752_s2 = inlined_call_operand.hbm [shape: f32[128,512], index: 2, kind: input, shape index: {}]   ;;  %s6753_s3 = inlined_call_operand.vmem [shape: f32[1,512], index: 3, kind: input, shape index: {}]   ;;  %s6754_s4 = inlined_call_operand.hbm [shape: f32[128,512], index: 4, kind: input, shape index: {}]   ;;  %s6755_s5 = inlined_call_operand.hbm [shape: f32[128,512], index: 5, kind: input, shape index: {}]   ;;  %s6756_s6 = inlined_call_operand.vmem [shape: f32[1,512], index: 6, kind: input, shape index: {}]   ;;  %s6757_s7 = inlined_call_operand.hbm [shape: f32[128,128], index: 7, kind: input, shape index: {}]   ;;  %s6758_s8 = inlined_call_operand.vmem [shape: f32[1,128], index: 8, kind: input, shape index: {}]   ;;  %s6759_s9 = inlined_call_operand.hbm [shape: f32[16,128], index: 9, kind: output, shape index: {}]  }
   0x1   :  { %15 = vsyncpa [#allocation9], 0 }
   0x2   :  { %16 = vsyncpa [#allocation12], 0 }
   0x3   :  { %17 = vsyncpa [#allocation15], 0 }
   0x4   :  { %18 = vsyncpa [#allocation7], 0  ;;  %s4648_s30 = smov [#allocation8]  }
   0x5   :  { %s36_s10 = sshll.u32 %s4648_s30, 4  ;;  %s37_s10 = int_to_ptr.vmem [resolvable:$true] %s36_s10 }
   0x6   :  { %s4506_s11 = scalar_lea.vmem %s37_s10, 8192  ;;  %p4511_p1 = scmp.lt.s32.totalorder %s37_s10, %s37_s10 }
   0x7   :  { %p4507_p0 = scmp.ne.s32.totalorder %s37_s10, %s4506_s11  ;;  %p4512_p2 = scmp.lt.s32.totalorder %s4506_s11, %s4506_s11 }
   0x9   :  { %p4513_p3 = por %p4512_p2, %p4511_p1 }
   0xb   :  { %p4514_p4 = pnand %p4513_p3, %p4507_p0 }
   0xd   :  { %4517 = shalt.err (!%p4514_p4)
}
   0xe   :  { %s4649_s12 = smov 512   ;;  %s4650_s13 = smov 32  }
   0xf   :  { %42 = dma.hbm_to_vmem [thread:$0]  %s6751_s1, 8192, %s37_s10, [#allocation9], %s4649_s12, %s4649_s12, %s4650_s13  }
  0x10   :  { %s4651_s16 = smov [#allocation11]   ;;  %s4652_s18 = smov [#allocation5]  }
  0x11   :  { %s62_s17 = sshll.u32 %s4651_s16, 4  ;;  %s24_s19 = sshll.u32 %s4652_s18, 4  ;;  %s63_s17 = int_to_ptr.vmem [resolvable:$true] %s62_s17  ;;  %s25_s19 = int_to_ptr.vmem [resolvable:$true] %s24_s19 }
  0x12   :  { %s4526_s20 = scalar_lea.vmem %s63_s17, 8192  ;;  %p4531_p6 = scmp.lt.s32.totalorder %s63_s17, %s63_s17 }
  0x13   :  { %p4527_p5 = scmp.ne.s32.totalorder %s63_s17, %s4526_s20  ;;  %p4532_p7 = scmp.lt.s32.totalorder %s4526_s20, %s4526_s20 }
  0x15   :  { %p4533_p8 = por %p4532_p7, %p4531_p6 }
  0x17   :  { %p4534_p9 = pnand %p4533_p8, %p4527_p5 }
  0x19   :  { %4537 = shalt.err (!%p4534_p9)
}
  0x1a   :  { %68 = dma.hbm_to_vmem [thread:$0]  %s6754_s4, 8192, %s63_s17, [#allocation12], %s4649_s12, %s4649_s12, %s4650_s13  }
  0x1b   :  { %s4546_s1 = scalar_lea.vmem %s25_s19, 1024  ;;  %p4551_p11 = scmp.lt.s32.totalorder %s25_s19, %s25_s19 }
  0x1c   :  { %p4547_p10 = scmp.ne.s32.totalorder %s25_s19, %s4546_s1  ;;  %p4552_p12 = scmp.lt.s32.totalorder %s4546_s1, %s4546_s1 }
  0x1e   :  { %p4553_p13 = por %p4552_p12, %p4551_p11 }
  0x20   :  { %p4554_p0 = pnand %p4553_p13, %p4547_p10 }
  0x22   :  { %4557 = shalt.err (!%p4554_p0)
}
  0x23   :  { %s4653_s23 = smov 128   ;;  %s4654_s24 = smov 8  }
  0x24   :  { %30 = dma.hbm_to_vmem [thread:$0]  %s6750_s0, 1024, %s25_s19, [#allocation6], %s4653_s23, %s4653_s23, %s4654_s24  }
  0x25   :  { %s4655_s27 = smov [#allocation10]   ;;  %s4656_s4 = smov [#allocation13]  }
  0x26   :  { %s48_s28 = sshll.u32 %s4655_s27, 4  ;;  %s74_s29 = sshll.u32 %s4656_s4, 4  ;;  %s49_s28 = int_to_ptr.vmem [resolvable:$true] %s48_s28  ;;  %s75_s29 = int_to_ptr.vmem [resolvable:$true] %s74_s29 }
  0x27   :  { %s4566_s30 = scalar_lea.vmem %s49_s28, 8192  ;;  %p4571_p2 = scmp.lt.s32.totalorder %s49_s28, %s49_s28 }
  0x28   :  { %p4567_p1 = scmp.ne.s32.totalorder %s49_s28, %s4566_s30  ;;  %p4572_p3 = scmp.lt.s32.totalorder %s4566_s30, %s4566_s30 }
  0x2a   :  { %p4573_p4 = por %p4572_p3, %p4571_p2 }
  0x2c   :  { %p4574_p5 = pnand %p4573_p4, %p4567_p1 }
  0x2e   :  { %4577 = shalt.err (!%p4574_p5)
}
  0x2f   :  { %54 = dma.hbm_to_vmem [thread:$0]  %s6752_s2, 8192, %s49_s28, [#allocation9], %s4649_s12, %s4649_s12, %s4650_s13  }
  0x30   :  { %s4586_s0 = scalar_lea.vmem %s75_s29, 8192  ;;  %p4591_p7 = scmp.lt.s32.totalorder %s75_s29, %s75_s29 }
  0x31   :  { %p4587_p6 = scmp.ne.s32.totalorder %s75_s29, %s4586_s0  ;;  %p4592_p8 = scmp.lt.s32.totalorder %s4586_s0, %s4586_s0 }
  0x33   :  { %p4593_p9 = por %p4592_p8, %p4591_p7 }
  0x35   :  { %p4594_p10 = pnand %p4593_p9, %p4587_p6 }
  0x37   :  { %4597 = shalt.err (!%p4594_p10)
}
  0x38   :  { %80 = dma.hbm_to_vmem [thread:$0]  %s6755_s5, 8192, %s75_s29, [#allocation12], %s4649_s12, %s4649_s12, %s4650_s13  }
  0x39   :  { %s4657_s16 = smov [#allocation14]  }
  0x3a   :  { %s88_s17 = sshll.u32 %s4657_s16, 4  ;;  %s89_s17 = int_to_ptr.vmem [resolvable:$true] %s88_s17 }
  0x3b   :  { %s4606_s18 = scalar_lea.vmem %s89_s17, 2048  ;;  %p4611_p12 = scmp.lt.s32.totalorder %s89_s17, %s89_s17 }
  0x3c   :  { %p4607_p11 = scmp.ne.s32.totalorder %s89_s17, %s4606_s18  ;;  %p4612_p13 = scmp.lt.s32.totalorder %s4606_s18, %s4606_s18 }
  0x3e   :  { %p4613_p0 = por %p4612_p13, %p4611_p12 }
  0x40   :  { %p4614_p1 = pnand %p4613_p0, %p4607_p11 }
  0x42   :  { %4617 = shalt.err (!%p4614_p1)
}
  0x43   :  { %94 = dma.hbm_to_vmem [thread:$0]  %s6757_s7, 2048, %s89_s17, [#allocation15], %s4653_s23, %s4653_s23, %s4654_s24  }
  0x44   :  { %4638 = dma.done.wait [#allocation6], 1024  }
  0x45   :  { %4639 = vsyncadd [#allocation6], 4294966272 }
  0x46   :  { %4640 = dma.done.wait [#allocation9], 16384  }
  0x47   :  { %4641 = vsyncadd [#allocation9], 4294950912 }
  0x48   :  { %4642 = dma.done.wait [#allocation12], 16384  }
  0x49   :  { %4643 = vsyncadd [#allocation12], 4294950912 }
  0x4a   :  { %4644 = dma.done.wait [#allocation15], 2048  }
  0x4b   :  { %4645 = vsyncadd [#allocation15], 4294965248  ;;  %v6760_v0 = vmov 0.0   ;;  %v184_v1 = vld [vmem:[#allocation8 + $0x1e8] sm:$0xff]  ;;  %v186_v2 = vld [vmem:[#allocation8 + $0x1f8] sm:$0xff]  ;;  %vm4659_vm0 = vmmov 0  }
  0x4c   :  { %273 = vmatprep.mubr.f32.mxu0 %v6760_v0  ;;  %386 = vmatprep.mubr.f32.mxu1 %v6760_v0  ;;  %v183_v3 = vld [vmem:[#allocation8 + $0x1e0] sm:$0xff]  ;;  %v185_v4 = vld [vmem:[#allocation8 + $0x1f0] sm:$0xff]  ;;  %v180_v5 = vld [vmem:[#allocation8 + $0x1c8] sm:$0xff]  ;;  %s4660_s22 = smov [#allocation16]  }
  0x4d   :  { %209 = vmatprep.subr.mxu0 %v184_v1  ;;  %322 = vmatprep.subr.mxu1 %v186_v2  ;;  %v182_v6 = vld [vmem:[#allocation8 + $0x1d8] sm:$0xff]  ;;  %v179_v7 = vld [vmem:[#allocation8 + $0x1c0] sm:$0xff]  ;;  %v181_v8 = vld [vmem:[#allocation8 + $0x1d0] sm:$0xff]  ;;  %s3932_s1 = sshll.u32 %s4660_s22, 4  ;;  %s3933_s1 = int_to_ptr.vmem [resolvable:$true] %s3932_s1 }
  0x4e   :  { %210 = vmatpush1.msra.mxu0 %v183_v3  ;;  %323 = vmatpush1.msra.mxu1 %v185_v4  ;;  %v176_v9 = vld [vmem:[#allocation8 + $0x1a8] sm:$0xff]  ;;  %v178_v10 = vld [vmem:[#allocation8 + $0x1b8] sm:$0xff]  ;;  %v175_v11 = vld [vmem:[#allocation8 + $0x1a0] sm:$0xff]  ;;  %s4618_s25 = scalar_lea.vmem %s3933_s1, 256  ;;  %p4623_p3 = scmp.lt.s32.totalorder %s3933_s1, %s3933_s1 }
  0x4f   :  { %211 = vmatprep.subr.mxu0 %v180_v5  ;;  %324 = vmatprep.subr.mxu1 %v182_v6  ;;  %v177_v12 = vld [vmem:[#allocation8 + $0x1b0] sm:$0xff]  ;;  %v172_v13 = vld [vmem:[#allocation8 + $0x188] sm:$0xff]  ;;  %v174_v14 = vld [vmem:[#allocation8 + $0x198] sm:$0xff]  ;;  %p4619_p2 = scmp.ne.s32.totalorder %s3933_s1, %s4618_s25  ;;  %p4624_p4 = scmp.lt.s32.totalorder %s4618_s25, %s4618_s25 }
  0x50   :  { %212 = vmatpush1.msra.mxu0 %v179_v7  ;;  %325 = vmatpush1.msra.mxu1 %v181_v8  ;;  %v171_v15 = vld [vmem:[#allocation8 + $0x180] sm:$0xff]  ;;  %v173_v16 = vld [vmem:[#allocation8 + $0x190] sm:$0xff]  ;;  %v168_v17 = vld [vmem:[#allocation8 + $0x168] sm:$0xff] }
  0x51   :  { %213 = vmatprep.subr.mxu0 %v176_v9  ;;  %326 = vmatprep.subr.mxu1 %v178_v10  ;;  %v170_v18 = vld [vmem:[#allocation8 + $0x178] sm:$0xff]  ;;  %v167_v19 = vld [vmem:[#allocation8 + $0x160] sm:$0xff]  ;;  %v169_v20 = vld [vmem:[#allocation8 + $0x170] sm:$0xff]  ;;  %p4625_p5 = por %p4624_p4, %p4623_p3 }
  0x52   :  { %214 = vmatpush1.msra.mxu0 %v175_v11  ;;  %327 = vmatpush1.msra.mxu1 %v177_v12  ;;  %v164_v21 = vld [vmem:[#allocation8 + $0x148] sm:$0xff]  ;;  %v166_v22 = vld [vmem:[#allocation8 + $0x158] sm:$0xff]  ;;  %v163_v23 = vld [vmem:[#allocation8 + $0x140] sm:$0xff] }
  0x53   :  { %215 = vmatprep.subr.mxu0 %v172_v13  ;;  %328 = vmatprep.subr.mxu1 %v174_v14  ;;  %v165_v24 = vld [vmem:[#allocation8 + $0x150] sm:$0xff]  ;;  %v160_v25 = vld [vmem:[#allocation8 + $0x128] sm:$0xff]  ;;  %v162_v26 = vld [vmem:[#allocation8 + $0x138] sm:$0xff]  ;;  %p4626_p6 = pnand %p4625_p5, %p4619_p2 }
  0x54   :  { %216 = vmatpush1.msra.mxu0 %v171_v15  ;;  %329 = vmatpush1.msra.mxu1 %v173_v16  ;;  %v159_v27 = vld [vmem:[#allocation8 + $0x120] sm:$0xff]  ;;  %v161_v28 = vld [vmem:[#allocation8 + $0x130] sm:$0xff]  ;;  %v156_v29 = vld [vmem:[#allocation8 + $0x108] sm:$0xff] }
  0x55   :  { %217 = vmatprep.subr.mxu0 %v168_v17  ;;  %330 = vmatprep.subr.mxu1 %v170_v18  ;;  %v158_v30 = vld [vmem:[#allocation8 + $0x118] sm:$0xff]  ;;  %v155_v31 = vld [vmem:[#allocation8 + $0x100] sm:$0xff]  ;;  %v157_v32 = vld [vmem:[#allocation8 + $0x110] sm:$0xff] }
  0x56   :  { %218 = vmatpush1.msra.mxu0 %v167_v19  ;;  %331 = vmatpush1.msra.mxu1 %v169_v20  ;;  %v152_v33 = vld [vmem:[#allocation8 + $0xe8] sm:$0xff]  ;;  %v154_v34 = vld [vmem:[#allocation8 + $0xf8] sm:$0xff]  ;;  %v151_v35 = vld [vmem:[#allocation8 + $0xe0] sm:$0xff] }
  0x57   :  { %219 = vmatprep.subr.mxu0 %v164_v21  ;;  %332 = vmatprep.subr.mxu1 %v166_v22  ;;  %v153_v36 = vld [vmem:[#allocation8 + $0xf0] sm:$0xff]  ;;  %v148_v37 = vld [vmem:[#allocation8 + $0xc8] sm:$0xff]  ;;  %v150_v38 = vld [vmem:[#allocation8 + $0xd8] sm:$0xff] }
  0x58   :  { %220 = vmatpush1.msra.mxu0 %v163_v23  ;;  %333 = vmatpush1.msra.mxu1 %v165_v24  ;;  %v147_v39 = vld [vmem:[#allocation8 + $0xc0] sm:$0xff]  ;;  %v149_v40 = vld [vmem:[#allocation8 + $0xd0] sm:$0xff]  ;;  %v144_v41 = vld [vmem:[#allocation8 + $0xa8] sm:$0xff] }
  0x59   :  { %221 = vmatprep.subr.mxu0 %v160_v25  ;;  %334 = vmatprep.subr.mxu1 %v162_v26  ;;  %v146_v42 = vld [vmem:[#allocation8 + $0xb8] sm:$0xff]  ;;  %v143_v43 = vld [vmem:[#allocation8 + $0xa0] sm:$0xff]  ;;  %v145_v44 = vld [vmem:[#allocation8 + $0xb0] sm:$0xff] }
  0x5a   :  { %222 = vmatpush1.msra.mxu0 %v159_v27  ;;  %335 = vmatpush1.msra.mxu1 %v161_v28  ;;  %v140_v45 = vld [vmem:[#allocation8 + $0x88] sm:$0xff]  ;;  %v142_v46 = vld [vmem:[#allocation8 + $0x98] sm:$0xff]  ;;  %v139_v47 = vld [vmem:[#allocation8 + $0x80] sm:$0xff] }
  0x5b   :  { %223 = vmatprep.subr.mxu0 %v156_v29  ;;  %336 = vmatprep.subr.mxu1 %v158_v30  ;;  %v141_v48 = vld [vmem:[#allocation8 + $0x90] sm:$0xff]  ;;  %v136_v49 = vld [vmem:[#allocation8 + $0x68] sm:$0xff]  ;;  %v138_v50 = vld [vmem:[#allocation8 + $0x78] sm:$0xff] }
  0x5c   :  { %224 = vmatpush1.msra.mxu0 %v155_v31  ;;  %337 = vmatpush1.msra.mxu1 %v157_v32  ;;  %v135_v51 = vld [vmem:[#allocation8 + $0x60] sm:$0xff]  ;;  %v137_v52 = vld [vmem:[#allocation8 + $0x70] sm:$0xff]  ;;  %v132_v53 = vld [vmem:[#allocation8 + $0x48] sm:$0xff] }
  0x5d   :  { %225 = vmatprep.subr.mxu0 %v152_v33  ;;  %338 = vmatprep.subr.mxu1 %v154_v34  ;;  %v134_v54 = vld [vmem:[#allocation8 + $0x58] sm:$0xff]  ;;  %v131_v55 = vld [vmem:[#allocation8 + $0x40] sm:$0xff]  ;;  %v133_v56 = vld [vmem:[#allocation8 + $0x50] sm:$0xff] }
  0x5e   :  { %226 = vmatpush1.msra.mxu0 %v151_v35  ;;  %339 = vmatpush1.msra.mxu1 %v153_v36  ;;  %v128_v57 = vld [vmem:[#allocation8 + $0x28] sm:$0xff]  ;;  %v130_v58 = vld [vmem:[#allocation8 + $0x38] sm:$0xff]  ;;  %v127_v59 = vld [vmem:[#allocation8 + $0x20] sm:$0xff] }
  0x5f   :  { %227 = vmatprep.subr.mxu0 %v148_v37  ;;  %340 = vmatprep.subr.mxu1 %v150_v38  ;;  %v129_v60 = vld [vmem:[#allocation8 + $0x30] sm:$0xff]  ;;  %v124_v61 = vld [vmem:[#allocation8 + $0x8] sm:$0xff]  ;;  %v126_v62 = vld [vmem:[#allocation8 + $0x18] sm:$0xff] }
  0x60   :  { %228 = vmatpush1.msra.mxu0 %v147_v39  ;;  %341 = vmatpush1.msra.mxu1 %v149_v40  ;;  %v123_v63 = vld [vmem:[#allocation8] sm:$0xff]  ;;  %v125_v1 = vld [vmem:[#allocation8 + $0x10] sm:$0xff]  ;;  %v4749_v3 = vld [vmem:[#allocation10 + $0x1e8] sm:$0xff] }
  0x61   :  { %229 = vmatprep.subr.mxu0 %v144_v41  ;;  %342 = vmatprep.subr.mxu1 %v146_v42  ;;  %v115_v2 = vld [vmem:[#allocation5] sm:$0xff]  ;;  %6973 = vst [vmem:[#allocation22_spill] sm:$0xff] %v4749_v3  ;;  %v4751_v4 = vld [vmem:[#allocation10 + $0x1f8] sm:$0xff]  ;;  %v4755_v6 = vld [vmem:[#allocation10 + $0x1f0] sm:$0xff] }
  0x62   :  { %230 = vmatpush1.msra.mxu0 %v143_v43  ;;  %343 = vmatpush1.msra.mxu1 %v145_v44  ;;  %6974 = vst [vmem:[#allocation23_spill] sm:$0xff] %v4751_v4  ;;  %v4753_v5 = vld [vmem:[#allocation10 + $0x1e0] sm:$0xff]  ;;  %v4757_v7 = vld [vmem:[#allocation10 + $0x1c8] sm:$0xff]  ;;  %v4759_v8 = vld [vmem:[#allocation10 + $0x1d8] sm:$0xff] }
  0x63   :  { %231 = vmatprep.subr.mxu0 %v140_v45  ;;  %344 = vmatprep.subr.mxu1 %v142_v46  ;;  %v4765_v9 = vld [vmem:[#allocation10 + $0x1c0] sm:$0xff]  ;;  %v4767_v10 = vld [vmem:[#allocation10 + $0x1d0] sm:$0xff]  ;;  %v116_v11 = vld [vmem:[#allocation5 + $0x8] sm:$0xff] }
  0x64   :  { %232 = vmatpush1.msra.mxu0 %v139_v47  ;;  %345 = vmatpush1.msra.mxu1 %v141_v48  ;;  %v4773_v12 = vld [vmem:[#allocation10 + $0x1a8] sm:$0xff]  ;;  %v4775_v13 = vld [vmem:[#allocation10 + $0x1b8] sm:$0xff]  ;;  %v4779_v14 = vld [vmem:[#allocation10 + $0x1a0] sm:$0xff] }
  0x65   :  { %233 = vmatprep.subr.mxu0 %v136_v49  ;;  %346 = vmatprep.subr.mxu1 %v138_v50  ;;  %v4781_v15 = vld [vmem:[#allocation10 + $0x1b0] sm:$0xff]  ;;  %v4783_v16 = vld [vmem:[#allocation10 + $0x188] sm:$0xff]  ;;  %v4785_v17 = vld [vmem:[#allocation10 + $0x198] sm:$0xff] }
  0x66   :  { %234 = vmatpush1.msra.mxu0 %v135_v51  ;;  %347 = vmatpush1.msra.mxu1 %v137_v52  ;;  %v4791_v18 = vld [vmem:[#allocation10 + $0x180] sm:$0xff]  ;;  %v4793_v19 = vld [vmem:[#allocation10 + $0x190] sm:$0xff]  ;;  %v4799_v21 = vld [vmem:[#allocation10 + $0x168] sm:$0xff] }
  0x67   :  { %235 = vmatprep.subr.mxu0 %v132_v53  ;;  %348 = vmatprep.subr.mxu1 %v134_v54  ;;  %v117_v20 = vld [vmem:[#allocation5 + $0x10] sm:$0xff]  ;;  %v4801_v22 = vld [vmem:[#allocation10 + $0x178] sm:$0xff]  ;;  %v4805_v23 = vld [vmem:[#allocation10 + $0x160] sm:$0xff] }
  0x68   :  { %236 = vmatpush1.msra.mxu0 %v131_v55  ;;  %349 = vmatpush1.msra.mxu1 %v133_v56  ;;  %v4807_v24 = vld [vmem:[#allocation10 + $0x170] sm:$0xff]  ;;  %v4809_v25 = vld [vmem:[#allocation10 + $0x148] sm:$0xff]  ;;  %v4811_v26 = vld [vmem:[#allocation10 + $0x158] sm:$0xff] }
  0x69   :  { %237 = vmatprep.subr.mxu0 %v128_v57  ;;  %350 = vmatprep.subr.mxu1 %v130_v58  ;;  %v4817_v27 = vld [vmem:[#allocation10 + $0x140] sm:$0xff]  ;;  %v4819_v28 = vld [vmem:[#allocation10 + $0x150] sm:$0xff]  ;;  %v118_v29 = vld [vmem:[#allocation5 + $0x18] sm:$0xff] }
  0x6a   :  { %238 = vmatpush1.msra.mxu0 %v127_v59  ;;  %351 = vmatpush1.msra.mxu1 %v129_v60  ;;  %v4825_v30 = vld [vmem:[#allocation10 + $0x128] sm:$0xff]  ;;  %v4827_v31 = vld [vmem:[#allocation10 + $0x138] sm:$0xff]  ;;  %v4831_v32 = vld [vmem:[#allocation10 + $0x120] sm:$0xff] }
  0x6b   :  { %239 = vmatprep.subr.mxu0 %v124_v61  ;;  %352 = vmatprep.subr.mxu1 %v126_v62  ;;  %v4833_v33 = vld [vmem:[#allocation10 + $0x130] sm:$0xff]  ;;  %v4835_v34 = vld [vmem:[#allocation10 + $0x108] sm:$0xff]  ;;  %v4837_v35 = vld [vmem:[#allocation10 + $0x118] sm:$0xff] }
  0x6c   :  { %240 = vmatpush1.msra.mxu0 %v123_v63  ;;  %353 = vmatpush1.msra.mxu1 %v125_v1  ;;  %v4843_v36 = vld [vmem:[#allocation10 + $0x100] sm:$0xff]  ;;  %v4845_v37 = vld [vmem:[#allocation10 + $0x110] sm:$0xff]  ;;  %v4851_v39 = vld [vmem:[#allocation10 + $0xe8] sm:$0xff] }
  0x6d   :  { %274 = vmatmul.mubr.f32.vlgmr.msra.gmra.mxu0 %v115_v2  ;;  %387 = vmatmul.mubr.f32.vlgmr.msra.gmra.mxu1 %v115_v2  ;;  %v119_v38 = vld [vmem:[#allocation5 + $0x20] sm:$0xff]  ;;  %v4853_v40 = vld [vmem:[#allocation10 + $0xf8] sm:$0xff]  ;;  %v4859_v42 = vld [vmem:[#allocation10 + $0xf0] sm:$0xff] }
  0x6e   :  { %535 = vmatprep.subr.mxu0 %v4749_v3  ;;  %606 = vmatprep.subr.mxu1 %v4751_v4  ;;  %v4857_v41 = vld [vmem:[#allocation10 + $0xe0] sm:$0xff]  ;;  %v4861_v43 = vld [vmem:[#allocation10 + $0xc8] sm:$0xff]  ;;  %v4863_v44 = vld [vmem:[#allocation10 + $0xd8] sm:$0xff] }
  0x6f   :  { %536 = vmatpush1.msra.mxu0 %v4753_v5  ;;  %607 = vmatpush1.msra.mxu1 %v4755_v6  ;;  %v4869_v45 = vld [vmem:[#allocation10 + $0xc0] sm:$0xff]  ;;  %v4871_v46 = vld [vmem:[#allocation10 + $0xd0] sm:$0xff]  ;;  %v120_v47 = vld [vmem:[#allocation5 + $0x28] sm:$0xff] }
  0x70   :  { %537 = vmatprep.subr.mxu0 %v4757_v7  ;;  %608 = vmatprep.subr.mxu1 %v4759_v8  ;;  %v4877_v48 = vld [vmem:[#allocation10 + $0xa8] sm:$0xff]  ;;  %v4879_v49 = vld [vmem:[#allocation10 + $0xb8] sm:$0xff]  ;;  %v4883_v50 = vld [vmem:[#allocation10 + $0xa0] sm:$0xff] }
  0x71   :  { %279 = vmatprep.mubr.f32.mxu0 %v6760_v0  ;;  %392 = vmatprep.mubr.f32.mxu1 %v6760_v0  ;;  %v4885_v51 = vld [vmem:[#allocation10 + $0xb0] sm:$0xff]  ;;  %v4887_v52 = vld [vmem:[#allocation10 + $0x88] sm:$0xff]  ;;  %v4889_v53 = vld [vmem:[#allocation10 + $0x98] sm:$0xff] }
  0x72   :  { %538 = vmatpush1.msra.mxu0 %v4765_v9  ;;  %609 = vmatpush1.msra.mxu1 %v4767_v10  ;;  %6975 = vst [vmem:[#allocation24_spill] sm:$0xff] %v4885_v51  ;;  %6976 = vst [vmem:[#allocation25_spill] sm:$0xff] %v4887_v52  ;;  %v4895_v54 = vld [vmem:[#allocation10 + $0x80] sm:$0xff]  ;;  %v4897_v55 = vld [vmem:[#allocation10 + $0x90] sm:$0xff] }
  0x73   :  { %280 = vmatmul.mubr.f32.gmra.mxu0 %v116_v11  ;;  %393 = vmatmul.mubr.f32.gmra.mxu1 %v116_v11  ;;  %6977 = vst [vmem:[#allocation26_spill] sm:$0xff] %v4889_v53  ;;  %6978 = vst [vmem:[#allocation27_spill] sm:$0xff] %v4895_v54  ;;  %v121_v56 = vld [vmem:[#allocation5 + $0x30] sm:$0xff]  ;;  %v4903_v57 = vld [vmem:[#allocation10 + $0x68] sm:$0xff] }
  0x74   :  { %539 = vmatprep.subr.mxu0 %v4773_v12  ;;  %610 = vmatprep.subr.mxu1 %v4775_v13  ;;  %6979 = vst [vmem:[#allocation28_spill] sm:$0xff] %v4897_v55  ;;  %6980 = vst [vmem:[#allocation29_spill] sm:$0xff] %v4903_v57  ;;  %v4905_v58 = vld [vmem:[#allocation10 + $0x78] sm:$0xff]  ;;  %v4909_v59 = vld [vmem:[#allocation10 + $0x60] sm:$0xff] }
  0x75   :  { %540 = vmatpush1.msra.mxu0 %v4779_v14  ;;  %611 = vmatpush1.msra.mxu1 %v4781_v15  ;;  %6981 = vst [vmem:[#allocation30_spill] sm:$0xff] %v4905_v58  ;;  %6982 = vst [vmem:[#allocation31_spill] sm:$0xff] %v4909_v59  ;;  %v4911_v60 = vld [vmem:[#allocation10 + $0x70] sm:$0xff]  ;;  %v4913_v61 = vld [vmem:[#allocation10 + $0x48] sm:$0xff] }
  0x76   :  { %541 = vmatprep.subr.mxu0 %v4783_v16  ;;  %612 = vmatprep.subr.mxu1 %v4785_v17  ;;  %6983 = vst [vmem:[#allocation32_spill] sm:$0xff] %v4911_v60  ;;  %6984 = vst [vmem:[#allocation33_spill] sm:$0xff] %v4913_v61  ;;  %v4915_v62 = vld [vmem:[#allocation10 + $0x58] sm:$0xff]  ;;  %v4921_v63 = vld [vmem:[#allocation10 + $0x40] sm:$0xff] }
  0x77   :  { %285 = vmatprep.mubr.f32.mxu0 %v6760_v0  ;;  %398 = vmatprep.mubr.f32.mxu1 %v6760_v0  ;;  %6985 = vst [vmem:[#allocation34_spill] sm:$0xff] %v4915_v62  ;;  %6986 = vst [vmem:[#allocation35_spill] sm:$0xff] %v4921_v63  ;;  %v4923_v1 = vld [vmem:[#allocation10 + $0x50] sm:$0xff]  ;;  %v122_v2 = vld [vmem:[#allocation5 + $0x38] sm:$0xff] }
  0x78   :  { %542 = vmatpush1.msra.mxu0 %v4791_v18  ;;  %613 = vmatpush1.msra.mxu1 %v4793_v19  ;;  %6987 = vst [vmem:[#allocation36_spill] sm:$0xff] %v4923_v1  ;;  %v4929_v11 = vld [vmem:[#allocation10 + $0x28] sm:$0xff] }
  0x79   :  { %286 = vmatmul.mubr.f32.gmra.mxu0 %v117_v20  ;;  %399 = vmatmul.mubr.f32.gmra.mxu1 %v117_v20  ;;  %6988 = vst [vmem:[#allocation37_spill] sm:$0xff] %v4929_v11  ;;  %v4931_v20 = vld [vmem:[#allocation10 + $0x38] sm:$0xff] }
  0x7a   :  { %543 = vmatprep.subr.mxu0 %v4799_v21  ;;  %614 = vmatprep.subr.mxu1 %v4801_v22  ;;  %6989 = vst [vmem:[#allocation38_spill] sm:$0xff] %v4931_v20 }
  0x7b   :  { %544 = vmatpush1.msra.mxu0 %v4805_v23  ;;  %615 = vmatpush1.msra.mxu1 %v4807_v24 }
  0x7c   :  { %545 = vmatprep.subr.mxu0 %v4809_v25  ;;  %616 = vmatprep.subr.mxu1 %v4811_v26 }
  0x7d   :  { %291 = vmatprep.mubr.f32.mxu0 %v6760_v0  ;;  %404 = vmatprep.mubr.f32.mxu1 %v6760_v0 }
  0x7e   :  { %546 = vmatpush1.msra.mxu0 %v4817_v27  ;;  %617 = vmatpush1.msra.mxu1 %v4819_v28 }
  0x7f   :  { %292 = vmatmul.mubr.f32.gmra.mxu0 %v118_v29  ;;  %405 = vmatmul.mubr.f32.gmra.mxu1 %v118_v29  ;;  %v4935_v29 = vld [vmem:[#allocation10 + $0x20] sm:$0xff] }
  0x80   :  { %547 = vmatprep.subr.mxu0 %v4825_v30  ;;  %618 = vmatprep.subr.mxu1 %v4827_v31  ;;  %6990 = vst [vmem:[#allocation39_spill] sm:$0xff] %v4935_v29 }
  0x81   :  { %548 = vmatpush1.msra.mxu0 %v4831_v32  ;;  %619 = vmatpush1.msra.mxu1 %v4833_v33 }
  0x82   :  { %549 = vmatprep.subr.mxu0 %v4835_v34  ;;  %620 = vmatprep.subr.mxu1 %v4837_v35 }
  0x83   :  { %297 = vmatprep.mubr.f32.mxu0 %v6760_v0  ;;  %410 = vmatprep.mubr.f32.mxu1 %v6760_v0 }
  0x84   :  { %550 = vmatpush1.msra.mxu0 %v4843_v36  ;;  %621 = vmatpush1.msra.mxu1 %v4845_v37 }
  0x85   :  { %298 = vmatmul.mubr.f32.gmra.mxu0 %v119_v38  ;;  %411 = vmatmul.mubr.f32.gmra.mxu1 %v119_v38  ;;  %v4937_v38 = vld [vmem:[#allocation10 + $0x30] sm:$0xff] }
  0x86   :  { %551 = vmatprep.subr.mxu0 %v4851_v39  ;;  %622 = vmatprep.subr.mxu1 %v4853_v40  ;;  %6991 = vst [vmem:[#allocation40_spill] sm:$0xff] %v4937_v38 }
  0x87   :  { %552 = vmatpush1.msra.mxu0 %v4857_v41  ;;  %623 = vmatpush1.msra.mxu1 %v4859_v42 }
  0x88   :  { %553 = vmatprep.subr.mxu0 %v4861_v43  ;;  %624 = vmatprep.subr.mxu1 %v4863_v44 }
  0x89   :  { %303 = vmatprep.mubr.f32.mxu0 %v6760_v0  ;;  %416 = vmatprep.mubr.f32.mxu1 %v6760_v0 }
  0x8a   :  { %554 = vmatpush1.msra.mxu0 %v4869_v45  ;;  %625 = vmatpush1.msra.mxu1 %v4871_v46 }
  0x8b   :  { %304 = vmatmul.mubr.f32.gmra.mxu0 %v120_v47  ;;  %417 = vmatmul.mubr.f32.gmra.mxu1 %v120_v47  ;;  %v4939_v47 = vld [vmem:[#allocation10 + $0x8] sm:$0xff] }
  0x8c   :  { %555 = vmatprep.subr.mxu0 %v4877_v48  ;;  %626 = vmatprep.subr.mxu1 %v4879_v49  ;;  %6992 = vst [vmem:[#allocation41_spill] sm:$0xff] %v4939_v47 }
  0x8d   :  { %556 = vmatpush1.msra.mxu0 %v4883_v50  ;;  %627 = vmatpush1.msra.mxu1 %v4885_v51 }
  0x8e   :  { %557 = vmatprep.subr.mxu0 %v4887_v52  ;;  %628 = vmatprep.subr.mxu1 %v4889_v53 }
  0x8f   :  { %309 = vmatprep.mubr.f32.mxu0 %v6760_v0  ;;  %422 = vmatprep.mubr.f32.mxu1 %v6760_v0 }
  0x90   :  { %558 = vmatpush1.msra.mxu0 %v4895_v54  ;;  %629 = vmatpush1.msra.mxu1 %v4897_v55 }
  0x91   :  { %310 = vmatmul.mubr.f32.gmra.mxu0 %v121_v56  ;;  %423 = vmatmul.mubr.f32.gmra.mxu1 %v121_v56  ;;  %v4941_v56 = vld [vmem:[#allocation10 + $0x18] sm:$0xff] }
  0x92   :  { %559 = vmatprep.subr.mxu0 %v4903_v57  ;;  %630 = vmatprep.subr.mxu1 %v4905_v58  ;;  %6993 = vst [vmem:[#allocation42_spill] sm:$0xff] %v4941_v56 }
  0x93   :  { %560 = vmatpush1.msra.mxu0 %v4909_v59  ;;  %631 = vmatpush1.msra.mxu1 %v4911_v60 }
  0x94   :  { %561 = vmatprep.subr.mxu0 %v4913_v61  ;;  %632 = vmatprep.subr.mxu1 %v4915_v62 }
  0x95   :  { %315 = vmatprep.mubr.f32.mxu0 %v6760_v0  ;;  %428 = vmatprep.mubr.f32.mxu1 %v6760_v0  ;;  %v4945_v0 = vld [vmem:[#allocation10] sm:$0xff] }
  0x96   :  { %562 = vmatpush1.msra.mxu0 %v4921_v63  ;;  %633 = vmatpush1.msra.mxu1 %v4923_v1  ;;  %6994 = vst [vmem:[#allocation43_spill] sm:$0xff] %v4945_v0  ;;  %v4949_v1 = vld [vmem:[#allocation10 + $0x10] sm:$0xff] }
  0x97   :  { %316 = vmatmul.mubr.f32.gmra.mxu0 %v122_v2  ;;  %429 = vmatmul.mubr.f32.gmra.mxu1 %v122_v2  ;;  %6995 = vst [vmem:[#allocation44_spill] sm:$0xff] %v4949_v1  ;;  %v6996_v2 = vmov 0.0  }
  0x98   :  { %563 = vmatprep.subr.mxu0 %v4929_v11  ;;  %634 = vmatprep.subr.mxu1 %v4931_v20 }
  0x99   :  { %564 = vmatpush1.msra.mxu0 %v4935_v29  ;;  %635 = vmatpush1.msra.mxu1 %v4937_v38 }
  0x9a   :  { %565 = vmatprep.subr.mxu0 %v4939_v47  ;;  %636 = vmatprep.subr.mxu1 %v4941_v56 }
  0x9b   :  { %566 = vmatpush1.msra.mxu0 %v4945_v0  ;;  %599 = vmatprep.mubr.f32.mxu0 %v6996_v2 }
  0x9c   :  { %637 = vmatpush1.msra.mxu1 %v4949_v1  ;;  %670 = vmatprep.mubr.f32.mxu1 %v6996_v2 }
  0x9d   :  { %600 = vmatmul.mubr.f32.vlgmr.msra.gmra.mxu0 %v6996_v2  ;;  %671 = vmatmul.mubr.f32.vlgmr.msra.gmra.mxu1 %v6996_v2 }
  0x9e   :  { %710 = vmatprep.subr.mxu0 %v4749_v3  ;;  %781 = vmatprep.subr.mxu1 %v4751_v4 }
  0x9f   :  { %711 = vmatpush1.msra.mxu0 %v4753_v5  ;;  %782 = vmatpush1.msra.mxu1 %v4755_v6 }
  0xa0   :  { %712 = vmatprep.subr.mxu0 %v4757_v7  ;;  %783 = vmatprep.subr.mxu1 %v4759_v8 }
  0xa1   :  { %713 = vmatpush1.msra.mxu0 %v4765_v9  ;;  %784 = vmatpush1.msra.mxu1 %v4767_v10 }
  0xa2   :  { %714 = vmatprep.subr.mxu0 %v4773_v12  ;;  %785 = vmatprep.subr.mxu1 %v4775_v13 }
  0xa3   :  { %715 = vmatpush1.msra.mxu0 %v4779_v14  ;;  %786 = vmatpush1.msra.mxu1 %v4781_v15 }
  0xa4   :  { %716 = vmatprep.subr.mxu0 %v4783_v16  ;;  %787 = vmatprep.subr.mxu1 %v4785_v17 }
  0xa5   :  { %717 = vmatpush1.msra.mxu0 %v4791_v18  ;;  %788 = vmatpush1.msra.mxu1 %v4793_v19 }
  0xa6   :  { %718 = vmatprep.subr.mxu0 %v4799_v21  ;;  %789 = vmatprep.subr.mxu1 %v4801_v22 }
  0xa7   :  { %719 = vmatpush1.msra.mxu0 %v4805_v23  ;;  %790 = vmatpush1.msra.mxu1 %v4807_v24 }
  0xa8   :  { %720 = vmatprep.subr.mxu0 %v4809_v25  ;;  %791 = vmatprep.subr.mxu1 %v4811_v26 }
  0xa9   :  { %721 = vmatpush1.msra.mxu0 %v4817_v27  ;;  %792 = vmatpush1.msra.mxu1 %v4819_v28 }
  0xaa   :  { %722 = vmatprep.subr.mxu0 %v4825_v30  ;;  %793 = vmatprep.subr.mxu1 %v4827_v31 }
  0xab   :  { %723 = vmatpush1.msra.mxu0 %v4831_v32  ;;  %794 = vmatpush1.msra.mxu1 %v4833_v33 }
  0xac   :  { %724 = vmatprep.subr.mxu0 %v4835_v34  ;;  %795 = vmatprep.subr.mxu1 %v4837_v35 }
  0xad   :  { %725 = vmatpush1.msra.mxu0 %v4843_v36  ;;  %796 = vmatpush1.msra.mxu1 %v4845_v37 }
  0xae   :  { %726 = vmatprep.subr.mxu0 %v4851_v39  ;;  %797 = vmatprep.subr.mxu1 %v4853_v40 }
  0xaf   :  { %727 = vmatpush1.msra.mxu0 %v4857_v41  ;;  %798 = vmatpush1.msra.mxu1 %v4859_v42 }
  0xb0   :  { %728 = vmatprep.subr.mxu0 %v4861_v43  ;;  %799 = vmatprep.subr.mxu1 %v4863_v44 }
  0xb1   :  { %729 = vmatpush1.msra.mxu0 %v4869_v45  ;;  %800 = vmatpush1.msra.mxu1 %v4871_v46 }
  0xb2   :  { %730 = vmatprep.subr.mxu0 %v4877_v48  ;;  %801 = vmatprep.subr.mxu1 %v4879_v49 }
  0xb3   :  { %731 = vmatpush1.msra.mxu0 %v4883_v50  ;;  %802 = vmatpush1.msra.mxu1 %v4885_v51 }
  0xb4   :  { %732 = vmatprep.subr.mxu0 %v4887_v52  ;;  %803 = vmatprep.subr.mxu1 %v4889_v53  ;;  %v6997_v52 = vld [vmem:[#allocation36_spill] sm:$0xff] }
  0xb5   :  { %733 = vmatpush1.msra.mxu0 %v4895_v54  ;;  %804 = vmatpush1.msra.mxu1 %v4897_v55 }
  0xb6   :  { %734 = vmatprep.subr.mxu0 %v4903_v57  ;;  %805 = vmatprep.subr.mxu1 %v4905_v58 }
  0xb7   :  { %735 = vmatpush1.msra.mxu0 %v4909_v59  ;;  %806 = vmatpush1.msra.mxu1 %v4911_v60 }
  0xb8   :  { %736 = vmatprep.subr.mxu0 %v4913_v61  ;;  %807 = vmatprep.subr.mxu1 %v4915_v62 }
  0xb9   :  { %737 = vmatpush1.msra.mxu0 %v4921_v63  ;;  %808 = vmatpush1.msra.mxu1 %v6997_v52 }
  0xba   :  { %738 = vmatprep.subr.mxu0 %v4929_v11  ;;  %809 = vmatprep.subr.mxu1 %v4931_v20  ;;  %v189_v20 = vlaneseq }
  0xbb   :  { %739 = vmatpush1.msra.mxu0 %v4935_v29  ;;  %810 = vmatpush1.msra.mxu1 %v4937_v38 }
  0xbc   :  { %740 = vmatprep.subr.mxu0 %v4939_v47  ;;  %811 = vmatprep.subr.mxu1 %v4941_v56  ;;  %v5027_v29 = vshrl.u32 %v189_v20, 7 }
  0xbd   :  { %741 = vmatpush1.msra.mxu0 %v4945_v0  ;;  %774 = vmatprep.mubr.f32.mxu0 %v6996_v2 }
  0xbe   :  { %812 = vmatpush1.msra.mxu1 %v4949_v1  ;;  %845 = vmatprep.mubr.f32.mxu1 %v6996_v2  ;;  %6998 = vst [vmem:[#allocation45_spill] sm:$0xff] %v5027_v29  ;;  %v6799_v56 = vsub.s32 0, %v5027_v29  ;;  %v6802_v0 = vsub.s32 2, %v5027_v29  ;;  %v187_v1 = vld [vmem:[%s6753_s3] sm:$0xf]  ;;  %v6810_v20 = vsub.s32 3, %v5027_v29 }
  0xbf   :  { %885 = vmatprep.subr.mxu0 %v4749_v3  ;;  %956 = vmatprep.subr.mxu1 %v4751_v4  ;;  %v6809_v4 = vsub.s32 1, %v5027_v29 }
  0xc0   :  { %v192_v11 = vrot.slane %v187_v1, %v6799_v56  ;;  %v5048_v52 = vrot.slane %v187_v1, %v6802_v0  ;;  %v5054_v60 = vrot.slane %v187_v1, %v6810_v20 }
  0xc1   :  { %v196_v61 = vrot.slane %v187_v1, %v6809_v4 }
 0x12d   :  { %v5029_v38 = vpop.f32.mrf.mxu0  ;;  %v5031_v47 = vpop.f32.mrf.mxu1 }
 0x12f   :  { %v5038_v2 = vpop.f32.mrf.mxu0  ;;  %v5040_v3 = vpop.f32.mrf.mxu1 }
 0x133   :  { %v281_v63 = vpop.f32.mrf.mxu0  ;;  %v394_v62 = vpop.f32.mrf.mxu1 }
 0x134   :  { %v5056_v59 = vadd.f32 %v281_v63, %v192_v11  ;;  %v5059_v58 = vadd.f32 %v394_v62, %v5048_v52 }
 0x135   :  { %v283_v57 = vpop.f32.mrf.mxu0  ;;  %v396_v56 = vpop.f32.mrf.mxu1 }
 0x136   :  { %6999 = vst [vmem:[#allocation46_spill] sm:$0xff] %v5059_v58  ;;  %v5061_v55 = vadd.f32 %v283_v57, %v196_v61  ;;  %v5064_v0 = vadd.f32 %v396_v56, %v5054_v60 }
 0x138   :  { %7000 = vst [vmem:[#allocation47_spill] sm:$0xff] %v5061_v55  ;;  %7001 = vst [vmem:[#allocation48_spill] sm:$0xff] %v5064_v0 }
 0x139   :  { %v287_v54 = vpop.f32.mrf.mxu0  ;;  %v400_v53 = vpop.f32.mrf.mxu1 }
 0x13a   :  { %v5066_v51 = vadd.f32 %v287_v54, %v192_v11  ;;  %v5069_v4 = vadd.f32 %v400_v53, %v5048_v52 }
 0x13b   :  { %v289_v1 = vpop.f32.mrf.mxu0  ;;  %v402_v63 = vpop.f32.mrf.mxu1 }
 0x13c   :  { %7002 = vst [vmem:[#allocation49_spill] sm:$0xff] %v5066_v51  ;;  %7003 = vst [vmem:[#allocation50_spill] sm:$0xff] %v5069_v4  ;;  %v5071_v20 = vadd.f32 %v289_v1, %v196_v61  ;;  %v5074_v62 = vadd.f32 %v402_v63, %v5054_v60 }
 0x13e   :  { %7004 = vst [vmem:[#allocation51_spill] sm:$0xff] %v5071_v20  ;;  %7005 = vst [vmem:[#allocation52_spill] sm:$0xff] %v5074_v62 }
 0x13f   :  { %v293_v29 = vpop.f32.mrf.mxu0  ;;  %v406_v57 = vpop.f32.mrf.mxu1 }
 0x140   :  { %v5076_v58 = vadd.f32 %v293_v29, %v192_v11  ;;  %v5079_v56 = vadd.f32 %v406_v57, %v5048_v52 }
 0x141   :  { %v295_v0 = vpop.f32.mrf.mxu0  ;;  %v408_v54 = vpop.f32.mrf.mxu1 }
 0x142   :  { %7006 = vst [vmem:[#allocation53_spill] sm:$0xff] %v5076_v58  ;;  %7007 = vst [vmem:[#allocation54_spill] sm:$0xff] %v5079_v56  ;;  %v5081_v51 = vadd.f32 %v295_v0, %v196_v61  ;;  %v5084_v53 = vadd.f32 %v408_v54, %v5054_v60 }
 0x144   :  { %7008 = vst [vmem:[#allocation55_spill] sm:$0xff] %v5081_v51  ;;  %7009 = vst [vmem:[#allocation56_spill] sm:$0xff] %v5084_v53 }
 0x145   :  { %v299_v4 = vpop.f32.mrf.mxu0  ;;  %v412_v1 = vpop.f32.mrf.mxu1 }
 0x146   :  { %v5086_v20 = vadd.f32 %v299_v4, %v192_v11  ;;  %v5089_v63 = vadd.f32 %v412_v1, %v5048_v52 }
 0x147   :  { %v301_v62 = vpop.f32.mrf.mxu0  ;;  %v414_v29 = vpop.f32.mrf.mxu1 }
 0x148   :  { %7010 = vst [vmem:[#allocation57_spill] sm:$0xff] %v5086_v20  ;;  %7011 = vst [vmem:[#allocation58_spill] sm:$0xff] %v5089_v63  ;;  %v5091_v58 = vadd.f32 %v301_v62, %v196_v61  ;;  %v5094_v57 = vadd.f32 %v414_v29, %v5054_v60 }
 0x14a   :  { %7012 = vst [vmem:[#allocation59_spill] sm:$0xff] %v5091_v58  ;;  %7013 = vst [vmem:[#allocation60_spill] sm:$0xff] %v5094_v57 }
 0x14b   :  { %v305_v56 = vpop.f32.mrf.mxu0  ;;  %v418_v0 = vpop.f32.mrf.mxu1 }
 0x14c   :  { %v5096_v51 = vadd.f32 %v305_v56, %v192_v11  ;;  %v5099_v54 = vadd.f32 %v418_v0, %v5048_v52 }
 0x14d   :  { %v307_v53 = vpop.f32.mrf.mxu0  ;;  %v420_v4 = vpop.f32.mrf.mxu1 }
 0x14e   :  { %7014 = vst [vmem:[#allocation61_spill] sm:$0xff] %v5096_v51  ;;  %7015 = vst [vmem:[#allocation62_spill] sm:$0xff] %v5099_v54  ;;  %v5101_v20 = vadd.f32 %v307_v53, %v196_v61  ;;  %v5104_v1 = vadd.f32 %v420_v4, %v5054_v60 }
 0x150   :  { %7016 = vst [vmem:[#allocation63_spill] sm:$0xff] %v5101_v20  ;;  %7017 = vst [vmem:[#allocation64_spill] sm:$0xff] %v5104_v1 }
 0x151   :  { %v311_v63 = vpop.f32.mrf.mxu0  ;;  %v424_v62 = vpop.f32.mrf.mxu1 }
 0x152   :  { %v5106_v58 = vadd.f32 %v311_v63, %v192_v11  ;;  %v5109_v29 = vadd.f32 %v424_v62, %v5048_v52 }
 0x153   :  { %v313_v57 = vpop.f32.mrf.mxu0  ;;  %v426_v56 = vpop.f32.mrf.mxu1 }
 0x154   :  { %7018 = vst [vmem:[#allocation65_spill] sm:$0xff] %v5106_v58  ;;  %7019 = vst [vmem:[#allocation66_spill] sm:$0xff] %v5109_v29  ;;  %v5111_v51 = vadd.f32 %v313_v57, %v196_v61  ;;  %v5114_v0 = vadd.f32 %v426_v56, %v5054_v60  ;;  %v276_v57 = vadd.f32 %v5029_v38, %v192_v11 }
 0x155   :  { %v278_v56 = vadd.f32 %v5038_v2, %v196_v61 }
 0x156   :  { %7020 = vst [vmem:[#allocation67_spill] sm:$0xff] %v5111_v51  ;;  %7021 = vst [vmem:[#allocation68_spill] sm:$0xff] %v5114_v0 }
 0x157   :  { %v317_v54 = vpop.f32.mrf.mxu0  ;;  %v430_v53 = vpop.f32.mrf.mxu1 }
 0x158   :  { %v5116_v20 = vadd.f32 %v317_v54, %v192_v11  ;;  %v5119_v4 = vadd.f32 %v430_v53, %v5048_v52 }
 0x159   :  { %v319_v1 = vpop.f32.mrf.mxu0  ;;  %v432_v63 = vpop.f32.mrf.mxu1 }
 0x15a   :  { %7022 = vst [vmem:[#allocation69_spill] sm:$0xff] %v5116_v20  ;;  %7023 = vst [vmem:[#allocation70_spill] sm:$0xff] %v5119_v4  ;;  %v5121_v58 = vadd.f32 %v319_v1, %v196_v61  ;;  %v5124_v62 = vadd.f32 %v432_v63, %v5054_v60  ;;  %v391_v1 = vadd.f32 %v5040_v3, %v5054_v60 }
 0x15b   :  { %v389_v63 = vadd.f32 %v5031_v47, %v5048_v52 }
 0x15c   :  { %7024 = vst [vmem:[#allocation71_spill] sm:$0xff] %v5121_v58  ;;  %7025 = vst [vmem:[#allocation72_spill] sm:$0xff] %v5124_v62 }
 0x15d   :  { %v601_v29 = vpop.f32.mrf.mxu0  ;;  %v672_v20 = vpop.f32.mrf.mxu1 }
 0x15e   :  { %v677_v0 = vadd.f32 %v601_v29, %v276_v57  ;;  %v679_v62 = vadd.f32 %v672_v20, %v389_v63  ;;  %v7027_v20 = vld [vmem:[#allocation24_spill] sm:$0xff]  ;;  %v7032_v63 = vld [vmem:[#allocation29_spill] sm:$0xff] }
 0x15f   :  { %v603_v51 = vpop.f32.mrf.mxu0  ;;  %v674_v4 = vpop.f32.mrf.mxu1 }
 0x160   :  { %v3947_v55 = vmul.f32 -1.442695, %v677_v0  ;;  %v678_v54 = vadd.f32 %v603_v51, %v278_v56  ;;  %v680_v58 = vadd.f32 %v674_v4, %v391_v1  ;;  %v7031_v1 = vld [vmem:[#allocation28_spill] sm:$0xff] }
 0x162   :  { %4114 = vpow2.f32 %v3947_v55  ;;  %v3948_v53 = vmul.f32 -1.442695, %v678_v54  ;;  %v3949_v11 = vmul.f32 -1.442695, %v680_v58  ;;  %v7029_v54 = vld [vmem:[#allocation26_spill] sm:$0xff] }
 0x164   :  { %4116 = vpow2.f32 %v3948_v53  ;;  %v7030_v53 = vld [vmem:[#allocation27_spill] sm:$0xff] }
 0x165   :  { %4118 = vpow2.f32 %v3949_v11  ;;  %v7033_v11 = vld [vmem:[#allocation30_spill] sm:$0xff] }
 0x16f   :  { %v4115_v38 = vpop.eup %4114 }
 0x170   :  { %v684_v61 = vadd.f32 1.0, %v4115_v38  ;;  %v7034_v38 = vld [vmem:[#allocation31_spill] sm:$0xff] }
 0x171   :  { %v4117_v2 = vpop.eup %4116 }
 0x172   :  { %4120 = vrcp.f32 %v684_v61  ;;  %v690_v51 = vadd.f32 1.0, %v4117_v2  ;;  %v4119_v55 = vpop.eup %4118  ;;  %v7035_v61 = vld [vmem:[#allocation32_spill] sm:$0xff]  ;;  %v7036_v2 = vld [vmem:[#allocation33_spill] sm:$0xff] }
 0x173   :  { %4122 = vtanh.f32 %v679_v62  ;;  %v697_v56 = vadd.f32 1.0, %v4119_v55  ;;  %v7028_v62 = vld [vmem:[#allocation25_spill] sm:$0xff]  ;;  %v7038_v55 = vld [vmem:[#allocation35_spill] sm:$0xff] }
 0x174   :  { %4124 = vrcp.f32 %v690_v51  ;;  %v7037_v51 = vld [vmem:[#allocation34_spill] sm:$0xff] }
 0x175   :  { %4126 = vrcp.f32 %v697_v56  ;;  %v7042_v56 = vld [vmem:[#allocation39_spill] sm:$0xff] }
 0x17f   :  { %v4121_v29 = vpop.eup %4120 }
 0x180   :  { %v4123_v0 = vpop.eup %4122 }
 0x181   :  { %v4125_v57 = vpop.eup %4124  ;;  %v701_v60 = vmul.f32 %v4123_v0, %v4121_v29  ;;  %v7039_v29 = vld [vmem:[#allocation36_spill] sm:$0xff]  ;;  %v7040_v0 = vld [vmem:[#allocation37_spill] sm:$0xff] }
 0x182   :  { %v700_v3 = vmul.f32 0.0, %v4125_v57  ;;  %v4127_v52 = vpop.eup %4126  ;;  %v7041_v57 = vld [vmem:[#allocation38_spill] sm:$0xff] }
 0x184   :  { %v5132_v4 = vadd.f32 %v701_v60, %v700_v3  ;;  %v7043_v3 = vld [vmem:[#allocation40_spill] sm:$0xff]  ;;  %v7044_v60 = vld [vmem:[#allocation41_spill] sm:$0xff] }
 0x186   :  { %4128 = vtanh.f32 %v5132_v4 }
 0x193   :  { %v4129_v58 = vpop.eup %4128 }
 0x194   :  { %v5135_v47 = vmul.f32 %v4129_v58, %v4127_v52  ;;  %v7045_v52 = vld [vmem:[#allocation42_spill] sm:$0xff]  ;;  %v7046_v58 = vld [vmem:[#allocation43_spill] sm:$0xff] }
 0x196   :  { %7026 = vst [vmem:[#allocation73_spill] sm:$0xff] %v5135_v47  ;;  %775 = vmatmul.mubr.f32.vlgmr.msra.gmra.mxu0 %v5135_v47  ;;  %846 = vmatmul.mubr.f32.vlgmr.msra.gmra.mxu1 %v5135_v47  ;;  %v7047_v47 = vmov 0.0  }
 0x197   :  { %886 = vmatpush1.msra.mxu0 %v4753_v5  ;;  %957 = vmatpush1.msra.mxu1 %v4755_v6 }
 0x198   :  { %887 = vmatprep.subr.mxu0 %v4757_v7  ;;  %958 = vmatprep.subr.mxu1 %v4759_v8 }
 0x199   :  { %888 = vmatpush1.msra.mxu0 %v4765_v9  ;;  %959 = vmatpush1.msra.mxu1 %v4767_v10 }
 0x19a   :  { %889 = vmatprep.subr.mxu0 %v4773_v12  ;;  %960 = vmatprep.subr.mxu1 %v4775_v13 }
 0x19b   :  { %890 = vmatpush1.msra.mxu0 %v4779_v14  ;;  %961 = vmatpush1.msra.mxu1 %v4781_v15 }
 0x19c   :  { %891 = vmatprep.subr.mxu0 %v4783_v16  ;;  %962 = vmatprep.subr.mxu1 %v4785_v17 }
 0x19d   :  { %892 = vmatpush1.msra.mxu0 %v4791_v18  ;;  %963 = vmatpush1.msra.mxu1 %v4793_v19 }
 0x19e   :  { %893 = vmatprep.subr.mxu0 %v4799_v21  ;;  %964 = vmatprep.subr.mxu1 %v4801_v22 }
 0x19f   :  { %894 = vmatpush1.msra.mxu0 %v4805_v23  ;;  %965 = vmatpush1.msra.mxu1 %v4807_v24 }
 0x1a0   :  { %895 = vmatprep.subr.mxu0 %v4809_v25  ;;  %966 = vmatprep.subr.mxu1 %v4811_v26 }
 0x1a1   :  { %896 = vmatpush1.msra.mxu0 %v4817_v27  ;;  %967 = vmatpush1.msra.mxu1 %v4819_v28 }
 0x1a2   :  { %897 = vmatprep.subr.mxu0 %v4825_v30  ;;  %968 = vmatprep.subr.mxu1 %v4827_v31 }
 0x1a3   :  { %898 = vmatpush1.msra.mxu0 %v4831_v32  ;;  %969 = vmatpush1.msra.mxu1 %v4833_v33 }
 0x1a4   :  { %899 = vmatprep.subr.mxu0 %v4835_v34  ;;  %970 = vmatprep.subr.mxu1 %v4837_v35 }
 0x1a5   :  { %900 = vmatpush1.msra.mxu0 %v4843_v36  ;;  %971 = vmatpush1.msra.mxu1 %v4845_v37 }
 0x1a6   :  { %901 = vmatprep.subr.mxu0 %v4851_v39  ;;  %972 = vmatprep.subr.mxu1 %v4853_v40 }
 0x1a7   :  { %902 = vmatpush1.msra.mxu0 %v4857_v41  ;;  %973 = vmatpush1.msra.mxu1 %v4859_v42 }
 0x1a8   :  { %903 = vmatprep.subr.mxu0 %v4861_v43  ;;  %974 = vmatprep.subr.mxu1 %v4863_v44 }
 0x1a9   :  { %904 = vmatpush1.msra.mxu0 %v4869_v45  ;;  %975 = vmatpush1.msra.mxu1 %v4871_v46 }
 0x1aa   :  { %905 = vmatprep.subr.mxu0 %v4877_v48  ;;  %976 = vmatprep.subr.mxu1 %v4879_v49 }
 0x1ab   :  { %906 = vmatpush1.msra.mxu0 %v4883_v50  ;;  %977 = vmatpush1.msra.mxu1 %v7027_v20 }
 0x1ac   :  { %907 = vmatprep.subr.mxu0 %v7028_v62  ;;  %978 = vmatprep.subr.mxu1 %v7029_v54 }
 0x1ad   :  { %908 = vmatpush1.msra.mxu0 %v7030_v53  ;;  %979 = vmatpush1.msra.mxu1 %v7031_v1 }
 0x1ae   :  { %909 = vmatprep.subr.mxu0 %v7032_v63  ;;  %980 = vmatprep.subr.mxu1 %v7033_v11  ;;  %v7053_v11 = vld [vmem:[#allocation46_spill] sm:$0xff] }
 0x1af   :  { %910 = vmatpush1.msra.mxu0 %v7034_v38  ;;  %981 = vmatpush1.msra.mxu1 %v7035_v61  ;;  %v7052_v38 = vld [vmem:[#allocation48_spill] sm:$0xff] }
 0x1b0   :  { %911 = vmatprep.subr.mxu0 %v7036_v2  ;;  %982 = vmatprep.subr.mxu1 %v7037_v51  ;;  %v7048_v51 = vld [vmem:[#allocation44_spill] sm:$0xff] }
 0x1b1   :  { %912 = vmatpush1.msra.mxu0 %v7038_v55  ;;  %983 = vmatpush1.msra.mxu1 %v7039_v29  ;;  %v7049_v29 = vld [vmem:[#allocation22_spill] sm:$0xff] }
 0x1b2   :  { %913 = vmatprep.subr.mxu0 %v7040_v0  ;;  %984 = vmatprep.subr.mxu1 %v7041_v57  ;;  %v7050_v0 = vld [vmem:[#allocation23_spill] sm:$0xff] }
 0x1b3   :  { %914 = vmatpush1.msra.mxu0 %v7042_v56  ;;  %985 = vmatpush1.msra.mxu1 %v7043_v3 }
 0x1b4   :  { %915 = vmatprep.subr.mxu0 %v7044_v60  ;;  %986 = vmatprep.subr.mxu1 %v7045_v52  ;;  %v7051_v60 = vld [vmem:[#allocation47_spill] sm:$0xff] }
 0x1b5   :  { %916 = vmatpush1.msra.mxu0 %v7046_v58  ;;  %949 = vmatprep.mubr.f32.mxu0 %v7047_v47 }
 0x1b6   :  { %987 = vmatpush1.msra.mxu1 %v7048_v51  ;;  %1020 = vmatprep.mubr.f32.mxu1 %v7047_v47 }
 0x1b7   :  { %1060 = vmatprep.subr.mxu0 %v7049_v29  ;;  %1131 = vmatprep.subr.mxu1 %v7050_v0 }
 0x256   :  { %v776_v57 = vpop.f32.mrf.mxu0  ;;  %v847_v52 = vpop.f32.mrf.mxu1 }
 0x257   :  { %v852_v56 = vadd.f32 %v776_v57, %v5056_v59  ;;  %v854_v47 = vadd.f32 %v847_v52, %v7053_v11 }
 0x258   :  { %v778_v3 = vpop.f32.mrf.mxu0  ;;  %v849_v61 = vpop.f32.mrf.mxu1 }
 0x259   :  { %v3950_v55 = vmul.f32 -1.442695, %v852_v56  ;;  %v853_v2 = vadd.f32 %v778_v3, %v7051_v60  ;;  %v855_v51 = vadd.f32 %v849_v61, %v7052_v38 }
 0x25b   :  { %4130 = vpow2.f32 %v3950_v55  ;;  %v3951_v58 = vmul.f32 -1.442695, %v853_v2  ;;  %v3952_v63 = vmul.f32 -1.442695, %v855_v51 }
 0x25d   :  { %4132 = vpow2.f32 %v3951_v58 }
 0x25e   :  { %4134 = vtanh.f32 %v854_v47 }
 0x25f   :  { %4136 = vpow2.f32 %v3952_v63 }
 0x268   :  { %v4131_v29 = vpop.eup %4130 }
 0x269   :  { %v859_v1 = vadd.f32 1.0, %v4131_v29 }
 0x26a   :  { %v4133_v0 = vpop.eup %4132 }
 0x26b   :  { %4138 = vrcp.f32 %v859_v1  ;;  %v865_v59 = vadd.f32 1.0, %v4133_v0  ;;  %v4135_v57 = vpop.eup %4134  ;;  %v7076_v1 = vld [vmem:[#allocation51_spill] sm:$0xff]  ;;  %v7077_v0 = vld [vmem:[#allocation52_spill] sm:$0xff] }
 0x26c   :  { %v4137_v56 = vpop.eup %4136 }
 0x26d   :  { %4140 = vrcp.f32 %v865_v59  ;;  %v872_v60 = vadd.f32 1.0, %v4137_v56 }
 0x26f   :  { %4142 = vrcp.f32 %v872_v60 }
 0x278   :  { %v4139_v55 = vpop.eup %4138 }
 0x279   :  { %v876_v3 = vmul.f32 %v4139_v55, %v4135_v57  ;;  %v7078_v57 = vld [vmem:[#allocation50_spill] sm:$0xff] }
 0x27a   :  { %v4141_v2 = vpop.eup %4140 }
 0x27b   :  { %v875_v58 = vmul.f32 %v4141_v2, %v5132_v4 }
 0x27c   :  { %v4143_v11 = vpop.eup %4142 }
 0x27d   :  { %v5210_v38 = vadd.f32 %v876_v3, %v875_v58 }
 0x27f   :  { %4144 = vtanh.f32 %v5210_v38 }
 0x28c   :  { %v4145_v47 = vpop.eup %4144 }
 0x28d   :  { %v5213_v61 = vmul.f32 %v4145_v47, %v4143_v11 }
 0x28f   :  { %7054 = vst [vmem:[#allocation24_spill] sm:$0xff] %v5213_v61  ;;  %950 = vmatmul.mubr.f32.vlgmr.msra.gmra.mxu0 %v5213_v61  ;;  %1021 = vmatmul.mubr.f32.vlgmr.msra.gmra.mxu1 %v5213_v61  ;;  %v5362_v61 = vld [vmem:[#allocation10 + $0x150] sm:$0xff] }
 0x290   :  { %1061 = vmatpush1.msra.mxu0 %v4753_v5  ;;  %1132 = vmatpush1.msra.mxu1 %v4755_v6  ;;  %v7055_v5 = vld [vmem:[#allocation28_spill] sm:$0xff]  ;;  %v7056_v6 = vld [vmem:[#allocation29_spill] sm:$0xff] }
 0x291   :  { %1062 = vmatprep.subr.mxu0 %v4757_v7  ;;  %1133 = vmatprep.subr.mxu1 %v4759_v8  ;;  %v7057_v7 = vld [vmem:[#allocation30_spill] sm:$0xff]  ;;  %v7058_v8 = vld [vmem:[#allocation31_spill] sm:$0xff] }
 0x292   :  { %1063 = vmatpush1.msra.mxu0 %v4765_v9  ;;  %1134 = vmatpush1.msra.mxu1 %v4767_v10  ;;  %v7059_v9 = vld [vmem:[#allocation32_spill] sm:$0xff]  ;;  %v7060_v10 = vld [vmem:[#allocation33_spill] sm:$0xff] }
 0x293   :  { %1064 = vmatprep.subr.mxu0 %v4773_v12  ;;  %1135 = vmatprep.subr.mxu1 %v4775_v13  ;;  %v7061_v12 = vld [vmem:[#allocation34_spill] sm:$0xff]  ;;  %v7062_v13 = vld [vmem:[#allocation35_spill] sm:$0xff] }
 0x294   :  { %1065 = vmatpush1.msra.mxu0 %v4779_v14  ;;  %1136 = vmatpush1.msra.mxu1 %v4781_v15  ;;  %v7063_v14 = vld [vmem:[#allocation36_spill] sm:$0xff]  ;;  %v7064_v15 = vld [vmem:[#allocation37_spill] sm:$0xff] }
 0x295   :  { %1066 = vmatprep.subr.mxu0 %v4783_v16  ;;  %1137 = vmatprep.subr.mxu1 %v4785_v17  ;;  %v7065_v16 = vld [vmem:[#allocation38_spill] sm:$0xff]  ;;  %v7066_v17 = vld [vmem:[#allocation39_spill] sm:$0xff] }
 0x296   :  { %1067 = vmatpush1.msra.mxu0 %v4791_v18  ;;  %1138 = vmatpush1.msra.mxu1 %v4793_v19  ;;  %v7067_v18 = vld [vmem:[#allocation40_spill] sm:$0xff]  ;;  %v7068_v19 = vld [vmem:[#allocation41_spill] sm:$0xff] }
 0x297   :  { %1068 = vmatprep.subr.mxu0 %v4799_v21  ;;  %1139 = vmatprep.subr.mxu1 %v4801_v22  ;;  %v7069_v21 = vld [vmem:[#allocation42_spill] sm:$0xff]  ;;  %v7070_v22 = vld [vmem:[#allocation43_spill] sm:$0xff] }
 0x298   :  { %1069 = vmatpush1.msra.mxu0 %v4805_v23  ;;  %1140 = vmatpush1.msra.mxu1 %v4807_v24  ;;  %v7071_v23 = vmov 0.0   ;;  %v7072_v24 = vld [vmem:[#allocation44_spill] sm:$0xff] }
 0x299   :  { %1070 = vmatprep.subr.mxu0 %v4809_v25  ;;  %1141 = vmatprep.subr.mxu1 %v4811_v26  ;;  %v5281_v25 = vld [vmem:[#allocation10 + $0x1e8] sm:$0xff]  ;;  %v5284_v26 = vld [vmem:[#allocation10 + $0x1f8] sm:$0xff] }
 0x29a   :  { %1071 = vmatpush1.msra.mxu0 %v4817_v27  ;;  %1142 = vmatpush1.msra.mxu1 %v4819_v28  ;;  %7073 = vst [vmem:[#allocation25_spill] sm:$0xff] %v5281_v25  ;;  %7074 = vst [vmem:[#allocation26_spill] sm:$0xff] %v5284_v26  ;;  %v7075_v28 = vld [vmem:[#allocation49_spill] sm:$0xff] }
 0x29b   :  { %1072 = vmatprep.subr.mxu0 %v4825_v30  ;;  %1143 = vmatprep.subr.mxu1 %v4827_v31 }
 0x29c   :  { %1073 = vmatpush1.msra.mxu0 %v4831_v32  ;;  %1144 = vmatpush1.msra.mxu1 %v4833_v33 }
 0x29d   :  { %1074 = vmatprep.subr.mxu0 %v4835_v34  ;;  %1145 = vmatprep.subr.mxu1 %v4837_v35 }
 0x29e   :  { %1075 = vmatpush1.msra.mxu0 %v4843_v36  ;;  %1146 = vmatpush1.msra.mxu1 %v4845_v37 }
 0x29f   :  { %1076 = vmatprep.subr.mxu0 %v4851_v39  ;;  %1147 = vmatprep.subr.mxu1 %v4853_v40 }
 0x2a0   :  { %1077 = vmatpush1.msra.mxu0 %v4857_v41  ;;  %1148 = vmatpush1.msra.mxu1 %v4859_v42 }
 0x2a1   :  { %1078 = vmatprep.subr.mxu0 %v4861_v43  ;;  %1149 = vmatprep.subr.mxu1 %v4863_v44 }
 0x2a2   :  { %1079 = vmatpush1.msra.mxu0 %v4869_v45  ;;  %1150 = vmatpush1.msra.mxu1 %v4871_v46 }
 0x2a3   :  { %1080 = vmatprep.subr.mxu0 %v4877_v48  ;;  %1151 = vmatprep.subr.mxu1 %v4879_v49 }
 0x2a4   :  { %1081 = vmatpush1.msra.mxu0 %v4883_v50  ;;  %1152 = vmatpush1.msra.mxu1 %v7027_v20 }
 0x2a5   :  { %1082 = vmatprep.subr.mxu0 %v7028_v62  ;;  %1153 = vmatprep.subr.mxu1 %v7029_v54 }
 0x2a6   :  { %1083 = vmatpush1.msra.mxu0 %v7030_v53  ;;  %1154 = vmatpush1.msra.mxu1 %v7055_v5 }
 0x2a7   :  { %1084 = vmatprep.subr.mxu0 %v7056_v6  ;;  %1155 = vmatprep.subr.mxu1 %v7057_v7 }
 0x2a8   :  { %1085 = vmatpush1.msra.mxu0 %v7058_v8  ;;  %1156 = vmatpush1.msra.mxu1 %v7059_v9 }
 0x2a9   :  { %1086 = vmatprep.subr.mxu0 %v7060_v10  ;;  %1157 = vmatprep.subr.mxu1 %v7061_v12 }
 0x2aa   :  { %1087 = vmatpush1.msra.mxu0 %v7062_v13  ;;  %1158 = vmatpush1.msra.mxu1 %v7063_v14 }
 0x2ab   :  { %1088 = vmatprep.subr.mxu0 %v7064_v15  ;;  %1159 = vmatprep.subr.mxu1 %v7065_v16 }
 0x2ac   :  { %1089 = vmatpush1.msra.mxu0 %v7066_v17  ;;  %1160 = vmatpush1.msra.mxu1 %v7067_v18 }
 0x2ad   :  { %1090 = vmatprep.subr.mxu0 %v7068_v19  ;;  %1161 = vmatprep.subr.mxu1 %v7069_v21 }
 0x2ae   :  { %1091 = vmatpush1.msra.mxu0 %v7070_v22  ;;  %1124 = vmatprep.mubr.f32.mxu0 %v7071_v23 }
 0x2af   :  { %1162 = vmatpush1.msra.mxu1 %v7072_v24  ;;  %1195 = vmatprep.mubr.f32.mxu1 %v7071_v23 }
 0x2b0   :  { %1235 = vmatprep.subr.mxu0 %v5281_v25  ;;  %1306 = vmatprep.subr.mxu1 %v5284_v26 }
 0x34f   :  { %v951_v27 = vpop.f32.mrf.mxu0  ;;  %v1022_v51 = vpop.f32.mrf.mxu1 }
 0x350   :  { %v1027_v30 = vadd.f32 %v951_v27, %v7075_v28  ;;  %v1029_v56 = vadd.f32 %v1022_v51, %v7078_v57  ;;  %v5311_v57 = vld [vmem:[#allocation10 + $0x1c0] sm:$0xff] }
 0x351   :  { %v953_v31 = vpop.f32.mrf.mxu0  ;;  %v1024_v29 = vpop.f32.mrf.mxu1 }
 0x352   :  { %v3953_v4 = vmul.f32 -1.442695, %v1027_v30  ;;  %v1028_v63 = vadd.f32 %v953_v31, %v7076_v1  ;;  %v1030_v59 = vadd.f32 %v1024_v29, %v7077_v0  ;;  %v5299_v29 = vld [vmem:[#allocation10 + $0x1e0] sm:$0xff]  ;;  %v5302_v0 = vld [vmem:[#allocation10 + $0x1f0] sm:$0xff] }
 0x354   :  { %4146 = vpow2.f32 %v3953_v4  ;;  %v3954_v52 = vmul.f32 -1.442695, %v1028_v63  ;;  %v3955_v55 = vmul.f32 -1.442695, %v1030_v59  ;;  %v5308_v59 = vld [vmem:[#allocation10 + $0x1d8] sm:$0xff] }
 0x356   :  { %4148 = vpow2.f32 %v3954_v52 }
 0x357   :  { %4150 = vtanh.f32 %v1029_v56  ;;  %v5314_v56 = vld [vmem:[#allocation10 + $0x1d0] sm:$0xff] }
 0x358   :  { %4152 = vpow2.f32 %v3955_v55  ;;  %v5317_v55 = vld [vmem:[#allocation10 + $0x1a8] sm:$0xff] }
 0x361   :  { %v4147_v3 = vpop.eup %4146 }
 0x362   :  { %v1034_v2 = vadd.f32 1.0, %v4147_v3  ;;  %v5320_v3 = vld [vmem:[#allocation10 + $0x1b8] sm:$0xff] }
 0x363   :  { %v4149_v60 = vpop.eup %4148 }
 0x364   :  { %4154 = vrcp.f32 %v1034_v2  ;;  %v1040_v58 = vadd.f32 1.0, %v4149_v60  ;;  %v4151_v11 = vpop.eup %4150  ;;  %v5323_v2 = vld [vmem:[#allocation10 + $0x1a0] sm:$0xff]  ;;  %v5326_v60 = vld [vmem:[#allocation10 + $0x1b0] sm:$0xff] }
 0x365   :  { %v4153_v47 = vpop.eup %4152 }
 0x366   :  { %4156 = vrcp.f32 %v1040_v58  ;;  %v1047_v31 = vadd.f32 1.0, %v4153_v47  ;;  %v5329_v58 = vld [vmem:[#allocation10 + $0x188] sm:$0xff]  ;;  %v5335_v47 = vld [vmem:[#allocation10 + $0x180] sm:$0xff] }
 0x368   :  { %4158 = vrcp.f32 %v1047_v31  ;;  %v5347_v31 = vld [vmem:[#allocation10 + $0x160] sm:$0xff] }
 0x369   :  { %7080 = vst [vmem:[#allocation22_spill] sm:$0xff] %v5347_v31 }
 0x371   :  { %v4155_v27 = vpop.eup %4154 }
 0x372   :  { %v1051_v28 = vmul.f32 %v4155_v27, %v4151_v11  ;;  %v5332_v11 = vld [vmem:[#allocation10 + $0x198] sm:$0xff]  ;;  %v5338_v27 = vld [vmem:[#allocation10 + $0x190] sm:$0xff] }
 0x373   :  { %v4157_v30 = vpop.eup %4156 }
 0x374   :  { %v1050_v4 = vmul.f32 %v4157_v30, %v5210_v38  ;;  %v5305_v38 = vld [vmem:[#allocation10 + $0x1c8] sm:$0xff]  ;;  %v5344_v30 = vld [vmem:[#allocation10 + $0x178] sm:$0xff] }
 0x375   :  { %v4159_v63 = vpop.eup %4158 }
 0x376   :  { %v5292_v1 = vadd.f32 %v1051_v28, %v1050_v4  ;;  %v5341_v28 = vld [vmem:[#allocation10 + $0x168] sm:$0xff]  ;;  %v5350_v4 = vld [vmem:[#allocation10 + $0x170] sm:$0xff] }
 0x377   :  { %7081 = vst [vmem:[#allocation23_spill] sm:$0xff] %v5350_v4 }
 0x378   :  { %4160 = vtanh.f32 %v5292_v1 }
 0x385   :  { %v4161_v51 = vpop.eup %4160 }
 0x386   :  { %v5295_v52 = vmul.f32 %v4161_v51, %v4159_v63  ;;  %v5353_v63 = vld [vmem:[#allocation10 + $0x148] sm:$0xff]  ;;  %v5356_v51 = vld [vmem:[#allocation10 + $0x158] sm:$0xff] }
 0x388   :  { %7079 = vst [vmem:[#allocation27_spill] sm:$0xff] %v5295_v52  ;;  %1125 = vmatmul.mubr.f32.vlgmr.msra.gmra.mxu0 %v5295_v52  ;;  %1196 = vmatmul.mubr.f32.vlgmr.msra.gmra.mxu1 %v5295_v52  ;;  %v5359_v52 = vld [vmem:[#allocation10 + $0x140] sm:$0xff] }
 0x389   :  { %1236 = vmatpush1.msra.mxu0 %v5299_v29  ;;  %1307 = vmatpush1.msra.mxu1 %v5302_v0 }
 0x38a   :  { %1237 = vmatprep.subr.mxu0 %v5305_v38  ;;  %1308 = vmatprep.subr.mxu1 %v5308_v59 }
 0x38b   :  { %1238 = vmatpush1.msra.mxu0 %v5311_v57  ;;  %1309 = vmatpush1.msra.mxu1 %v5314_v56 }
 0x38c   :  { %1239 = vmatprep.subr.mxu0 %v5317_v55  ;;  %1310 = vmatprep.subr.mxu1 %v5320_v3 }
 0x38d   :  { %1240 = vmatpush1.msra.mxu0 %v5323_v2  ;;  %1311 = vmatpush1.msra.mxu1 %v5326_v60 }
 0x38e   :  { %1241 = vmatprep.subr.mxu0 %v5329_v58  ;;  %1312 = vmatprep.subr.mxu1 %v5332_v11 }
 0x38f   :  { %1242 = vmatpush1.msra.mxu0 %v5335_v47  ;;  %1313 = vmatpush1.msra.mxu1 %v5338_v27 }
 0x390   :  { %1243 = vmatprep.subr.mxu0 %v5341_v28  ;;  %1314 = vmatprep.subr.mxu1 %v5344_v30 }
 0x391   :  { %1244 = vmatpush1.msra.mxu0 %v5347_v31  ;;  %1315 = vmatpush1.msra.mxu1 %v5350_v4  ;;  %v5365_v31 = vld [vmem:[#allocation10 + $0x128] sm:$0xff]  ;;  %v5368_v4 = vld [vmem:[#allocation10 + $0x138] sm:$0xff] }
 0x392   :  { %1245 = vmatprep.subr.mxu0 %v5353_v63  ;;  %1316 = vmatprep.subr.mxu1 %v5356_v51 }
 0x393   :  { %1246 = vmatpush1.msra.mxu0 %v5359_v52  ;;  %1317 = vmatpush1.msra.mxu1 %v5362_v61 }
 0x394   :  { %1247 = vmatprep.subr.mxu0 %v5365_v31  ;;  %1318 = vmatprep.subr.mxu1 %v5368_v4 }
 0x395   :  { %1248 = vmatpush1.msra.mxu0 %v4831_v32  ;;  %1319 = vmatpush1.msra.mxu1 %v4833_v33  ;;  %v7082_v33 = vld [vmem:[#allocation53_spill] sm:$0xff] }
 0x396   :  { %1249 = vmatprep.subr.mxu0 %v4835_v34  ;;  %1320 = vmatprep.subr.mxu1 %v4837_v35 }
 0x397   :  { %1250 = vmatpush1.msra.mxu0 %v4843_v36  ;;  %1321 = vmatpush1.msra.mxu1 %v4845_v37  ;;  %v7083_v37 = vld [vmem:[#allocation55_spill] sm:$0xff] }
 0x398   :  { %1251 = vmatprep.subr.mxu0 %v4851_v39  ;;  %1322 = vmatprep.subr.mxu1 %v4853_v40 }
 0x399   :  { %1252 = vmatpush1.msra.mxu0 %v4857_v41  ;;  %1323 = vmatpush1.msra.mxu1 %v4859_v42 }
 0x39a   :  { %1253 = vmatprep.subr.mxu0 %v4861_v43  ;;  %1324 = vmatprep.subr.mxu1 %v4863_v44  ;;  %v7084_v43 = vld [vmem:[#allocation56_spill] sm:$0xff] }
 0x39b   :  { %1254 = vmatpush1.msra.mxu0 %v4869_v45  ;;  %1325 = vmatpush1.msra.mxu1 %v4871_v46  ;;  %v7085_v45 = vld [vmem:[#allocation54_spill] sm:$0xff] }
 0x39c   :  { %1255 = vmatprep.subr.mxu0 %v4877_v48  ;;  %1326 = vmatprep.subr.mxu1 %v4879_v49 }
 0x39d   :  { %1256 = vmatpush1.msra.mxu0 %v4883_v50  ;;  %1327 = vmatpush1.msra.mxu1 %v7027_v20 }
 0x39e   :  { %1257 = vmatprep.subr.mxu0 %v7028_v62  ;;  %1328 = vmatprep.subr.mxu1 %v7029_v54 }
 0x39f   :  { %1258 = vmatpush1.msra.mxu0 %v7030_v53  ;;  %1329 = vmatpush1.msra.mxu1 %v7055_v5 }
 0x3a0   :  { %1259 = vmatprep.subr.mxu0 %v7056_v6  ;;  %1330 = vmatprep.subr.mxu1 %v7057_v7 }
 0x3a1   :  { %1260 = vmatpush1.msra.mxu0 %v7058_v8  ;;  %1331 = vmatpush1.msra.mxu1 %v7059_v9 }
 0x3a2   :  { %1261 = vmatprep.subr.mxu0 %v7060_v10  ;;  %1332 = vmatprep.subr.mxu1 %v7061_v12 }
 0x3a3   :  { %1262 = vmatpush1.msra.mxu0 %v7062_v13  ;;  %1333 = vmatpush1.msra.mxu1 %v7063_v14 }
 0x3a4   :  { %1263 = vmatprep.subr.mxu0 %v7064_v15  ;;  %1334 = vmatprep.subr.mxu1 %v7065_v16  ;;  %v7087_v15 = vld [vmem:[#allocation22_spill] sm:$0xff]  ;;  %v7088_v16 = vld [vmem:[#allocation23_spill] sm:$0xff] }
 0x3a5   :  { %1264 = vmatpush1.msra.mxu0 %v7066_v17  ;;  %1335 = vmatpush1.msra.mxu1 %v7067_v18  ;;  %v5449_v17 = vld [vmem:[#allocation10 + $0x120] sm:$0xff]  ;;  %v5452_v18 = vld [vmem:[#allocation10 + $0x130] sm:$0xff] }
 0x3a6   :  { %1265 = vmatprep.subr.mxu0 %v7068_v19  ;;  %1336 = vmatprep.subr.mxu1 %v7069_v21  ;;  %v5455_v19 = vld [vmem:[#allocation10 + $0x108] sm:$0xff]  ;;  %v5458_v21 = vld [vmem:[#allocation10 + $0x118] sm:$0xff] }
 0x3a7   :  { %1266 = vmatpush1.msra.mxu0 %v7070_v22  ;;  %1299 = vmatprep.mubr.f32.mxu0 %v7071_v23  ;;  %v5461_v22 = vld [vmem:[#allocation10 + $0x100] sm:$0xff] }
 0x3a8   :  { %1337 = vmatpush1.msra.mxu1 %v7072_v24  ;;  %1370 = vmatprep.mubr.f32.mxu1 %v7071_v23  ;;  %v5464_v24 = vld [vmem:[#allocation10 + $0x110] sm:$0xff] }
 0x3a9   :  { %1410 = vmatprep.subr.mxu0 %v5281_v25  ;;  %1481 = vmatprep.subr.mxu1 %v5284_v26 }
 0x448   :  { %v1126_v32 = vpop.f32.mrf.mxu0  ;;  %v1197_v40 = vpop.f32.mrf.mxu1 }
 0x449   :  { %v1202_v34 = vadd.f32 %v1126_v32, %v7082_v33  ;;  %v1204_v46 = vadd.f32 %v1197_v40, %v7085_v45  ;;  %v5470_v32 = vld [vmem:[#allocation10 + $0xf8] sm:$0xff]  ;;  %v5473_v33 = vld [vmem:[#allocation10 + $0xe0] sm:$0xff]  ;;  %v5491_v40 = vld [vmem:[#allocation10 + $0xa8] sm:$0xff] }
 0x44a   :  { %v1128_v35 = vpop.f32.mrf.mxu0  ;;  %v1199_v42 = vpop.f32.mrf.mxu1  ;;  %v5506_v45 = vld [vmem:[#allocation10 + $0x98] sm:$0xff] }
 0x44b   :  { %v3956_v36 = vmul.f32 -1.442695, %v1202_v34  ;;  %v1203_v39 = vadd.f32 %v1128_v35, %v7083_v37  ;;  %v1205_v44 = vadd.f32 %v1199_v42, %v7084_v43  ;;  %v5476_v34 = vld [vmem:[#allocation10 + $0xf0] sm:$0xff]  ;;  %v5479_v35 = vld [vmem:[#allocation10 + $0xc8] sm:$0xff]  ;;  %v5485_v37 = vld [vmem:[#allocation10 + $0xc0] sm:$0xff] }
 0x44c   :  { %v5497_v42 = vld [vmem:[#allocation10 + $0xa0] sm:$0xff]  ;;  %v5500_v43 = vld [vmem:[#allocation10 + $0xb0] sm:$0xff] }
 0x44d   :  { %4162 = vpow2.f32 %v3956_v36  ;;  %v3957_v41 = vmul.f32 -1.442695, %v1203_v39  ;;  %v3958_v48 = vmul.f32 -1.442695, %v1205_v44  ;;  %v5482_v36 = vld [vmem:[#allocation10 + $0xd8] sm:$0xff]  ;;  %v5488_v39 = vld [vmem:[#allocation10 + $0xd0] sm:$0xff] }
 0x44e   :  { %v5503_v44 = vld [vmem:[#allocation10 + $0x88] sm:$0xff] }
 0x44f   :  { %4164 = vpow2.f32 %v3957_v41  ;;  %v5494_v41 = vld [vmem:[#allocation10 + $0xb8] sm:$0xff] }
 0x450   :  { %4166 = vtanh.f32 %v1204_v46  ;;  %v5509_v46 = vld [vmem:[#allocation10 + $0x80] sm:$0xff] }
 0x451   :  { %4168 = vpow2.f32 %v3958_v48  ;;  %7089 = vst [vmem:[#allocation48_spill] sm:$0xff] %v5509_v46  ;;  %v5512_v48 = vld [vmem:[#allocation10 + $0x90] sm:$0xff] }
 0x452   :  { %7090 = vst [vmem:[#allocation46_spill] sm:$0xff] %v5512_v48 }
 0x45a   :  { %v4163_v49 = vpop.eup %4162 }
 0x45b   :  { %v1209_v50 = vadd.f32 1.0, %v4163_v49  ;;  %v5515_v49 = vld [vmem:[#allocation10 + $0x68] sm:$0xff] }
 0x45c   :  { %v4165_v20 = vpop.eup %4164  ;;  %7091 = vst [vmem:[#allocation28_spill] sm:$0xff] %v5515_v49 }
 0x45d   :  { %4170 = vrcp.f32 %v1209_v50  ;;  %v1215_v62 = vadd.f32 1.0, %v4165_v20  ;;  %v4167_v54 = vpop.eup %4166  ;;  %v5518_v50 = vld [vmem:[#allocation10 + $0x78] sm:$0xff]  ;;  %v5521_v20 = vld [vmem:[#allocation10 + $0x60] sm:$0xff] }
 0x45e   :  { %v4169_v53 = vpop.eup %4168  ;;  %7092 = vst [vmem:[#allocation29_spill] sm:$0xff] %v5518_v50  ;;  %7093 = vst [vmem:[#allocation30_spill] sm:$0xff] %v5521_v20 }
 0x45f   :  { %4172 = vrcp.f32 %v1215_v62  ;;  %v1222_v8 = vadd.f32 1.0, %v4169_v53  ;;  %v5524_v62 = vld [vmem:[#allocation10 + $0x70] sm:$0xff]  ;;  %v5530_v53 = vld [vmem:[#allocation10 + $0x58] sm:$0xff] }
 0x460   :  { %7094 = vst [vmem:[#allocation31_spill] sm:$0xff] %v5524_v62  ;;  %7096 = vst [vmem:[#allocation33_spill] sm:$0xff] %v5530_v53 }
 0x461   :  { %4174 = vrcp.f32 %v1222_v8  ;;  %v5542_v8 = vld [vmem:[#allocation10 + $0x38] sm:$0xff] }
 0x462   :  { %7100 = vst [vmem:[#allocation37_spill] sm:$0xff] %v5542_v8 }
 0x46a   :  { %v4171_v5 = vpop.eup %4170 }
 0x46b   :  { %v1226_v6 = vmul.f32 %v4171_v5, %v4167_v54  ;;  %v5527_v54 = vld [vmem:[#allocation10 + $0x48] sm:$0xff]  ;;  %v5533_v5 = vld [vmem:[#allocation10 + $0x40] sm:$0xff] }
 0x46c   :  { %v4173_v7 = vpop.eup %4172  ;;  %7095 = vst [vmem:[#allocation32_spill] sm:$0xff] %v5527_v54  ;;  %7097 = vst [vmem:[#allocation34_spill] sm:$0xff] %v5533_v5 }
 0x46d   :  { %v1225_v9 = vmul.f32 %v4173_v7, %v5292_v1  ;;  %v5467_v1 = vld [vmem:[#allocation10 + $0xe8] sm:$0xff] }
 0x46e   :  { %v4175_v12 = vpop.eup %4174  ;;  %v5539_v7 = vld [vmem:[#allocation10 + $0x28] sm:$0xff] }
 0x46f   :  { %v5418_v10 = vadd.f32 %v1226_v6, %v1225_v9  ;;  %v5536_v6 = vld [vmem:[#allocation10 + $0x50] sm:$0xff]  ;;  %7099 = vst [vmem:[#allocation36_spill] sm:$0xff] %v5539_v7  ;;  %v5545_v9 = vld [vmem:[#allocation10 + $0x20] sm:$0xff] }
 0x470   :  { %7098 = vst [vmem:[#allocation35_spill] sm:$0xff] %v5536_v6  ;;  %7101 = vst [vmem:[#allocation38_spill] sm:$0xff] %v5545_v9 }
 0x471   :  { %4176 = vtanh.f32 %v5418_v10 }
 0x47e   :  { %v4177_v13 = vpop.eup %4176 }
 0x47f   :  { %v5421_v14 = vmul.f32 %v4177_v13, %v4175_v12  ;;  %v5548_v12 = vld [vmem:[#allocation10 + $0x30] sm:$0xff]  ;;  %v5551_v13 = vld [vmem:[#allocation10 + $0x8] sm:$0xff] }
 0x480   :  { %7102 = vst [vmem:[#allocation39_spill] sm:$0xff] %v5548_v12  ;;  %7103 = vst [vmem:[#allocation40_spill] sm:$0xff] %v5551_v13 }
 0x481   :  { %7086 = vst [vmem:[#allocation47_spill] sm:$0xff] %v5421_v14  ;;  %1300 = vmatmul.mubr.f32.vlgmr.msra.gmra.mxu0 %v5421_v14  ;;  %1371 = vmatmul.mubr.f32.vlgmr.msra.gmra.mxu1 %v5421_v14  ;;  %v5554_v14 = vld [vmem:[#allocation10 + $0x18] sm:$0xff] }
 0x482   :  { %1411 = vmatpush1.msra.mxu0 %v5299_v29  ;;  %1482 = vmatpush1.msra.mxu1 %v5302_v0  ;;  %7104 = vst [vmem:[#allocation41_spill] sm:$0xff] %v5554_v14 }
 0x483   :  { %1412 = vmatprep.subr.mxu0 %v5305_v38  ;;  %1483 = vmatprep.subr.mxu1 %v5308_v59 }
 0x484   :  { %1413 = vmatpush1.msra.mxu0 %v5311_v57  ;;  %1484 = vmatpush1.msra.mxu1 %v5314_v56 }
 0x485   :  { %1414 = vmatprep.subr.mxu0 %v5317_v55  ;;  %1485 = vmatprep.subr.mxu1 %v5320_v3 }
 0x486   :  { %1415 = vmatpush1.msra.mxu0 %v5323_v2  ;;  %1486 = vmatpush1.msra.mxu1 %v5326_v60 }
 0x487   :  { %1416 = vmatprep.subr.mxu0 %v5329_v58  ;;  %1487 = vmatprep.subr.mxu1 %v5332_v11 }
 0x488   :  { %1417 = vmatpush1.msra.mxu0 %v5335_v47  ;;  %1488 = vmatpush1.msra.mxu1 %v5338_v27 }
 0x489   :  { %1418 = vmatprep.subr.mxu0 %v5341_v28  ;;  %1489 = vmatprep.subr.mxu1 %v5344_v30 }
 0x48a   :  { %1419 = vmatpush1.msra.mxu0 %v7087_v15  ;;  %1490 = vmatpush1.msra.mxu1 %v7088_v16 }
 0x48b   :  { %1420 = vmatprep.subr.mxu0 %v5353_v63  ;;  %1491 = vmatprep.subr.mxu1 %v5356_v51 }
 0x48c   :  { %1421 = vmatpush1.msra.mxu0 %v5359_v52  ;;  %1492 = vmatpush1.msra.mxu1 %v5362_v61 }
 0x48d   :  { %1422 = vmatprep.subr.mxu0 %v5365_v31  ;;  %1493 = vmatprep.subr.mxu1 %v5368_v4 }
 0x48e   :  { %1423 = vmatpush1.msra.mxu0 %v5449_v17  ;;  %1494 = vmatpush1.msra.mxu1 %v5452_v18 }
 0x48f   :  { %1424 = vmatprep.subr.mxu0 %v5455_v19  ;;  %1495 = vmatprep.subr.mxu1 %v5458_v21 }
 0x490   :  { %1425 = vmatpush1.msra.mxu0 %v5461_v22  ;;  %1496 = vmatpush1.msra.mxu1 %v5464_v24 }
 0x491   :  { %1426 = vmatprep.subr.mxu0 %v5467_v1  ;;  %1497 = vmatprep.subr.mxu1 %v5470_v32 }
 0x492   :  { %1427 = vmatpush1.msra.mxu0 %v5473_v33  ;;  %1498 = vmatpush1.msra.mxu1 %v5476_v34 }
 0x493   :  { %1428 = vmatprep.subr.mxu0 %v5479_v35  ;;  %1499 = vmatprep.subr.mxu1 %v5482_v36 }
 0x494   :  { %1429 = vmatpush1.msra.mxu0 %v5485_v37  ;;  %1500 = vmatpush1.msra.mxu1 %v5488_v39 }
 0x495   :  { %1430 = vmatprep.subr.mxu0 %v5491_v40  ;;  %1501 = vmatprep.subr.mxu1 %v5494_v41 }
 0x496   :  { %1431 = vmatpush1.msra.mxu0 %v5497_v42  ;;  %1502 = vmatpush1.msra.mxu1 %v5500_v43 }
 0x497   :  { %1432 = vmatprep.subr.mxu0 %v5503_v44  ;;  %1503 = vmatprep.subr.mxu1 %v5506_v45 }
 0x498   :  { %1433 = vmatpush1.msra.mxu0 %v5509_v46  ;;  %1504 = vmatpush1.msra.mxu1 %v5512_v48 }
 0x499   :  { %1434 = vmatprep.subr.mxu0 %v5515_v49  ;;  %1505 = vmatprep.subr.mxu1 %v5518_v50  ;;  %v7110_v50 = vld [vmem:[#allocation58_spill] sm:$0xff] }
 0x49a   :  { %1435 = vmatpush1.msra.mxu0 %v5521_v20  ;;  %1506 = vmatpush1.msra.mxu1 %v5524_v62  ;;  %v7109_v20 = vld [vmem:[#allocation60_spill] sm:$0xff] }
 0x49b   :  { %1436 = vmatprep.subr.mxu0 %v5527_v54  ;;  %1507 = vmatprep.subr.mxu1 %v5530_v53 }
 0x49c   :  { %1437 = vmatpush1.msra.mxu0 %v5533_v5  ;;  %1508 = vmatpush1.msra.mxu1 %v5536_v6  ;;  %v7108_v5 = vld [vmem:[#allocation59_spill] sm:$0xff] }
 0x49d   :  { %1438 = vmatprep.subr.mxu0 %v5539_v7  ;;  %1509 = vmatprep.subr.mxu1 %v5542_v8  ;;  %v5557_v7 = vld [vmem:[#allocation10] sm:$0xff]  ;;  %v5561_v8 = vld [vmem:[#allocation10 + $0x10] sm:$0xff] }
 0x49e   :  { %1439 = vmatpush1.msra.mxu0 %v5545_v9  ;;  %1510 = vmatpush1.msra.mxu1 %v5548_v12  ;;  %7105 = vst [vmem:[#allocation42_spill] sm:$0xff] %v5557_v7  ;;  %7106 = vst [vmem:[#allocation43_spill] sm:$0xff] %v5561_v8  ;;  %v7107_v12 = vld [vmem:[#allocation57_spill] sm:$0xff] }
 0x49f   :  { %1440 = vmatprep.subr.mxu0 %v5551_v13  ;;  %1511 = vmatprep.subr.mxu1 %v5554_v14 }
 0x4a0   :  { %1441 = vmatpush1.msra.mxu0 %v5557_v7  ;;  %1474 = vmatprep.mubr.f32.mxu0 %v7071_v23 }
 0x4a1   :  { %1512 = vmatpush1.msra.mxu1 %v5561_v8  ;;  %1545 = vmatprep.mubr.f32.mxu1 %v7071_v23 }
 0x4a2   :  { %1585 = vmatprep.subr.mxu0 %v5281_v25  ;;  %1656 = vmatprep.subr.mxu1 %v5284_v26 }
 0x541   :  { %v1301_v13 = vpop.f32.mrf.mxu0  ;;  %v1372_v7 = vpop.f32.mrf.mxu1 }
 0x542   :  { %v1377_v9 = vadd.f32 %v1301_v13, %v7107_v12  ;;  %v1379_v23 = vadd.f32 %v1372_v7, %v7110_v50  ;;  %v7117_v7 = vld [vmem:[#allocation32_spill] sm:$0xff] }
 0x543   :  { %v1303_v14 = vpop.f32.mrf.mxu0  ;;  %v1374_v62 = vpop.f32.mrf.mxu1 }
 0x544   :  { %v3959_v6 = vmul.f32 -1.442695, %v1377_v9  ;;  %v1378_v53 = vadd.f32 %v1303_v14, %v7108_v5  ;;  %v1380_v8 = vadd.f32 %v1374_v62, %v7109_v20  ;;  %v7116_v62 = vld [vmem:[#allocation31_spill] sm:$0xff] }
 0x546   :  { %4178 = vpow2.f32 %v3959_v6  ;;  %v3960_v54 = vmul.f32 -1.442695, %v1378_v53  ;;  %v3961_v49 = vmul.f32 -1.442695, %v1380_v8  ;;  %v7118_v8 = vld [vmem:[#allocation33_spill] sm:$0xff] }
 0x548   :  { %4180 = vpow2.f32 %v3960_v54 }
 0x549   :  { %4182 = vtanh.f32 %v1379_v23 }
 0x54a   :  { %4184 = vpow2.f32 %v3961_v49  ;;  %v7115_v49 = vld [vmem:[#allocation30_spill] sm:$0xff] }
 0x553   :  { %v4179_v25 = vpop.eup %4178 }
 0x554   :  { %v1384_v48 = vadd.f32 1.0, %v4179_v25 }
 0x555   :  { %v4181_v26 = vpop.eup %4180 }
 0x556   :  { %4186 = vrcp.f32 %v1384_v48  ;;  %v1390_v12 = vadd.f32 1.0, %v4181_v26  ;;  %v4183_v9 = vpop.eup %4182  ;;  %v7112_v26 = vld [vmem:[#allocation46_spill] sm:$0xff]  ;;  %v7114_v48 = vld [vmem:[#allocation29_spill] sm:$0xff] }
 0x557   :  { %v4185_v14 = vpop.eup %4184 }
 0x558   :  { %4188 = vrcp.f32 %v1390_v12  ;;  %v1397_v54 = vadd.f32 1.0, %v4185_v14  ;;  %v7119_v12 = vld [vmem:[#allocation34_spill] sm:$0xff]  ;;  %v7121_v14 = vld [vmem:[#allocation36_spill] sm:$0xff] }
 0x55a   :  { %4190 = vrcp.f32 %v1397_v54  ;;  %v7125_v54 = vld [vmem:[#allocation40_spill] sm:$0xff] }
 0x563   :  { %v4187_v5 = vpop.eup %4186 }
 0x564   :  { %v1401_v6 = vmul.f32 %v4187_v5, %v4183_v9  ;;  %v7120_v9 = vld [vmem:[#allocation35_spill] sm:$0xff]  ;;  %v7122_v5 = vld [vmem:[#allocation37_spill] sm:$0xff] }
 0x565   :  { %v4189_v53 = vpop.eup %4188 }
 0x566   :  { %v1400_v13 = vmul.f32 %v4189_v53, %v5418_v10  ;;  %v7113_v10 = vld [vmem:[#allocation28_spill] sm:$0xff]  ;;  %v7124_v53 = vld [vmem:[#allocation39_spill] sm:$0xff] }
 0x567   :  { %v4191_v25 = vpop.eup %4190 }
 0x568   :  { %v5572_v20 = vadd.f32 %v1401_v6, %v1400_v13  ;;  %v7123_v6 = vld [vmem:[#allocation38_spill] sm:$0xff]  ;;  %v7126_v13 = vld [vmem:[#allocation41_spill] sm:$0xff] }
 0x56a   :  { %4192 = vtanh.f32 %v5572_v20 }
 0x577   :  { %v4193_v23 = vpop.eup %4192 }
 0x578   :  { %v5575_v50 = vmul.f32 %v4193_v23, %v4191_v25  ;;  %v7127_v25 = vld [vmem:[#allocation42_spill] sm:$0xff]  ;;  %v7128_v23 = vmov 0.0  }
 0x57a   :  { %7111 = vst [vmem:[#allocation44_spill] sm:$0xff] %v5575_v50  ;;  %1475 = vmatmul.mubr.f32.vlgmr.msra.gmra.mxu0 %v5575_v50  ;;  %1546 = vmatmul.mubr.f32.vlgmr.msra.gmra.mxu1 %v5575_v50  ;;  %v7129_v50 = vld [vmem:[#allocation43_spill] sm:$0xff] }
 0x57b   :  { %1586 = vmatpush1.msra.mxu0 %v5299_v29  ;;  %1657 = vmatpush1.msra.mxu1 %v5302_v0 }
 0x57c   :  { %1587 = vmatprep.subr.mxu0 %v5305_v38  ;;  %1658 = vmatprep.subr.mxu1 %v5308_v59 }
 0x57d   :  { %1588 = vmatpush1.msra.mxu0 %v5311_v57  ;;  %1659 = vmatpush1.msra.mxu1 %v5314_v56 }
 0x57e   :  { %1589 = vmatprep.subr.mxu0 %v5317_v55  ;;  %1660 = vmatprep.subr.mxu1 %v5320_v3 }
 0x57f   :  { %1590 = vmatpush1.msra.mxu0 %v5323_v2  ;;  %1661 = vmatpush1.msra.mxu1 %v5326_v60 }
 0x580   :  { %1591 = vmatprep.subr.mxu0 %v5329_v58  ;;  %1662 = vmatprep.subr.mxu1 %v5332_v11 }
 0x581   :  { %1592 = vmatpush1.msra.mxu0 %v5335_v47  ;;  %1663 = vmatpush1.msra.mxu1 %v5338_v27 }
 0x582   :  { %1593 = vmatprep.subr.mxu0 %v5341_v28  ;;  %1664 = vmatprep.subr.mxu1 %v5344_v30 }
 0x583   :  { %1594 = vmatpush1.msra.mxu0 %v7087_v15  ;;  %1665 = vmatpush1.msra.mxu1 %v7088_v16 }
 0x584   :  { %1595 = vmatprep.subr.mxu0 %v5353_v63  ;;  %1666 = vmatprep.subr.mxu1 %v5356_v51 }
 0x585   :  { %1596 = vmatpush1.msra.mxu0 %v5359_v52  ;;  %1667 = vmatpush1.msra.mxu1 %v5362_v61 }
 0x586   :  { %1597 = vmatprep.subr.mxu0 %v5365_v31  ;;  %1668 = vmatprep.subr.mxu1 %v5368_v4 }
 0x587   :  { %1598 = vmatpush1.msra.mxu0 %v5449_v17  ;;  %1669 = vmatpush1.msra.mxu1 %v5452_v18 }
 0x588   :  { %1599 = vmatprep.subr.mxu0 %v5455_v19  ;;  %1670 = vmatprep.subr.mxu1 %v5458_v21 }
 0x589   :  { %1600 = vmatpush1.msra.mxu0 %v5461_v22  ;;  %1671 = vmatpush1.msra.mxu1 %v5464_v24 }
 0x58a   :  { %1601 = vmatprep.subr.mxu0 %v5467_v1  ;;  %1672 = vmatprep.subr.mxu1 %v5470_v32 }
 0x58b   :  { %1602 = vmatpush1.msra.mxu0 %v5473_v33  ;;  %1673 = vmatpush1.msra.mxu1 %v5476_v34 }
 0x58c   :  { %1603 = vmatprep.subr.mxu0 %v5479_v35  ;;  %1674 = vmatprep.subr.mxu1 %v5482_v36 }
 0x58d   :  { %1604 = vmatpush1.msra.mxu0 %v5485_v37  ;;  %1675 = vmatpush1.msra.mxu1 %v5488_v39 }
 0x58e   :  { %1605 = vmatprep.subr.mxu0 %v5491_v40  ;;  %1676 = vmatprep.subr.mxu1 %v5494_v41 }
 0x58f   :  { %1606 = vmatpush1.msra.mxu0 %v5497_v42  ;;  %1677 = vmatpush1.msra.mxu1 %v5500_v43 }
 0x590   :  { %1607 = vmatprep.subr.mxu0 %v5503_v44  ;;  %1678 = vmatprep.subr.mxu1 %v5506_v45 }
 0x591   :  { %1608 = vmatpush1.msra.mxu0 %v5509_v46  ;;  %1679 = vmatpush1.msra.mxu1 %v7112_v26 }
 0x592   :  { %1609 = vmatprep.subr.mxu0 %v7113_v10  ;;  %1680 = vmatprep.subr.mxu1 %v7114_v48  ;;  %v7135_v10 = vld [vmem:[#allocation62_spill] sm:$0xff] }
 0x593   :  { %1610 = vmatpush1.msra.mxu0 %v7115_v49  ;;  %1681 = vmatpush1.msra.mxu1 %v7116_v62  ;;  %v7134_v62 = vld [vmem:[#allocation64_spill] sm:$0xff] }
 0x594   :  { %1611 = vmatprep.subr.mxu0 %v7117_v7  ;;  %1682 = vmatprep.subr.mxu1 %v7118_v8 }
 0x595   :  { %1612 = vmatpush1.msra.mxu0 %v7119_v12  ;;  %1683 = vmatpush1.msra.mxu1 %v7120_v9  ;;  %v7130_v12 = vld [vmem:[#allocation26_spill] sm:$0xff] }
 0x596   :  { %1613 = vmatprep.subr.mxu0 %v7121_v14  ;;  %1684 = vmatprep.subr.mxu1 %v7122_v5  ;;  %v7131_v14 = vld [vmem:[#allocation25_spill] sm:$0xff] }
 0x597   :  { %1614 = vmatpush1.msra.mxu0 %v7123_v6  ;;  %1685 = vmatpush1.msra.mxu1 %v7124_v53  ;;  %v7132_v6 = vld [vmem:[#allocation61_spill] sm:$0xff] }
 0x598   :  { %1615 = vmatprep.subr.mxu0 %v7125_v54  ;;  %1686 = vmatprep.subr.mxu1 %v7126_v13  ;;  %v7133_v54 = vld [vmem:[#allocation63_spill] sm:$0xff] }
 0x599   :  { %1616 = vmatpush1.msra.mxu0 %v7127_v25  ;;  %1649 = vmatprep.mubr.f32.mxu0 %v7128_v23 }
 0x59a   :  { %1687 = vmatpush1.msra.mxu1 %v7129_v50  ;;  %1720 = vmatprep.mubr.f32.mxu1 %v7128_v23 }
 0x59b   :  { %1831 = vmatprep.subr.mxu1 %v7130_v12  ;;  %1760 = vmatprep.subr.mxu0 %v7131_v14 }
 0x63a   :  { %v1476_v5 = vpop.f32.mrf.mxu0  ;;  %v1547_v13 = vpop.f32.mrf.mxu1 }
 0x63b   :  { %v1552_v9 = vadd.f32 %v1476_v5, %v7132_v6  ;;  %v1554_v23 = vadd.f32 %v1547_v13, %v7135_v10 }
 0x63c   :  { %v1478_v53 = vpop.f32.mrf.mxu0  ;;  %v1549_v49 = vpop.f32.mrf.mxu1 }
 0x63d   :  { %v3962_v7 = vmul.f32 -1.442695, %v1552_v9  ;;  %v1553_v8 = vadd.f32 %v1478_v53, %v7133_v54  ;;  %v1555_v50 = vadd.f32 %v1549_v49, %v7134_v62 }
 0x63f   :  { %4194 = vpow2.f32 %v3962_v7  ;;  %v3963_v25 = vmul.f32 -1.442695, %v1553_v8  ;;  %v3964_v48 = vmul.f32 -1.442695, %v1555_v50 }
 0x641   :  { %4196 = vpow2.f32 %v3963_v25 }
 0x642   :  { %4198 = vtanh.f32 %v1554_v23  ;;  %v2093_v23 = vld [vmem:[#allocation11 + $0x1e0] sm:$0xff] }
 0x643   :  { %4200 = vpow2.f32 %v3964_v48 }
 0x64c   :  { %v4195_v12 = vpop.eup %4194 }
 0x64d   :  { %v1559_v46 = vadd.f32 1.0, %v4195_v12  ;;  %v2090_v12 = vld [vmem:[#allocation11 + $0x1c8] sm:$0xff] }
 0x64e   :  { %v4197_v14 = vpop.eup %4196 }
 0x64f   :  { %4202 = vrcp.f32 %v1559_v46  ;;  %v1565_v5 = vadd.f32 1.0, %v4197_v14  ;;  %v4199_v9 = vpop.eup %4198  ;;  %v2089_v14 = vld [vmem:[#allocation11 + $0x1c0] sm:$0xff] }
 0x650   :  { %v4201_v6 = vpop.eup %4200 }
 0x651   :  { %4204 = vrcp.f32 %v1565_v5  ;;  %v1572_v54 = vadd.f32 1.0, %v4201_v6  ;;  %v2086_v5 = vld [vmem:[#allocation11 + $0x1a8] sm:$0xff] }
 0x652   :  { %v2082_v6 = vld [vmem:[#allocation11 + $0x188] sm:$0xff] }
 0x653   :  { %4206 = vrcp.f32 %v1572_v54  ;;  %v2074_v54 = vld [vmem:[#allocation11 + $0x148] sm:$0xff] }
 0x65c   :  { %v4203_v7 = vpop.eup %4202 }
 0x65d   :  { %v1576_v53 = vmul.f32 %v4203_v7, %v4199_v9  ;;  %v2085_v9 = vld [vmem:[#allocation11 + $0x1a0] sm:$0xff] }
 0x65e   :  { %v4205_v8 = vpop.eup %4204  ;;  %v2081_v7 = vld [vmem:[#allocation11 + $0x180] sm:$0xff] }
 0x65f   :  { %v1575_v25 = vmul.f32 %v4205_v8, %v5572_v20  ;;  %v2077_v8 = vld [vmem:[#allocation11 + $0x160] sm:$0xff] }
 0x660   :  { %v4207_v50 = vpop.eup %4206 }
 0x661   :  { %v5650_v49 = vadd.f32 %v1576_v53, %v1575_v25  ;;  %v2078_v53 = vld [vmem:[#allocation11 + $0x168] sm:$0xff]  ;;  %v2073_v25 = vld [vmem:[#allocation11 + $0x140] sm:$0xff] }
 0x663   :  { %4208 = vtanh.f32 %v5650_v49 }
 0x670   :  { %v4209_v10 = vpop.eup %4208 }
 0x671   :  { %v5653_v62 = vmul.f32 %v4209_v10, %v4207_v50  ;;  %v2069_v50 = vld [vmem:[#allocation11 + $0x120] sm:$0xff]  ;;  %v2066_v10 = vld [vmem:[#allocation11 + $0x108] sm:$0xff] }
 0x673   :  { %1650 = vmatmul.mubr.f32.vlgmr.msra.gmra.mxu0 %v5653_v62  ;;  %1721 = vmatmul.mubr.f32.vlgmr.msra.gmra.mxu1 %v5653_v62 }
 0x674   :  { %1832 = vmatpush1.msra.mxu1 %v5302_v0  ;;  %1761 = vmatpush1.msra.mxu0 %v5299_v29  ;;  %v7138_v29 = vld [vmem:[#allocation28_spill] sm:$0xff]  ;;  %v7139_v0 = vld [vmem:[#allocation31_spill] sm:$0xff] }
 0x675   :  { %1833 = vmatprep.subr.mxu1 %v5308_v59  ;;  %1762 = vmatprep.subr.mxu0 %v5305_v38  ;;  %v7140_v38 = vld [vmem:[#allocation30_spill] sm:$0xff]  ;;  %v7141_v59 = vld [vmem:[#allocation33_spill] sm:$0xff] }
 0x676   :  { %1834 = vmatpush1.msra.mxu1 %v5314_v56  ;;  %1763 = vmatpush1.msra.mxu0 %v5311_v57  ;;  %v7142_v57 = vld [vmem:[#allocation32_spill] sm:$0xff]  ;;  %v7143_v56 = vld [vmem:[#allocation35_spill] sm:$0xff] }
 0x677   :  { %1835 = vmatprep.subr.mxu1 %v5320_v3  ;;  %1764 = vmatprep.subr.mxu0 %v5317_v55  ;;  %v7144_v55 = vld [vmem:[#allocation34_spill] sm:$0xff]  ;;  %v7145_v3 = vld [vmem:[#allocation37_spill] sm:$0xff] }
 0x678   :  { %1836 = vmatpush1.msra.mxu1 %v5326_v60  ;;  %1765 = vmatpush1.msra.mxu0 %v5323_v2  ;;  %v7146_v2 = vld [vmem:[#allocation36_spill] sm:$0xff]  ;;  %v7147_v60 = vld [vmem:[#allocation39_spill] sm:$0xff] }
 0x679   :  { %1837 = vmatprep.subr.mxu1 %v5332_v11  ;;  %1766 = vmatprep.subr.mxu0 %v5329_v58  ;;  %v7148_v58 = vld [vmem:[#allocation38_spill] sm:$0xff]  ;;  %v7149_v11 = vld [vmem:[#allocation41_spill] sm:$0xff] }
 0x67a   :  { %1838 = vmatpush1.msra.mxu1 %v5338_v27  ;;  %1767 = vmatpush1.msra.mxu0 %v5335_v47  ;;  %v7150_v47 = vld [vmem:[#allocation40_spill] sm:$0xff]  ;;  %v7151_v27 = vld [vmem:[#allocation43_spill] sm:$0xff] }
 0x67b   :  { %1839 = vmatprep.subr.mxu1 %v5344_v30  ;;  %1768 = vmatprep.subr.mxu0 %v5341_v28  ;;  %v7152_v28 = vld [vmem:[#allocation42_spill] sm:$0xff]  ;;  %v7153_v30 = vmov 0.0  }
 0x67c   :  { %1840 = vmatpush1.msra.mxu1 %v7088_v16  ;;  %1769 = vmatpush1.msra.mxu0 %v7087_v15 }
 0x67d   :  { %1841 = vmatprep.subr.mxu1 %v5356_v51  ;;  %1770 = vmatprep.subr.mxu0 %v5353_v63  ;;  %v7154_v63 = vld [vmem:[#allocation65_spill] sm:$0xff] }
 0x67e   :  { %1842 = vmatpush1.msra.mxu1 %v5362_v61  ;;  %1771 = vmatpush1.msra.mxu0 %v5359_v52  ;;  %v7136_v61 = vld [vmem:[#allocation48_spill] sm:$0xff]  ;;  %v7137_v52 = vld [vmem:[#allocation29_spill] sm:$0xff] }
 0x67f   :  { %1843 = vmatprep.subr.mxu1 %v5368_v4  ;;  %1772 = vmatprep.subr.mxu0 %v5365_v31  ;;  %v2094_v31 = vld [vmem:[#allocation11 + $0x1e8] sm:$0xff] }
 0x680   :  { %1844 = vmatpush1.msra.mxu1 %v5452_v18  ;;  %1773 = vmatpush1.msra.mxu0 %v5449_v17  ;;  %v7155_v17 = vld [vmem:[#allocation67_spill] sm:$0xff] }
 0x681   :  { %1845 = vmatprep.subr.mxu1 %v5458_v21  ;;  %1774 = vmatprep.subr.mxu0 %v5455_v19 }
 0x682   :  { %1846 = vmatpush1.msra.mxu1 %v5464_v24  ;;  %1775 = vmatpush1.msra.mxu0 %v5461_v22  ;;  %v7156_v24 = vld [vmem:[#allocation68_spill] sm:$0xff] }
 0x683   :  { %1847 = vmatprep.subr.mxu1 %v5470_v32  ;;  %1776 = vmatprep.subr.mxu0 %v5467_v1  ;;  %v7157_v32 = vld [vmem:[#allocation66_spill] sm:$0xff] }
 0x684   :  { %1848 = vmatpush1.msra.mxu1 %v5476_v34  ;;  %1777 = vmatpush1.msra.mxu0 %v5473_v33 }
 0x685   :  { %1849 = vmatprep.subr.mxu1 %v5482_v36  ;;  %1778 = vmatprep.subr.mxu0 %v5479_v35 }
 0x686   :  { %1850 = vmatpush1.msra.mxu1 %v5488_v39  ;;  %1779 = vmatpush1.msra.mxu0 %v5485_v37 }
 0x687   :  { %1851 = vmatprep.subr.mxu1 %v5494_v41  ;;  %1780 = vmatprep.subr.mxu0 %v5491_v40 }
 0x688   :  { %1852 = vmatpush1.msra.mxu1 %v5500_v43  ;;  %1781 = vmatpush1.msra.mxu0 %v5497_v42 }
 0x689   :  { %1853 = vmatprep.subr.mxu1 %v5506_v45  ;;  %1782 = vmatprep.subr.mxu0 %v5503_v44 }
 0x68a   :  { %1854 = vmatpush1.msra.mxu1 %v7112_v26  ;;  %1783 = vmatpush1.msra.mxu0 %v7136_v61  ;;  %v2065_v61 = vld [vmem:[#allocation11 + $0x100] sm:$0xff] }
 0x68b   :  { %1855 = vmatprep.subr.mxu1 %v7137_v52  ;;  %1784 = vmatprep.subr.mxu0 %v7138_v29  ;;  %v2062_v52 = vld [vmem:[#allocation11 + $0xe8] sm:$0xff]  ;;  %v2061_v29 = vld [vmem:[#allocation11 + $0xe0] sm:$0xff] }
 0x68c   :  { %1856 = vmatpush1.msra.mxu1 %v7139_v0  ;;  %1785 = vmatpush1.msra.mxu0 %v7140_v38  ;;  %v2058_v0 = vld [vmem:[#allocation11 + $0xc8] sm:$0xff]  ;;  %v2057_v38 = vld [vmem:[#allocation11 + $0xc0] sm:$0xff] }
 0x68d   :  { %1857 = vmatprep.subr.mxu1 %v7141_v59  ;;  %1786 = vmatprep.subr.mxu0 %v7142_v57  ;;  %v2054_v59 = vld [vmem:[#allocation11 + $0xa8] sm:$0xff]  ;;  %v2053_v57 = vld [vmem:[#allocation11 + $0xa0] sm:$0xff] }
 0x68e   :  { %1858 = vmatpush1.msra.mxu1 %v7143_v56  ;;  %1787 = vmatpush1.msra.mxu0 %v7144_v55  ;;  %v2050_v56 = vld [vmem:[#allocation11 + $0x88] sm:$0xff]  ;;  %v2049_v55 = vld [vmem:[#allocation11 + $0x80] sm:$0xff] }
 0x68f   :  { %1859 = vmatprep.subr.mxu1 %v7145_v3  ;;  %1788 = vmatprep.subr.mxu0 %v7146_v2  ;;  %v2046_v3 = vld [vmem:[#allocation11 + $0x68] sm:$0xff]  ;;  %v2045_v2 = vld [vmem:[#allocation11 + $0x60] sm:$0xff] }
 0x690   :  { %1860 = vmatpush1.msra.mxu1 %v7147_v60  ;;  %1789 = vmatpush1.msra.mxu0 %v7148_v58  ;;  %v2042_v60 = vld [vmem:[#allocation11 + $0x48] sm:$0xff]  ;;  %v2041_v58 = vld [vmem:[#allocation11 + $0x40] sm:$0xff] }
 0x691   :  { %1861 = vmatprep.subr.mxu1 %v7149_v11  ;;  %1790 = vmatprep.subr.mxu0 %v7150_v47  ;;  %v2038_v11 = vld [vmem:[#allocation11 + $0x28] sm:$0xff]  ;;  %v2037_v47 = vld [vmem:[#allocation11 + $0x20] sm:$0xff] }
 0x692   :  { %1862 = vmatpush1.msra.mxu1 %v7151_v27  ;;  %1791 = vmatpush1.msra.mxu0 %v7152_v28  ;;  %v2034_v27 = vld [vmem:[#allocation11 + $0x8] sm:$0xff]  ;;  %v2033_v28 = vld [vmem:[#allocation11] sm:$0xff] }
 0x693   :  { %1824 = vmatprep.mubr.f32.mxu0 %v7153_v30  ;;  %1895 = vmatprep.mubr.f32.mxu1 %v7153_v30 }
 0x694   :  { %4031 = vmatprep.subr.mxu0 %v7153_v30  ;;  %2119 = vmatprep.subr.mxu1 %v2094_v31  ;;  %v7158_v31 = vld [vmem:[#allocation73_spill] sm:$0xff] }
 0x733   :  { %v1651_v4 = vpop.f32.mrf.mxu0  ;;  %v1722_v19 = vpop.f32.mrf.mxu1 }
 0x734   :  { %v1727_v51 = vadd.f32 %v1651_v4, %v7154_v63  ;;  %v1729_v33 = vadd.f32 %v1722_v19, %v7157_v32  ;;  %v7159_v4 = vld [vmem:[#allocation24_spill] sm:$0xff]  ;;  %v7160_v63 = vld [vmem:[#allocation27_spill] sm:$0xff]  ;;  %v5751_v19 = vld [vmem:[#allocation13 + $0x1e8] sm:$0xff] }
 0x735   :  { %v1653_v15 = vpop.f32.mrf.mxu0  ;;  %v1724_v22 = vpop.f32.mrf.mxu1  ;;  %v1942_v32 = vld [vmem:[#allocation14 + $0x58] sm:$0xff] }
 0x736   :  { %v3965_v16 = vmul.f32 -1.442695, %v1727_v51  ;;  %v1728_v18 = vadd.f32 %v1653_v15, %v7155_v17  ;;  %v1730_v1 = vadd.f32 %v1724_v22, %v7156_v24  ;;  %v7161_v51 = vld [vmem:[#allocation47_spill] sm:$0xff]  ;;  %v7162_v15 = vld [vmem:[#allocation44_spill] sm:$0xff]  ;;  %v1945_v17 = vld [vmem:[#allocation14 + $0x70] sm:$0xff] }
 0x737   :  { %v1943_v22 = vld [vmem:[#allocation14 + $0x60] sm:$0xff]  ;;  %v5758_v24 = vld [vmem:[#allocation13 + $0x1c8] sm:$0xff] }
 0x738   :  { %4210 = vpow2.f32 %v3965_v16  ;;  %v3966_v21 = vmul.f32 -1.442695, %v1728_v18  ;;  %v3967_v34 = vmul.f32 -1.442695, %v1730_v1  ;;  %v1946_v16 = vld [vmem:[#allocation14 + $0x78] sm:$0xff]  ;;  %v1944_v18 = vld [vmem:[#allocation14 + $0x68] sm:$0xff] }
 0x739   :  { %v5761_v1 = vld [vmem:[#allocation13 + $0x1c0] sm:$0xff] }
 0x73a   :  { %4212 = vpow2.f32 %v3966_v21  ;;  %v5754_v21 = vld [vmem:[#allocation13 + $0x1e0] sm:$0xff] }
 0x73b   :  { %4214 = vtanh.f32 %v1729_v33  ;;  %v5765_v33 = vld [vmem:[#allocation13 + $0x1a8] sm:$0xff] }
 0x73c   :  { %4216 = vpow2.f32 %v3967_v34  ;;  %v5768_v34 = vld [vmem:[#allocation13 + $0x1a0] sm:$0xff] }
 0x745   :  { %v4211_v35 = vpop.eup %4210 }
 0x746   :  { %v1734_v36 = vadd.f32 1.0, %v4211_v35  ;;  %v1941_v35 = vld [vmem:[#allocation14 + $0x50] sm:$0xff] }
 0x747   :  { %v4213_v37 = vpop.eup %4212 }
 0x748   :  { %4218 = vrcp.f32 %v1734_v36  ;;  %v1740_v39 = vadd.f32 1.0, %v4213_v37  ;;  %v4215_v40 = vpop.eup %4214  ;;  %v5772_v36 = vld [vmem:[#allocation13 + $0x188] sm:$0xff]  ;;  %v5775_v37 = vld [vmem:[#allocation13 + $0x180] sm:$0xff] }
 0x749   :  { %v4217_v41 = vpop.eup %4216 }
 0x74a   :  { %4220 = vrcp.f32 %v1740_v39  ;;  %v1747_v45 = vadd.f32 1.0, %v4217_v41  ;;  %v1940_v39 = vld [vmem:[#allocation14 + $0x48] sm:$0xff]  ;;  %v5782_v41 = vld [vmem:[#allocation13 + $0x160] sm:$0xff] }
 0x74c   :  { %4222 = vrcp.f32 %v1747_v45  ;;  %v1938_v45 = vld [vmem:[#allocation14 + $0x38] sm:$0xff] }
 0x755   :  { %v4219_v42 = vpop.eup %4218 }
 0x756   :  { %v1751_v43 = vmul.f32 %v4219_v42, %v4215_v40  ;;  %v5779_v40 = vld [vmem:[#allocation13 + $0x168] sm:$0xff]  ;;  %v1939_v42 = vld [vmem:[#allocation14 + $0x40] sm:$0xff] }
 0x757   :  { %v4221_v44 = vpop.eup %4220 }
 0x758   :  { %v1750_v46 = vmul.f32 %v4221_v44, %v5650_v49  ;;  %v2070_v49 = vld [vmem:[#allocation11 + $0x128] sm:$0xff]  ;;  %v5789_v44 = vld [vmem:[#allocation13 + $0x140] sm:$0xff] }
 0x759   :  { %v4223_v26 = vpop.eup %4222 }
 0x75a   :  { %v5727_v20 = vadd.f32 %v1751_v43, %v1750_v46  ;;  %v5786_v43 = vld [vmem:[#allocation13 + $0x148] sm:$0xff] }
 0x75b   :  { %v5793_v46 = vld [vmem:[#allocation13 + $0x128] sm:$0xff] }
 0x75c   :  { %4224 = vtanh.f32 %v5727_v20 }
 0x769   :  { %v4225_v48 = vpop.eup %4224 }
 0x76a   :  { %v5730_v13 = vmul.f32 %v4225_v48, %v4223_v26  ;;  %v5796_v26 = vld [vmem:[#allocation13 + $0x120] sm:$0xff]  ;;  %v1937_v48 = vld [vmem:[#allocation14 + $0x30] sm:$0xff] }
 0x76c   :  { %1825 = vmatmul.mubr.f32.vlgmr.msra.gmra.mxu0 %v5730_v13  ;;  %1896 = vmatmul.mubr.f32.vlgmr.msra.gmra.mxu1 %v5730_v13 }
 0x76d   :  { %2120 = vmatpush1.msra.mxu1 %v2093_v23  ;;  %2183 = vmatprep.mubr.f32.mxu1 %v7153_v30  ;;  %v5800_v23 = vld [vmem:[#allocation13 + $0x108] sm:$0xff] }
 0x76e   :  { %2121 = vmatprep.subr.mxu1 %v2090_v12  ;;  %4032 = vmatpush3.msra.mxu0 %v1946_v16  ;;  %v5803_v12 = vld [vmem:[#allocation13 + $0x100] sm:$0xff] }
 0x76f   :  { %2122 = vmatpush1.msra.mxu1 %v2089_v14  ;;  %4033 = vmatprep.subr.mxu0 %v7153_v30  ;;  %v1936_v14 = vld [vmem:[#allocation14 + $0x28] sm:$0xff] }
 0x770   :  { %2123 = vmatprep.subr.mxu1 %v2086_v5  ;;  %4034 = vmatpush3.msra.mxu0 %v1945_v17  ;;  %v5807_v5 = vld [vmem:[#allocation13 + $0xe8] sm:$0xff] }
 0x771   :  { %2124 = vmatpush1.msra.mxu1 %v2085_v9  ;;  %4035 = vmatprep.subr.mxu0 %v7153_v30  ;;  %v5810_v9 = vld [vmem:[#allocation13 + $0xe0] sm:$0xff] }
 0x772   :  { %2125 = vmatprep.subr.mxu1 %v2082_v6  ;;  %4036 = vmatpush3.msra.mxu0 %v1944_v18  ;;  %v1935_v6 = vld [vmem:[#allocation14 + $0x20] sm:$0xff] }
 0x773   :  { %2126 = vmatpush1.msra.mxu1 %v2081_v7  ;;  %4037 = vmatprep.subr.mxu0 %v7153_v30  ;;  %v5814_v7 = vld [vmem:[#allocation13 + $0xc8] sm:$0xff] }
 0x774   :  { %2127 = vmatprep.subr.mxu1 %v2078_v53  ;;  %4038 = vmatpush3.msra.mxu0 %v1943_v22  ;;  %v5817_v53 = vld [vmem:[#allocation13 + $0xc0] sm:$0xff] }
 0x775   :  { %2128 = vmatpush1.msra.mxu1 %v2077_v8  ;;  %4039 = vmatprep.subr.mxu0 %v7153_v30  ;;  %v1934_v8 = vld [vmem:[#allocation14 + $0x18] sm:$0xff] }
 0x776   :  { %2129 = vmatprep.subr.mxu1 %v2074_v54  ;;  %4040 = vmatpush3.msra.mxu0 %v1942_v32  ;;  %v5821_v54 = vld [vmem:[#allocation13 + $0xa8] sm:$0xff]  ;;  %v7176_v32 = vld [vmem:[#allocation72_spill] sm:$0xff] }
 0x777   :  { %2130 = vmatpush1.msra.mxu1 %v2073_v25  ;;  %4041 = vmatprep.subr.mxu0 %v7153_v30  ;;  %v5824_v25 = vld [vmem:[#allocation13 + $0xa0] sm:$0xff] }
 0x778   :  { %2131 = vmatprep.subr.mxu1 %v2070_v49  ;;  %4042 = vmatpush3.msra.mxu0 %v1941_v35  ;;  %7163 = vst [vmem:[#allocation49_spill] sm:$0xff] %v5824_v25  ;;  %v1933_v49 = vld [vmem:[#allocation14 + $0x10] sm:$0xff] }
 0x779   :  { %2132 = vmatpush1.msra.mxu1 %v2069_v50  ;;  %4043 = vmatprep.subr.mxu0 %v7153_v30  ;;  %v5828_v50 = vld [vmem:[#allocation13 + $0x88] sm:$0xff] }
 0x77a   :  { %2133 = vmatprep.subr.mxu1 %v2066_v10  ;;  %4044 = vmatpush3.msra.mxu0 %v1940_v39  ;;  %7164 = vst [vmem:[#allocation51_spill] sm:$0xff] %v5828_v50  ;;  %v5831_v10 = vld [vmem:[#allocation13 + $0x80] sm:$0xff]  ;;  %v7177_v39 = vld [vmem:[#allocation70_spill] sm:$0xff] }
 0x77b   :  { %2134 = vmatpush1.msra.mxu1 %v2065_v61  ;;  %4045 = vmatprep.subr.mxu0 %v7153_v30  ;;  %7165 = vst [vmem:[#allocation52_spill] sm:$0xff] %v5831_v10  ;;  %v1932_v61 = vld [vmem:[#allocation14 + $0x8] sm:$0xff] }
 0x77c   :  { %2135 = vmatprep.subr.mxu1 %v2062_v52  ;;  %4046 = vmatpush3.msra.mxu0 %v1939_v42  ;;  %v5835_v52 = vld [vmem:[#allocation13 + $0x68] sm:$0xff] }
 0x77d   :  { %2136 = vmatpush1.msra.mxu1 %v2061_v29  ;;  %4047 = vmatprep.subr.mxu0 %v7153_v30  ;;  %7166 = vst [vmem:[#allocation50_spill] sm:$0xff] %v5835_v52  ;;  %v5838_v29 = vld [vmem:[#allocation13 + $0x60] sm:$0xff] }
 0x77e   :  { %2137 = vmatprep.subr.mxu1 %v2058_v0  ;;  %4048 = vmatpush3.msra.mxu0 %v1938_v45  ;;  %7167 = vst [vmem:[#allocation53_spill] sm:$0xff] %v5838_v29  ;;  %v1931_v0 = vld [vmem:[#allocation14] sm:$0xff] }
 0x77f   :  { %2138 = vmatpush1.msra.mxu1 %v2057_v38  ;;  %4049 = vmatprep.subr.mxu0 %v7153_v30  ;;  %v5842_v38 = vld [vmem:[#allocation13 + $0x48] sm:$0xff] }
 0x780   :  { %2139 = vmatprep.subr.mxu1 %v2054_v59  ;;  %4050 = vmatpush3.msra.mxu0 %v1937_v48  ;;  %7168 = vst [vmem:[#allocation55_spill] sm:$0xff] %v5842_v38  ;;  %v2096_v59 = vld [vmem:[#allocation11 + $0x1f8] sm:$0xff] }
 0x781   :  { %2140 = vmatpush1.msra.mxu1 %v2053_v57  ;;  %4051 = vmatprep.subr.mxu0 %v7153_v30  ;;  %v5845_v57 = vld [vmem:[#allocation13 + $0x40] sm:$0xff] }
 0x782   :  { %2141 = vmatprep.subr.mxu1 %v2050_v56  ;;  %4052 = vmatpush3.msra.mxu0 %v1936_v14  ;;  %7169 = vst [vmem:[#allocation56_spill] sm:$0xff] %v5845_v57  ;;  %v5849_v56 = vld [vmem:[#allocation13 + $0x28] sm:$0xff] }
 0x783   :  { %2142 = vmatpush1.msra.mxu1 %v2049_v55  ;;  %4053 = vmatprep.subr.mxu0 %v7153_v30  ;;  %7170 = vst [vmem:[#allocation54_spill] sm:$0xff] %v5849_v56  ;;  %v5852_v55 = vld [vmem:[#allocation13 + $0x20] sm:$0xff] }
 0x784   :  { %2143 = vmatprep.subr.mxu1 %v2046_v3  ;;  %4054 = vmatpush3.msra.mxu0 %v1935_v6  ;;  %7171 = vst [vmem:[#allocation22_spill] sm:$0xff] %v5852_v55  ;;  %v5855_v3 = vld [vmem:[#allocation13 + $0x8] sm:$0xff] }
 0x785   :  { %2144 = vmatpush1.msra.mxu1 %v2045_v2  ;;  %4055 = vmatprep.subr.mxu0 %v7153_v30  ;;  %7172 = vst [vmem:[#allocation23_spill] sm:$0xff] %v5855_v3  ;;  %v5858_v2 = vld [vmem:[#allocation13] sm:$0xff] }
 0x786   :  { %2145 = vmatprep.subr.mxu1 %v2042_v60  ;;  %4056 = vmatpush3.msra.mxu0 %v1934_v8  ;;  %7173 = vst [vmem:[#allocation57_spill] sm:$0xff] %v5858_v2 }
 0x787   :  { %2146 = vmatpush1.msra.mxu1 %v2041_v58  ;;  %4057 = vmatprep.subr.mxu0 %v7153_v30  ;;  %v7174_v58 = vld [vmem:[#allocation69_spill] sm:$0xff] }
 0x788   :  { %2147 = vmatprep.subr.mxu1 %v2038_v11  ;;  %4058 = vmatpush3.msra.mxu0 %v1933_v49 }
 0x789   :  { %2148 = vmatpush1.msra.mxu1 %v2037_v47  ;;  %4059 = vmatprep.subr.mxu0 %v7153_v30 }
 0x78a   :  { %2149 = vmatprep.subr.mxu1 %v2034_v27  ;;  %4060 = vmatpush3.msra.mxu0 %v1932_v61 }
 0x78b   :  { %2150 = vmatpush1.msra.mxu1 %v2033_v28  ;;  %4061 = vmatprep.subr.mxu0 %v7153_v30  ;;  %v7175_v28 = vld [vmem:[#allocation71_spill] sm:$0xff] }
 0x78c   :  { %2184 = vmatmul.mubr.f32.vlgmr.msra.gmra.mxu1 %v7158_v31  ;;  %2445 = vmatprep.subr.mxu1 %v5751_v19 }
 0x78d   :  { %2189 = vmatprep.mubr.f32.mxu1 %v7153_v30  ;;  %2446 = vmatpush1.msra.mxu1 %v5754_v21 }
 0x78e   :  { %2447 = vmatprep.subr.mxu1 %v5758_v24  ;;  %4062 = vmatpush3.msra.mxu0 %v1931_v0 }
 0x78f   :  { %2448 = vmatpush1.msra.mxu1 %v5761_v1  ;;  %4063 = vmatprep.mubr.msk.f32.mxu0 %vm4659_vm0, %v7153_v30 }
 0x790   :  { %2190 = vmatmul.mubr.f32.gmra.mxu1 %v7159_v4  ;;  %2449 = vmatprep.subr.mxu1 %v5765_v33 }
 0x791   :  { %2195 = vmatprep.mubr.f32.mxu1 %v7153_v30  ;;  %2450 = vmatpush1.msra.mxu1 %v5768_v34 }
 0x792   :  { %2451 = vmatprep.subr.mxu1 %v5772_v36  ;;  %2232 = vmatprep.subr.mxu0 %v2096_v59 }
 0x793   :  { %2452 = vmatpush1.msra.mxu1 %v5775_v37 }
 0x794   :  { %2196 = vmatmul.mubr.f32.gmra.mxu1 %v7160_v63  ;;  %2453 = vmatprep.subr.mxu1 %v5779_v40 }
 0x795   :  { %2201 = vmatprep.mubr.f32.mxu1 %v7153_v30  ;;  %2454 = vmatpush1.msra.mxu1 %v5782_v41 }
 0x796   :  { %2455 = vmatprep.subr.mxu1 %v5786_v43 }
 0x797   :  { %2456 = vmatpush1.msra.mxu1 %v5789_v44 }
 0x798   :  { %2202 = vmatmul.mubr.f32.gmra.mxu1 %v7161_v51  ;;  %2457 = vmatprep.subr.mxu1 %v5793_v46 }
 0x799   :  { %2207 = vmatprep.mubr.f32.mxu1 %v7153_v30  ;;  %2458 = vmatpush1.msra.mxu1 %v5796_v26 }
 0x79a   :  { %2459 = vmatprep.subr.mxu1 %v5800_v23 }
 0x79b   :  { %2460 = vmatpush1.msra.mxu1 %v5803_v12 }
 0x79c   :  { %2208 = vmatmul.mubr.f32.gmra.mxu1 %v7162_v15  ;;  %2461 = vmatprep.subr.mxu1 %v5807_v5 }
 0x79d   :  { %2213 = vmatprep.mubr.f32.mxu1 %v7153_v30  ;;  %2462 = vmatpush1.msra.mxu1 %v5810_v9 }
 0x79e   :  { %2463 = vmatprep.subr.mxu1 %v5814_v7 }
 0x79f   :  { %2464 = vmatpush1.msra.mxu1 %v5817_v53 }
 0x7a0   :  { %2214 = vmatmul.mubr.f32.gmra.mxu1 %v5653_v62  ;;  %2465 = vmatprep.subr.mxu1 %v5821_v54 }
 0x7a1   :  { %2219 = vmatprep.mubr.f32.mxu1 %v7153_v30  ;;  %2466 = vmatpush1.msra.mxu1 %v5824_v25 }
 0x7a2   :  { %2467 = vmatprep.subr.mxu1 %v5828_v50 }
 0x7a3   :  { %2468 = vmatpush1.msra.mxu1 %v5831_v10 }
 0x7a4   :  { %2220 = vmatmul.mubr.f32.gmra.mxu1 %v5730_v13  ;;  %2469 = vmatprep.subr.mxu1 %v5835_v52 }
 0x7a5   :  { %2225 = vmatprep.mubr.f32.mxu1 %v7153_v30  ;;  %2470 = vmatpush1.msra.mxu1 %v5838_v29 }
 0x7a6   :  { %2471 = vmatprep.subr.mxu1 %v5842_v38 }
 0x7a7   :  { %2472 = vmatpush1.msra.mxu1 %v5845_v57 }
 0x7a8   :  { %2473 = vmatprep.subr.mxu1 %v5849_v56 }
 0x7a9   :  { %2474 = vmatpush1.msra.mxu1 %v5852_v55 }
 0x7aa   :  { %2475 = vmatprep.subr.mxu1 %v5855_v3 }
 0x7ab   :  { %2476 = vmatpush1.msra.mxu1 %v5858_v2 }
 0x7ac   :  { %2619 = vmatprep.subr.mxu1 %v5751_v19 }
 0x82c   :  { %v1826_v60 = vpop.f32.mrf.mxu0  ;;  %v1897_v17 = vpop.f32.mrf.mxu1 }
 0x82d   :  { %v1902_v11 = vadd.f32 %v1826_v60, %v7174_v58  ;;  %v1904_v42 = vadd.f32 %v1897_v17, %v7177_v39  ;;  %v2095_v17 = vld [vmem:[#allocation11 + $0x1f0] sm:$0xff] }
 0x82e   :  { %v1828_v47 = vpop.f32.mrf.mxu0  ;;  %v1899_v22 = vpop.f32.mrf.mxu1  ;;  %v2083_v39 = vld [vmem:[#allocation11 + $0x190] sm:$0xff] }
 0x82f   :  { %v3968_v27 = vmul.f32 -1.442695, %v1902_v11  ;;  %v1903_v16 = vadd.f32 %v1828_v47, %v7175_v28  ;;  %v1905_v35 = vadd.f32 %v1899_v22, %v7176_v32  ;;  %v2091_v22 = vld [vmem:[#allocation11 + $0x1d0] sm:$0xff]  ;;  %v2088_v32 = vld [vmem:[#allocation11 + $0x1b8] sm:$0xff] }
 0x831   :  { %4226 = vpow2.f32 %v3968_v27  ;;  %v3969_v18 = vmul.f32 -1.442695, %v1903_v16  ;;  %v3970_v45 = vmul.f32 -1.442695, %v1905_v35  ;;  %v2084_v35 = vld [vmem:[#allocation11 + $0x198] sm:$0xff] }
 0x833   :  { %4228 = vpow2.f32 %v3969_v18  ;;  %v2092_v18 = vld [vmem:[#allocation11 + $0x1d8] sm:$0xff] }
 0x834   :  { %4230 = vtanh.f32 %v1904_v42  ;;  %v2080_v42 = vld [vmem:[#allocation11 + $0x178] sm:$0xff] }
 0x835   :  { %4232 = vpow2.f32 %v3970_v45  ;;  %v2079_v45 = vld [vmem:[#allocation11 + $0x170] sm:$0xff] }
 0x83e   :  { %v4227_v48 = vpop.eup %4226 }
 0x83f   :  { %v1909_v14 = vadd.f32 1.0, %v4227_v48  ;;  %v2076_v48 = vld [vmem:[#allocation11 + $0x158] sm:$0xff] }
 0x840   :  { %v4229_v6 = vpop.eup %4228 }
 0x841   :  { %4234 = vrcp.f32 %v1909_v14  ;;  %v1915_v8 = vadd.f32 1.0, %v4229_v6  ;;  %v4231_v49 = vpop.eup %4230  ;;  %v2075_v14 = vld [vmem:[#allocation11 + $0x150] sm:$0xff]  ;;  %v2072_v6 = vld [vmem:[#allocation11 + $0x138] sm:$0xff] }
 0x842   :  { %v4233_v61 = vpop.eup %4232 }
 0x843   :  { %4236 = vrcp.f32 %v1915_v8  ;;  %v1922_v58 = vadd.f32 1.0, %v4233_v61  ;;  %v2071_v8 = vld [vmem:[#allocation11 + $0x130] sm:$0xff] }
 0x844   :  { %v2067_v61 = vld [vmem:[#allocation11 + $0x110] sm:$0xff] }
 0x845   :  { %4238 = vrcp.f32 %v1922_v58  ;;  %v2059_v58 = vld [vmem:[#allocation11 + $0xd0] sm:$0xff] }
 0x84e   :  { %v4235_v0 = vpop.eup %4234 }
 0x84f   :  { %v1926_v59 = vmul.f32 %v4235_v0, %v4231_v49  ;;  %v2068_v49 = vld [vmem:[#allocation11 + $0x118] sm:$0xff] }
 0x850   :  { %v4237_v60 = vpop.eup %4236  ;;  %v2064_v0 = vld [vmem:[#allocation11 + $0xf8] sm:$0xff] }
 0x851   :  { %v1925_v11 = vmul.f32 %v4237_v60, %v5727_v20  ;;  %v2087_v20 = vld [vmem:[#allocation11 + $0x1b0] sm:$0xff]  ;;  %v2060_v60 = vld [vmem:[#allocation11 + $0xd8] sm:$0xff] }
 0x852   :  { %v4239_v27 = vpop.eup %4238 }
 0x853   :  { %v1927_v47 = vadd.f32 %v1926_v59, %v1925_v11  ;;  %v2063_v59 = vld [vmem:[#allocation11 + $0xf0] sm:$0xff]  ;;  %v2056_v11 = vld [vmem:[#allocation11 + $0xb8] sm:$0xff] }
 0x855   :  { %4240 = vtanh.f32 %v1927_v47  ;;  %v2055_v47 = vld [vmem:[#allocation11 + $0xb0] sm:$0xff] }
 0x862   :  { %v4241_v28 = vpop.eup %4240 }
 0x863   :  { %v5868_v16 = vmul.f32 %v4241_v28, %v4239_v27  ;;  %v2052_v27 = vld [vmem:[#allocation11 + $0x98] sm:$0xff]  ;;  %v2051_v28 = vld [vmem:[#allocation11 + $0x90] sm:$0xff] }
 0x865   :  { %4064 = vmatmul.mubr.f32.vlgmr.msra.gmra.mxu0 %v5868_v16  ;;  %2226 = vmatmul.mubr.f32.gmra.mxu1 %v5868_v16 }
 0x866   :  { %2233 = vmatpush1.msra.mxu0 %v2095_v17  ;;  %2509 = vmatprep.mubr.f32.mxu1 %v7153_v30  ;;  %v2048_v17 = vld [vmem:[#allocation11 + $0x78] sm:$0xff] }
 0x867   :  { %2234 = vmatprep.subr.mxu0 %v2092_v18  ;;  %2296 = vmatprep.mubr.f32.mxu0 %v7153_v30  ;;  %v2047_v18 = vld [vmem:[#allocation11 + $0x70] sm:$0xff] }
 0x868   :  { %2235 = vmatpush1.msra.mxu0 %v2091_v22  ;;  %v2044_v22 = vld [vmem:[#allocation11 + $0x58] sm:$0xff] }
 0x869   :  { %2236 = vmatprep.subr.mxu0 %v2088_v32  ;;  %2510 = vmatmul.mubr.f32.vlgmr.msra.gmra.mxu1 %v7153_v30  ;;  %v2043_v32 = vld [vmem:[#allocation11 + $0x50] sm:$0xff] }
 0x86a   :  { %2237 = vmatpush1.msra.mxu0 %v2087_v20  ;;  %2620 = vmatpush1.msra.mxu1 %v5754_v21  ;;  %v2040_v20 = vld [vmem:[#allocation11 + $0x38] sm:$0xff] }
 0x86b   :  { %2238 = vmatprep.subr.mxu0 %v2084_v35  ;;  %2621 = vmatprep.subr.mxu1 %v5758_v24  ;;  %v2039_v35 = vld [vmem:[#allocation11 + $0x30] sm:$0xff] }
 0x86c   :  { %2239 = vmatpush1.msra.mxu0 %v2083_v39  ;;  %2622 = vmatpush1.msra.mxu1 %v5761_v1  ;;  %v2036_v39 = vld [vmem:[#allocation11 + $0x18] sm:$0xff] }
 0x86d   :  { %2240 = vmatprep.subr.mxu0 %v2080_v42  ;;  %2623 = vmatprep.subr.mxu1 %v5765_v33  ;;  %v2035_v42 = vld [vmem:[#allocation11 + $0x10] sm:$0xff] }
 0x86e   :  { %2241 = vmatpush1.msra.mxu0 %v2079_v45  ;;  %2624 = vmatpush1.msra.mxu1 %v5768_v34  ;;  %v5899_v45 = vld [vmem:[#allocation13 + $0x1f8] sm:$0xff] }
 0x86f   :  { %2242 = vmatprep.subr.mxu0 %v2076_v48  ;;  %2625 = vmatprep.subr.mxu1 %v5772_v36  ;;  %7178 = vst [vmem:[#allocation59_spill] sm:$0xff] %v5899_v45  ;;  %v5902_v48 = vld [vmem:[#allocation13 + $0x1f0] sm:$0xff] }
 0x870   :  { %2243 = vmatpush1.msra.mxu0 %v2075_v14  ;;  %2626 = vmatpush1.msra.mxu1 %v5775_v37  ;;  %v5905_v14 = vld [vmem:[#allocation13 + $0x1d8] sm:$0xff] }
 0x871   :  { %2244 = vmatprep.subr.mxu0 %v2072_v6  ;;  %2627 = vmatprep.subr.mxu1 %v5779_v40  ;;  %v5910_v6 = vld [vmem:[#allocation13 + $0x1d0] sm:$0xff] }
 0x872   :  { %2245 = vmatpush1.msra.mxu0 %v2071_v8  ;;  %2628 = vmatpush1.msra.mxu1 %v5782_v41  ;;  %v5914_v8 = vld [vmem:[#allocation13 + $0x1b8] sm:$0xff] }
 0x873   :  { %2246 = vmatprep.subr.mxu0 %v2068_v49  ;;  %2629 = vmatprep.subr.mxu1 %v5786_v43  ;;  %v5917_v49 = vld [vmem:[#allocation13 + $0x1b0] sm:$0xff] }
 0x874   :  { %2247 = vmatpush1.msra.mxu0 %v2067_v61  ;;  %2630 = vmatpush1.msra.mxu1 %v5789_v44  ;;  %v5921_v61 = vld [vmem:[#allocation13 + $0x198] sm:$0xff] }
 0x875   :  { %2248 = vmatprep.subr.mxu0 %v2064_v0  ;;  %2631 = vmatprep.subr.mxu1 %v5793_v46  ;;  %v5930_v0 = vld [vmem:[#allocation13 + $0x178] sm:$0xff] }
 0x876   :  { %2249 = vmatpush1.msra.mxu0 %v2063_v59  ;;  %2632 = vmatpush1.msra.mxu1 %v5796_v26  ;;  %v5933_v59 = vld [vmem:[#allocation13 + $0x170] sm:$0xff] }
 0x877   :  { %2250 = vmatprep.subr.mxu0 %v2060_v60  ;;  %2633 = vmatprep.subr.mxu1 %v5800_v23  ;;  %v5937_v60 = vld [vmem:[#allocation13 + $0x158] sm:$0xff] }
 0x878   :  { %2251 = vmatpush1.msra.mxu0 %v2059_v58  ;;  %2634 = vmatpush1.msra.mxu1 %v5803_v12  ;;  %v5946_v58 = vld [vmem:[#allocation13 + $0x138] sm:$0xff] }
 0x879   :  { %2252 = vmatprep.subr.mxu0 %v2056_v11  ;;  %2635 = vmatprep.subr.mxu1 %v5807_v5  ;;  %v5949_v11 = vld [vmem:[#allocation13 + $0x130] sm:$0xff] }
 0x87a   :  { %2253 = vmatpush1.msra.mxu0 %v2055_v47  ;;  %2636 = vmatpush1.msra.mxu1 %v5810_v9  ;;  %v5953_v47 = vld [vmem:[#allocation13 + $0x118] sm:$0xff] }
 0x87b   :  { %2254 = vmatprep.subr.mxu0 %v2052_v27  ;;  %2637 = vmatprep.subr.mxu1 %v5814_v7  ;;  %v5962_v27 = vld [vmem:[#allocation13 + $0xf8] sm:$0xff] }
 0x87c   :  { %2255 = vmatpush1.msra.mxu0 %v2051_v28  ;;  %2638 = vmatpush1.msra.mxu1 %v5817_v53  ;;  %v5965_v28 = vld [vmem:[#allocation13 + $0xf0] sm:$0xff] }
 0x87d   :  { %2256 = vmatprep.subr.mxu0 %v2048_v17  ;;  %2639 = vmatprep.subr.mxu1 %v5821_v54  ;;  %v5968_v17 = vld [vmem:[#allocation13 + $0xd8] sm:$0xff] }
 0x87e   :  { %2257 = vmatpush1.msra.mxu0 %v2047_v18  ;;  %2640 = vmatpush1.msra.mxu1 %v5824_v25  ;;  %v5979_v18 = vld [vmem:[#allocation13 + $0xb0] sm:$0xff] }
 0x87f   :  { %2258 = vmatprep.subr.mxu0 %v2044_v22  ;;  %2641 = vmatprep.subr.mxu1 %v5828_v50  ;;  %7180 = vst [vmem:[#allocation58_spill] sm:$0xff] %v5979_v18  ;;  %v5982_v22 = vld [vmem:[#allocation13 + $0x98] sm:$0xff] }
 0x880   :  { %2259 = vmatpush1.msra.mxu0 %v2043_v32  ;;  %2642 = vmatpush1.msra.mxu1 %v5831_v10  ;;  %7181 = vst [vmem:[#allocation46_spill] sm:$0xff] %v5982_v22  ;;  %v5990_v32 = vld [vmem:[#allocation13 + $0x78] sm:$0xff] }
 0x881   :  { %2260 = vmatprep.subr.mxu0 %v2040_v20  ;;  %2643 = vmatprep.subr.mxu1 %v5835_v52  ;;  %7183 = vst [vmem:[#allocation25_spill] sm:$0xff] %v5990_v32  ;;  %v5993_v20 = vld [vmem:[#allocation13 + $0x70] sm:$0xff] }
 0x882   :  { %2261 = vmatpush1.msra.mxu0 %v2039_v35  ;;  %2644 = vmatpush1.msra.mxu1 %v5838_v29  ;;  %7184 = vst [vmem:[#allocation61_spill] sm:$0xff] %v5993_v20  ;;  %v5996_v35 = vld [vmem:[#allocation13 + $0x58] sm:$0xff] }
 0x883   :  { %2262 = vmatprep.subr.mxu0 %v2036_v39  ;;  %2645 = vmatprep.subr.mxu1 %v5842_v38  ;;  %7185 = vst [vmem:[#allocation63_spill] sm:$0xff] %v5996_v35  ;;  %v6004_v39 = vld [vmem:[#allocation13 + $0x38] sm:$0xff] }
 0x884   :  { %2263 = vmatpush1.msra.mxu0 %v2035_v42  ;;  %2646 = vmatpush1.msra.mxu1 %v5845_v57  ;;  %7187 = vst [vmem:[#allocation62_spill] sm:$0xff] %v6004_v39  ;;  %v6007_v42 = vld [vmem:[#allocation13 + $0x30] sm:$0xff] }
 0x885   :  { %2297 = vmatmul.mubr.f32.vlgmr.msra.gmra.mxu0 %v7158_v31  ;;  %2516 = vmatprep.subr.mxu0 %v5899_v45  ;;  %v5926_v31 = vld [vmem:[#allocation13 + $0x190] sm:$0xff]  ;;  %7188 = vst [vmem:[#allocation48_spill] sm:$0xff] %v6007_v42 }
 0x886   :  { %2517 = vmatpush1.msra.mxu0 %v5902_v48  ;;  %2302 = vmatprep.mubr.f32.mxu0 %v7153_v30 }
 0x887   :  { %2518 = vmatprep.subr.mxu0 %v5905_v14  ;;  %2647 = vmatprep.subr.mxu1 %v5849_v56 }
 0x888   :  { %2519 = vmatpush1.msra.mxu0 %v5910_v6  ;;  %2648 = vmatpush1.msra.mxu1 %v5852_v55 }
 0x889   :  { %2303 = vmatmul.mubr.f32.gmra.mxu0 %v7159_v4  ;;  %2520 = vmatprep.subr.mxu0 %v5914_v8  ;;  %v5942_v4 = vld [vmem:[#allocation13 + $0x150] sm:$0xff] }
 0x88a   :  { %2521 = vmatpush1.msra.mxu0 %v5917_v49  ;;  %2308 = vmatprep.mubr.f32.mxu0 %v7153_v30 }
 0x88b   :  { %2522 = vmatprep.subr.mxu0 %v5921_v61  ;;  %2649 = vmatprep.subr.mxu1 %v5855_v3 }
 0x88c   :  { %2523 = vmatpush1.msra.mxu0 %v5926_v31  ;;  %2650 = vmatpush1.msra.mxu1 %v5858_v2  ;;  %v6010_v2 = vld [vmem:[#allocation13 + $0x18] sm:$0xff] }
 0x88d   :  { %2309 = vmatmul.mubr.f32.gmra.mxu0 %v7160_v63  ;;  %2524 = vmatprep.subr.mxu0 %v5930_v0  ;;  %v5958_v63 = vld [vmem:[#allocation13 + $0x110] sm:$0xff]  ;;  %7189 = vst [vmem:[#allocation29_spill] sm:$0xff] %v6010_v2 }
 0x88e   :  { %2525 = vmatpush1.msra.mxu0 %v5933_v59  ;;  %2314 = vmatprep.mubr.f32.mxu0 %v7153_v30 }
 0x88f   :  { %2526 = vmatprep.subr.mxu0 %v5937_v60  ;;  %2683 = vmatprep.mubr.f32.mxu1 %v7153_v30 }
 0x890   :  { %2527 = vmatpush1.msra.mxu0 %v5942_v4  ;;  %2793 = vmatprep.subr.mxu1 %v5751_v19  ;;  %v5976_v19 = vld [vmem:[#allocation13 + $0xb8] sm:$0xff] }
 0x891   :  { %2315 = vmatmul.mubr.f32.gmra.mxu0 %v7161_v51  ;;  %2528 = vmatprep.subr.mxu0 %v5946_v58  ;;  %v5972_v51 = vld [vmem:[#allocation13 + $0xd0] sm:$0xff]  ;;  %7179 = vst [vmem:[#allocation60_spill] sm:$0xff] %v5976_v19 }
 0x892   :  { %2529 = vmatpush1.msra.mxu0 %v5949_v11  ;;  %2320 = vmatprep.mubr.f32.mxu0 %v7153_v30 }
 0x893   :  { %2530 = vmatprep.subr.mxu0 %v5953_v47 }
 0x894   :  { %2531 = vmatpush1.msra.mxu0 %v5958_v63 }
 0x895   :  { %2321 = vmatmul.mubr.f32.gmra.mxu0 %v7162_v15  ;;  %2532 = vmatprep.subr.mxu0 %v5962_v27  ;;  %v5986_v15 = vld [vmem:[#allocation13 + $0x90] sm:$0xff] }
 0x896   :  { %2533 = vmatpush1.msra.mxu0 %v5965_v28  ;;  %2326 = vmatprep.mubr.f32.mxu0 %v7153_v30  ;;  %7182 = vst [vmem:[#allocation26_spill] sm:$0xff] %v5986_v15 }
 0x897   :  { %2534 = vmatprep.subr.mxu0 %v5968_v17 }
 0x898   :  { %2535 = vmatpush1.msra.mxu0 %v5972_v51 }
 0x899   :  { %2327 = vmatmul.mubr.f32.gmra.mxu0 %v5653_v62  ;;  %2536 = vmatprep.subr.mxu0 %v5976_v19  ;;  %v6000_v62 = vld [vmem:[#allocation13 + $0x50] sm:$0xff] }
 0x89a   :  { %2537 = vmatpush1.msra.mxu0 %v5979_v18  ;;  %2332 = vmatprep.mubr.f32.mxu0 %v7153_v30  ;;  %7186 = vst [vmem:[#allocation64_spill] sm:$0xff] %v6000_v62 }
 0x89b   :  { %2538 = vmatprep.subr.mxu0 %v5982_v22 }
 0x89c   :  { %2539 = vmatpush1.msra.mxu0 %v5986_v15 }
 0x89d   :  { %2333 = vmatmul.mubr.f32.gmra.mxu0 %v5730_v13  ;;  %2540 = vmatprep.subr.mxu0 %v5990_v32  ;;  %v6014_v13 = vld [vmem:[#allocation13 + $0x10] sm:$0xff] }
 0x89e   :  { %2541 = vmatpush1.msra.mxu0 %v5993_v20  ;;  %2338 = vmatprep.mubr.f32.mxu0 %v7153_v30  ;;  %7190 = vst [vmem:[#allocation28_spill] sm:$0xff] %v6014_v13 }
 0x89f   :  { %2542 = vmatprep.subr.mxu0 %v5996_v35 }
 0x8a0   :  { %2543 = vmatpush1.msra.mxu0 %v6000_v62 }
 0x8a1   :  { %2339 = vmatmul.mubr.f32.gmra.mxu0 %v5868_v16  ;;  %2544 = vmatprep.subr.mxu0 %v6004_v39  ;;  %v2185_v16 = vpop.f32.mrf.mxu1 }
 0x8a2   :  { %2545 = vmatpush1.msra.mxu0 %v6007_v42  ;;  %2580 = vmatprep.mubr.f32.mxu0 %v7153_v30 }
 0x8a3   :  { %2546 = vmatprep.subr.mxu0 %v6010_v2 }
 0x8a4   :  { %2547 = vmatpush1.msra.mxu0 %v6014_v13 }
 0x8a5   :  { %2581 = vmatmul.mubr.f32.vlgmr.msra.gmra.mxu0 %v7153_v30  ;;  %2690 = vmatprep.subr.mxu0 %v5899_v45 }
 0x8a6   :  { %2691 = vmatpush1.msra.mxu0 %v5902_v48  ;;  %2754 = vmatprep.mubr.f32.mxu0 %v7153_v30  ;;  %v2187_v30 = vpop.f32.mrf.mxu1 }
 0x8a7   :  { %2692 = vmatprep.subr.mxu0 %v5905_v14 }
 0x8a8   :  { %2693 = vmatpush1.msra.mxu0 %v5910_v6  ;;  %v6055_v3 = vpop.f32.mrf.mxu1 }
 0x8a9   :  { %2694 = vmatprep.subr.mxu0 %v5914_v8  ;;  %7191 = vst [vmem:[#allocation31_spill] sm:$0xff] %v6055_v3 }
 0x8aa   :  { %2695 = vmatpush1.msra.mxu0 %v5917_v49  ;;  %v6057_v55 = vpop.f32.mrf.mxu1 }
 0x8ab   :  { %2696 = vmatprep.subr.mxu0 %v5921_v61  ;;  %7192 = vst [vmem:[#allocation30_spill] sm:$0xff] %v6057_v55 }
 0x8ac   :  { %2697 = vmatpush1.msra.mxu0 %v5926_v31  ;;  %v6059_v56 = vpop.f32.mrf.mxu1 }
 0x8ad   :  { %2698 = vmatprep.subr.mxu0 %v5930_v0  ;;  %7193 = vst [vmem:[#allocation33_spill] sm:$0xff] %v6059_v56 }
 0x8ae   :  { %2699 = vmatpush1.msra.mxu0 %v5933_v59  ;;  %v6061_v57 = vpop.f32.mrf.mxu1 }
 0x8af   :  { %2700 = vmatprep.subr.mxu0 %v5937_v60  ;;  %7194 = vst [vmem:[#allocation32_spill] sm:$0xff] %v6061_v57 }
 0x8b0   :  { %2701 = vmatpush1.msra.mxu0 %v5942_v4 }
 0x8b1   :  { %2702 = vmatprep.subr.mxu0 %v5946_v58 }
 0x8b2   :  { %2703 = vmatpush1.msra.mxu0 %v5949_v11 }
 0x8b3   :  { %2704 = vmatprep.subr.mxu0 %v5953_v47 }
 0x8b4   :  { %2705 = vmatpush1.msra.mxu0 %v5958_v63 }
 0x8b5   :  { %2706 = vmatprep.subr.mxu0 %v5962_v27 }
 0x8b6   :  { %2707 = vmatpush1.msra.mxu0 %v5965_v28 }
 0x8b7   :  { %2708 = vmatprep.subr.mxu0 %v5968_v17 }
 0x8b8   :  { %2709 = vmatpush1.msra.mxu0 %v5972_v51 }
 0x8b9   :  { %2710 = vmatprep.subr.mxu0 %v5976_v19 }
 0x8ba   :  { %2711 = vmatpush1.msra.mxu0 %v5979_v18 }
 0x8bb   :  { %2712 = vmatprep.subr.mxu0 %v5982_v22 }
 0x8bc   :  { %2713 = vmatpush1.msra.mxu0 %v5986_v15 }
 0x8bd   :  { %2714 = vmatprep.subr.mxu0 %v5990_v32 }
 0x8be   :  { %2715 = vmatpush1.msra.mxu0 %v5993_v20 }
 0x8bf   :  { %2716 = vmatprep.subr.mxu0 %v5996_v35 }
 0x8c0   :  { %2717 = vmatpush1.msra.mxu0 %v6000_v62  ;;  %v6063_v62 = vpop.f32.mrf.mxu1 }
 0x8c1   :  { %2718 = vmatprep.subr.mxu0 %v6004_v39  ;;  %7195 = vst [vmem:[#allocation35_spill] sm:$0xff] %v6063_v62 }
 0x8c2   :  { %2719 = vmatpush1.msra.mxu0 %v6007_v42  ;;  %v6065_v39 = vpop.f32.mrf.mxu1 }
 0x8c3   :  { %2720 = vmatprep.subr.mxu0 %v6010_v2  ;;  %7196 = vst [vmem:[#allocation34_spill] sm:$0xff] %v6065_v39 }
 0x8c4   :  { %2721 = vmatpush1.msra.mxu0 %v6014_v13  ;;  %v3971_v13 = vld [vmem:[%s6758_s8] ss:$0 sm:$0xff]  ;;  %v6070_v2 = vpop.f32.mrf.mxu1 }
 0x8c5   :  { %2864 = vmatprep.subr.mxu0 %v5899_v45  ;;  %7197 = vst [vmem:[#allocation37_spill] sm:$0xff] %v6070_v2 }
 0x8c6   :  { %v6072_v3 = vpop.f32.mrf.mxu1 }
 0x8c7   :  { %7198 = vst [vmem:[#allocation36_spill] sm:$0xff] %v6072_v3 }
 0x8c8   :  { %v6074_v55 = vpop.f32.mrf.mxu1 }
 0x8c9   :  { %7199 = vst [vmem:[#allocation39_spill] sm:$0xff] %v6074_v55 }
 0x8ca   :  { %v6076_v56 = vpop.f32.mrf.mxu1 }
 0x8cb   :  { %7200 = vst [vmem:[#allocation38_spill] sm:$0xff] %v6076_v56 }
 0x8cc   :  { %v6078_v57 = vpop.f32.mrf.mxu1 }
 0x8cd   :  { %7201 = vst [vmem:[#allocation41_spill] sm:$0xff] %v6078_v57 }
 0x8ce   :  { %v6080_v62 = vpop.f32.mrf.mxu1 }
 0x8cf   :  { %7202 = vst [vmem:[#allocation40_spill] sm:$0xff] %v6080_v62 }
 0x925   :  { %v2020_v45 = vpop.f32.mrf.mxu0  ;;  %v6082_v39 = vpop.f32.mrf.mxu1 }
 0x926   :  { %v2021_v42 = vadd.f32 %v3971_v13, %v2020_v45  ;;  %7203 = vst [vmem:[#allocation43_spill] sm:$0xff] %v6082_v39  ;;  %v2097_v45 = vld [vmem:[%s6756_s6] sm:$0xf] }
 0x927   :  { %v4065_v35 = vpop.f32.mrf.mxu0  ;;  %v6084_v38 = vpop.f32.mrf.mxu1 }
 0x928   :  { %2024 = vst [vmem:[#allocation16] sm:$0xff] %v2021_v42  ;;  %7204 = vst [vmem:[#allocation42_spill] sm:$0xff] %v6084_v38  ;;  %v7205_v42 = vld [vmem:[#allocation45_spill] sm:$0xff] }
 0x929   :  { %v2511_v35 = vpop.f32.mrf.mxu1  ;;  %v7206_v13 = vsub.s32 1, %v7205_v42  ;;  %v7208_v55 = vsub.s32 0, %v7205_v42  ;;  %v7210_v38 = vsub.s32 2, %v7205_v42  ;;  %v7211_v15 = vsub.s32 3, %v7205_v42 }
 0x92b   :  { %v6091_v3 = vrot.slane %v2097_v45, %v7206_v13  ;;  %v6095_v56 = vrot.slane %v2097_v45, %v7208_v55  ;;  %v2513_v2 = vpop.f32.mrf.mxu1  ;;  %v2110_v20 = vrot.slane %v2097_v45, %v7210_v38  ;;  %v2114_v13 = vrot.slane %v2097_v45, %v7211_v15 }
 0x92d   :  { %7207 = vst [vmem:[#allocation65_spill] sm:$0xff] %v6091_v3  ;;  %7209 = vst [vmem:[#allocation67_spill] sm:$0xff] %v6095_v56  ;;  %v2188_v39 = vadd.f32 %v2187_v30, %v6091_v3  ;;  %v2186_v29 = vadd.f32 %v2185_v16, %v6095_v56 }
 0x92f   :  { %v2588_v52 = vadd.f32 %v2513_v2, %v2188_v39  ;;  %v2587_v22 = vadd.f32 %v2511_v35, %v2186_v29 }
 0x931   :  { %v3973_v25 = vmul.f32 -1.442695, %v2588_v52  ;;  %v3972_v30 = vmul.f32 -1.442695, %v2587_v22 }
 0x933   :  { %4242 = vpow2.f32 %v3973_v25 }
 0x934   :  { %4244 = vpow2.f32 %v3972_v30 }
 0x945   :  { %v2298_v57 = vpop.f32.mrf.mxu0 }
 0x947   :  { %v2300_v62 = vpop.f32.mrf.mxu0 }
 0x949   :  { %v2304_v32 = vpop.f32.mrf.mxu0 }
 0x94a   :  { %v6103_v10 = vadd.f32 %v2304_v32, %v2110_v20 }
 0x94b   :  { %v2306_v55 = vpop.f32.mrf.mxu0 }
 0x94c   :  { %v6105_v50 = vadd.f32 %v2306_v55, %v2114_v13  ;;  %v4243_v55 = vpop.eup %4242 }
 0x94d   :  { %v2310_v18 = vpop.f32.mrf.mxu0 }
 0x94e   :  { %v6107_v19 = vadd.f32 %v2310_v18, %v2110_v20 }
 0x94f   :  { %v2312_v3 = vpop.f32.mrf.mxu0 }
 0x950   :  { %7212 = vst [vmem:[#allocation68_spill] sm:$0xff] %v6107_v19  ;;  %v6109_v38 = vadd.f32 %v2312_v3, %v2114_v13 }
 0x951   :  { %v2316_v16 = vpop.f32.mrf.mxu0 }
 0x952   :  { %v6111_v2 = vadd.f32 %v2316_v16, %v2110_v20  ;;  %v4245_v16 = vpop.eup %4244 }
 0x953   :  { %v2318_v15 = vpop.f32.mrf.mxu0 }
 0x954   :  { %7213 = vst [vmem:[#allocation66_spill] sm:$0xff] %v6111_v2  ;;  %v6113_v32 = vadd.f32 %v2318_v15, %v2114_v13 }
 0x955   :  { %v2322_v29 = vpop.f32.mrf.mxu0 }
 0x956   :  { %7214 = vst [vmem:[#allocation73_spill] sm:$0xff] %v6113_v32  ;;  %v6115_v39 = vadd.f32 %v2322_v29, %v2110_v20  ;;  %v2600_v29 = vadd.f32 1.0, %v4243_v55  ;;  %v2299_v32 = vadd.f32 %v2298_v57, %v2110_v20 }
 0x957   :  { %v2324_v45 = vpop.f32.mrf.mxu0 }
 0x958   :  { %7215 = vst [vmem:[#allocation24_spill] sm:$0xff] %v6115_v39  ;;  %v6117_v35 = vadd.f32 %v2324_v45, %v2114_v13  ;;  %v2594_v45 = vadd.f32 1.0, %v4245_v16  ;;  %4246 = vrcp.f32 %v2600_v29 }
 0x959   :  { %v2328_v52 = vpop.f32.mrf.mxu0 }
 0x95a   :  { %7216 = vst [vmem:[#allocation27_spill] sm:$0xff] %v6117_v35  ;;  %v6119_v18 = vadd.f32 %v2328_v52, %v2110_v20  ;;  %4248 = vrcp.f32 %v2594_v45 }
 0x95b   :  { %v2330_v22 = vpop.f32.mrf.mxu0 }
 0x95c   :  { %7217 = vst [vmem:[#allocation47_spill] sm:$0xff] %v6119_v18  ;;  %v6121_v3 = vadd.f32 %v2330_v22, %v2114_v13  ;;  %v2301_v22 = vadd.f32 %v2300_v62, %v2114_v13 }
 0x95d   :  { %v2334_v42 = vpop.f32.mrf.mxu0 }
 0x95e   :  { %7218 = vst [vmem:[#allocation44_spill] sm:$0xff] %v6121_v3  ;;  %v6123_v25 = vadd.f32 %v2334_v42, %v2110_v20 }
 0x95f   :  { %v2336_v30 = vpop.f32.mrf.mxu0 }
 0x960   :  { %7219 = vst [vmem:[#allocation69_spill] sm:$0xff] %v6123_v25  ;;  %v6125_v15 = vadd.f32 %v2336_v30, %v2114_v13 }
 0x961   :  { %v2340_v2 = vpop.f32.mrf.mxu0 }
 0x962   :  { %7220 = vst [vmem:[#allocation71_spill] sm:$0xff] %v6125_v15  ;;  %v6127_v39 = vadd.f32 %v2340_v2, %v2110_v20 }
 0x963   :  { %v2342_v35 = vpop.f32.mrf.mxu0 }
 0x964   :  { %7221 = vst [vmem:[#allocation72_spill] sm:$0xff] %v6127_v39  ;;  %v6129_v52 = vadd.f32 %v2342_v35, %v2114_v13  ;;  %v7245_v35 = vmov 0.0  }
 0x965   :  { %v2582_v18 = vpop.f32.mrf.mxu0  ;;  %v4247_v30 = vpop.eup %4246 }
 0x966   :  { %7222 = vst [vmem:[#allocation70_spill] sm:$0xff] %v6129_v52  ;;  %v2589_v3 = vadd.f32 %v2582_v18, %v2299_v32  ;;  %v2610_v2 = vmul.f32 0.0, %v4247_v30  ;;  %v7246_v18 = vld [vmem:[#allocation28_spill] sm:$0xff]  ;;  %v6312_v52 = vld [vmem:[#allocation13 + $0x48] sm:$0xff] }
 0x967   :  { %v2584_v42 = vpop.f32.mrf.mxu0  ;;  %v4249_v15 = vpop.eup %4248 }
 0x968   :  { %4250 = vtanh.f32 %v2589_v3  ;;  %v2590_v25 = vadd.f32 %v2584_v42, %v2301_v22  ;;  %v6198_v3 = vld [vmem:[#allocation13 + $0x1e8] sm:$0xff]  ;;  %v7251_v42 = vld [vmem:[#allocation30_spill] sm:$0xff] }
 0x969   :  { %7247 = vst [vmem:[#allocation45_spill] sm:$0xff] %v6198_v3  ;;  %v7250_v22 = vld [vmem:[#allocation65_spill] sm:$0xff] }
 0x96a   :  { %v3974_v19 = vmul.f32 -1.442695, %v2590_v25  ;;  %v7248_v25 = vld [vmem:[#allocation59_spill] sm:$0xff]  ;;  %v2194_v30 = vadd.f32 %v7251_v42, %v7250_v22 }
 0x96c   :  { %4252 = vpow2.f32 %v3974_v19  ;;  %v7243_v19 = vld [vmem:[#allocation29_spill] sm:$0xff] }
 0x975   :  { %v4251_v55 = vpop.eup %4250 }
 0x976   :  { %v2611_v39 = vmul.f32 %v4251_v55, %v4249_v15  ;;  %v7249_v15 = vld [vmem:[#allocation31_spill] sm:$0xff] }
 0x977   :  { %v2192_v29 = vadd.f32 %v7249_v15, %v6095_v56 }
 0x978   :  { %v6131_v16 = vadd.f32 %v2611_v39, %v2610_v2  ;;  %v7244_v39 = vld [vmem:[#allocation57_spill] sm:$0xff] }
 0x979   :  { %v4253_v57 = vpop.eup %4252 }
 0x97a   :  { %v2607_v20 = vadd.f32 1.0, %v4253_v57  ;;  %4254 = vtanh.f32 %v6131_v16 }
 0x97c   :  { %4256 = vrcp.f32 %v2607_v20 }
 0x987   :  { %v4255_v62 = vpop.eup %4254 }
 0x989   :  { %v4257_v13 = vpop.eup %4256 }
 0x98a   :  { %v2614_v32 = vmul.f32 %v4257_v13, %v4255_v62 }
 0x98c   :  { %2684 = vmatmul.mubr.f32.vlgmr.msra.gmra.mxu1 %v2614_v32  ;;  %2755 = vmatmul.mubr.f32.vlgmr.msra.gmra.mxu0 %v2614_v32 }
 0x98d   :  { %2794 = vmatpush1.msra.mxu1 %v5754_v21  ;;  %2865 = vmatpush1.msra.mxu0 %v5902_v48  ;;  %v7223_v21 = vld [vmem:[#allocation60_spill] sm:$0xff] }
 0x98e   :  { %2795 = vmatprep.subr.mxu1 %v5758_v24  ;;  %2866 = vmatprep.subr.mxu0 %v5905_v14  ;;  %v7224_v24 = vld [vmem:[#allocation49_spill] sm:$0xff] }
 0x98f   :  { %2796 = vmatpush1.msra.mxu1 %v5761_v1  ;;  %2867 = vmatpush1.msra.mxu0 %v5910_v6  ;;  %v7225_v1 = vld [vmem:[#allocation58_spill] sm:$0xff] }
 0x990   :  { %2797 = vmatprep.subr.mxu1 %v5765_v33  ;;  %2868 = vmatprep.subr.mxu0 %v5914_v8  ;;  %v7226_v33 = vld [vmem:[#allocation51_spill] sm:$0xff] }
 0x991   :  { %2798 = vmatpush1.msra.mxu1 %v5768_v34  ;;  %2869 = vmatpush1.msra.mxu0 %v5917_v49  ;;  %v7227_v34 = vld [vmem:[#allocation46_spill] sm:$0xff]  ;;  %7255 = vst [vmem:[#allocation51_spill] sm:$0xff] %v6312_v52 }
 0x992   :  { %2799 = vmatprep.subr.mxu1 %v5772_v36  ;;  %2870 = vmatprep.subr.mxu0 %v5921_v61  ;;  %v7228_v36 = vld [vmem:[#allocation52_spill] sm:$0xff] }
 0x993   :  { %2800 = vmatpush1.msra.mxu1 %v5775_v37  ;;  %2871 = vmatpush1.msra.mxu0 %v5926_v31  ;;  %v7229_v37 = vld [vmem:[#allocation26_spill] sm:$0xff] }
 0x994   :  { %2801 = vmatprep.subr.mxu1 %v5779_v40  ;;  %2872 = vmatprep.subr.mxu0 %v5930_v0  ;;  %v7230_v40 = vld [vmem:[#allocation50_spill] sm:$0xff] }
 0x995   :  { %2802 = vmatpush1.msra.mxu1 %v5782_v41  ;;  %2873 = vmatpush1.msra.mxu0 %v5933_v59  ;;  %v7231_v41 = vld [vmem:[#allocation25_spill] sm:$0xff] }
 0x996   :  { %2803 = vmatprep.subr.mxu1 %v5786_v43  ;;  %2874 = vmatprep.subr.mxu0 %v5937_v60  ;;  %v7232_v43 = vld [vmem:[#allocation53_spill] sm:$0xff] }
 0x997   :  { %2804 = vmatpush1.msra.mxu1 %v5789_v44  ;;  %2875 = vmatpush1.msra.mxu0 %v5942_v4  ;;  %v7233_v44 = vld [vmem:[#allocation61_spill] sm:$0xff] }
 0x998   :  { %2805 = vmatprep.subr.mxu1 %v5793_v46  ;;  %2876 = vmatprep.subr.mxu0 %v5946_v58  ;;  %v7234_v46 = vld [vmem:[#allocation55_spill] sm:$0xff] }
 0x999   :  { %2806 = vmatpush1.msra.mxu1 %v5796_v26  ;;  %2877 = vmatpush1.msra.mxu0 %v5949_v11  ;;  %v7235_v26 = vld [vmem:[#allocation63_spill] sm:$0xff] }
 0x99a   :  { %2807 = vmatprep.subr.mxu1 %v5800_v23  ;;  %2878 = vmatprep.subr.mxu0 %v5953_v47  ;;  %v7236_v23 = vld [vmem:[#allocation56_spill] sm:$0xff] }
 0x99b   :  { %2808 = vmatpush1.msra.mxu1 %v5803_v12  ;;  %2879 = vmatpush1.msra.mxu0 %v5958_v63  ;;  %v7237_v12 = vld [vmem:[#allocation64_spill] sm:$0xff] }
 0x99c   :  { %2809 = vmatprep.subr.mxu1 %v5807_v5  ;;  %2880 = vmatprep.subr.mxu0 %v5962_v27  ;;  %v7238_v5 = vld [vmem:[#allocation54_spill] sm:$0xff] }
 0x99d   :  { %2810 = vmatpush1.msra.mxu1 %v5810_v9  ;;  %2881 = vmatpush1.msra.mxu0 %v5965_v28  ;;  %v7239_v9 = vld [vmem:[#allocation62_spill] sm:$0xff] }
 0x99e   :  { %2811 = vmatprep.subr.mxu1 %v5814_v7  ;;  %2882 = vmatprep.subr.mxu0 %v5968_v17  ;;  %v7240_v7 = vld [vmem:[#allocation22_spill] sm:$0xff] }
 0x99f   :  { %2812 = vmatpush1.msra.mxu1 %v5817_v53  ;;  %2883 = vmatpush1.msra.mxu0 %v5972_v51  ;;  %v7241_v53 = vld [vmem:[#allocation48_spill] sm:$0xff] }
 0x9a0   :  { %2813 = vmatprep.subr.mxu1 %v5821_v54  ;;  %2884 = vmatprep.subr.mxu0 %v7223_v21  ;;  %v7242_v54 = vld [vmem:[#allocation23_spill] sm:$0xff] }
 0x9a1   :  { %2814 = vmatpush1.msra.mxu1 %v7224_v24  ;;  %2885 = vmatpush1.msra.mxu0 %v7225_v1 }
 0x9a2   :  { %2815 = vmatprep.subr.mxu1 %v7226_v33  ;;  %2886 = vmatprep.subr.mxu0 %v7227_v34 }
 0x9a3   :  { %2816 = vmatpush1.msra.mxu1 %v7228_v36  ;;  %2887 = vmatpush1.msra.mxu0 %v7229_v37 }
 0x9a4   :  { %2817 = vmatprep.subr.mxu1 %v7230_v40  ;;  %2888 = vmatprep.subr.mxu0 %v7231_v41 }
 0x9a5   :  { %2818 = vmatpush1.msra.mxu1 %v7232_v43  ;;  %2889 = vmatpush1.msra.mxu0 %v7233_v44 }
 0x9a6   :  { %2819 = vmatprep.subr.mxu1 %v7234_v46  ;;  %2890 = vmatprep.subr.mxu0 %v7235_v26 }
 0x9a7   :  { %2820 = vmatpush1.msra.mxu1 %v7236_v23  ;;  %2891 = vmatpush1.msra.mxu0 %v7237_v12 }
 0x9a8   :  { %2821 = vmatprep.subr.mxu1 %v7238_v5  ;;  %2892 = vmatprep.subr.mxu0 %v7239_v9 }
 0x9a9   :  { %2822 = vmatpush1.msra.mxu1 %v7240_v7  ;;  %2893 = vmatpush1.msra.mxu0 %v7241_v53 }
 0x9aa   :  { %2823 = vmatprep.subr.mxu1 %v7242_v54  ;;  %2894 = vmatprep.subr.mxu0 %v7243_v19 }
 0x9ab   :  { %2824 = vmatpush1.msra.mxu1 %v7244_v39  ;;  %2857 = vmatprep.mubr.f32.mxu1 %v7245_v35 }
 0x9ac   :  { %2895 = vmatpush1.msra.mxu0 %v7246_v18  ;;  %2928 = vmatprep.mubr.f32.mxu0 %v7245_v35 }
 0x9ad   :  { %2967 = vmatprep.subr.mxu1 %v6198_v3  ;;  %3038 = vmatprep.subr.mxu0 %v7248_v25 }
 0xa4c   :  { %v2685_v45 = vpop.f32.mrf.mxu1  ;;  %v2756_v62 = vpop.f32.mrf.mxu0 }
 0xa4d   :  { %v2761_v55 = vadd.f32 %v2685_v45, %v2192_v29  ;;  %v2763_v33 = vadd.f32 %v2756_v62, %v6103_v10  ;;  %v6232_v62 = vld [vmem:[#allocation13 + $0x188] sm:$0xff] }
 0xa4e   :  { %v2687_v2 = vpop.f32.mrf.mxu1  ;;  %v2758_v32 = vpop.f32.mrf.mxu0 }
 0xa4f   :  { %v3975_v57 = vmul.f32 -1.442695, %v2761_v55  ;;  %v2762_v20 = vadd.f32 %v2687_v2, %v2194_v30  ;;  %v2764_v24 = vadd.f32 %v2758_v32, %v6105_v50  ;;  %v6212_v55 = vld [vmem:[#allocation13 + $0x1e0] sm:$0xff]  ;;  %v6216_v2 = vld [vmem:[#allocation13 + $0x1c8] sm:$0xff] }
 0xa50   :  { %v6240_v32 = vld [vmem:[#allocation13 + $0x168] sm:$0xff] }
 0xa51   :  { %4258 = vpow2.f32 %v3975_v57  ;;  %v3976_v13 = vmul.f32 -1.442695, %v2762_v20  ;;  %v3977_v36 = vmul.f32 -1.442695, %v2764_v24  ;;  %v6224_v57 = vld [vmem:[#allocation13 + $0x1a8] sm:$0xff]  ;;  %v6228_v20 = vld [vmem:[#allocation13 + $0x1a0] sm:$0xff] }
 0xa52   :  { %v6244_v24 = vld [vmem:[#allocation13 + $0x160] sm:$0xff] }
 0xa53   :  { %4260 = vpow2.f32 %v3976_v13  ;;  %v6236_v13 = vld [vmem:[#allocation13 + $0x180] sm:$0xff] }
 0xa54   :  { %4262 = vtanh.f32 %v2763_v33  ;;  %v6248_v33 = vld [vmem:[#allocation13 + $0x148] sm:$0xff] }
 0xa55   :  { %4264 = vpow2.f32 %v3977_v36  ;;  %v6252_v36 = vld [vmem:[#allocation13 + $0x140] sm:$0xff] }
 0xa5e   :  { %v4259_v40 = vpop.eup %4258 }
 0xa5f   :  { %v2768_v43 = vadd.f32 1.0, %v4259_v40  ;;  %v6256_v40 = vld [vmem:[#allocation13 + $0x128] sm:$0xff] }
 0xa60   :  { %v4261_v46 = vpop.eup %4260 }
 0xa61   :  { %4266 = vrcp.f32 %v2768_v43  ;;  %v2774_v23 = vadd.f32 1.0, %v4261_v46  ;;  %v4263_v5 = vpop.eup %4262  ;;  %v6260_v43 = vld [vmem:[#allocation13 + $0x120] sm:$0xff]  ;;  %v6264_v46 = vld [vmem:[#allocation13 + $0x108] sm:$0xff] }
 0xa62   :  { %v4265_v7 = vpop.eup %4264 }
 0xa63   :  { %4268 = vrcp.f32 %v2774_v23  ;;  %v2781_v29 = vadd.f32 1.0, %v4265_v7  ;;  %v6268_v23 = vld [vmem:[#allocation13 + $0x100] sm:$0xff] }
 0xa64   :  { %v6276_v7 = vld [vmem:[#allocation13 + $0xe0] sm:$0xff] }
 0xa65   :  { %4270 = vrcp.f32 %v2781_v29  ;;  %v6292_v29 = vld [vmem:[#allocation13 + $0xa0] sm:$0xff] }
 0xa6e   :  { %v4267_v54 = vpop.eup %4266 }
 0xa6f   :  { %v2785_v39 = vmul.f32 %v4267_v54, %v4263_v5  ;;  %v6272_v5 = vld [vmem:[#allocation13 + $0xe8] sm:$0xff] }
 0xa70   :  { %v4269_v15 = vpop.eup %4268  ;;  %v6280_v54 = vld [vmem:[#allocation13 + $0xc8] sm:$0xff] }
 0xa71   :  { %v2784_v45 = vmul.f32 %v4269_v15, %v6131_v16  ;;  %v6220_v16 = vld [vmem:[#allocation13 + $0x1c0] sm:$0xff]  ;;  %v6288_v15 = vld [vmem:[#allocation13 + $0xa8] sm:$0xff] }
 0xa72   :  { %v4271_v10 = vpop.eup %4270 }
 0xa73   :  { %v6209_v50 = vadd.f32 %v2785_v39, %v2784_v45  ;;  %v6284_v39 = vld [vmem:[#allocation13 + $0xc0] sm:$0xff]  ;;  %v6296_v45 = vld [vmem:[#allocation13 + $0x88] sm:$0xff] }
 0xa75   :  { %4272 = vtanh.f32 %v6209_v50 }
 0xa82   :  { %v4273_v42 = vpop.eup %4272 }
 0xa83   :  { %v2788_v30 = vmul.f32 %v4273_v42, %v4271_v10  ;;  %v6300_v10 = vld [vmem:[#allocation13 + $0x80] sm:$0xff]  ;;  %v6304_v42 = vld [vmem:[#allocation13 + $0x68] sm:$0xff] }
 0xa84   :  { %7252 = vst [vmem:[#allocation60_spill] sm:$0xff] %v6300_v10  ;;  %7253 = vst [vmem:[#allocation49_spill] sm:$0xff] %v6304_v42 }
 0xa85   :  { %2858 = vmatmul.mubr.f32.vlgmr.msra.gmra.mxu1 %v2788_v30  ;;  %2929 = vmatmul.mubr.f32.vlgmr.msra.gmra.mxu0 %v2788_v30  ;;  %v6308_v30 = vld [vmem:[#allocation13 + $0x60] sm:$0xff] }
 0xa86   :  { %2968 = vmatpush1.msra.mxu1 %v6212_v55  ;;  %3039 = vmatpush1.msra.mxu0 %v5902_v48  ;;  %7254 = vst [vmem:[#allocation58_spill] sm:$0xff] %v6308_v30 }
 0xa87   :  { %2969 = vmatprep.subr.mxu1 %v6216_v2  ;;  %3040 = vmatprep.subr.mxu0 %v5905_v14 }
 0xa88   :  { %2970 = vmatpush1.msra.mxu1 %v6220_v16  ;;  %3041 = vmatpush1.msra.mxu0 %v5910_v6 }
 0xa89   :  { %2971 = vmatprep.subr.mxu1 %v6224_v57  ;;  %3042 = vmatprep.subr.mxu0 %v5914_v8 }
 0xa8a   :  { %2972 = vmatpush1.msra.mxu1 %v6228_v20  ;;  %3043 = vmatpush1.msra.mxu0 %v5917_v49 }
 0xa8b   :  { %2973 = vmatprep.subr.mxu1 %v6232_v62  ;;  %3044 = vmatprep.subr.mxu0 %v5921_v61 }
 0xa8c   :  { %2974 = vmatpush1.msra.mxu1 %v6236_v13  ;;  %3045 = vmatpush1.msra.mxu0 %v5926_v31 }
 0xa8d   :  { %2975 = vmatprep.subr.mxu1 %v6240_v32  ;;  %3046 = vmatprep.subr.mxu0 %v5930_v0 }
 0xa8e   :  { %2976 = vmatpush1.msra.mxu1 %v6244_v24  ;;  %3047 = vmatpush1.msra.mxu0 %v5933_v59 }
 0xa8f   :  { %2977 = vmatprep.subr.mxu1 %v6248_v33  ;;  %3048 = vmatprep.subr.mxu0 %v5937_v60 }
 0xa90   :  { %2978 = vmatpush1.msra.mxu1 %v6252_v36  ;;  %3049 = vmatpush1.msra.mxu0 %v5942_v4 }
 0xa91   :  { %2979 = vmatprep.subr.mxu1 %v6256_v40  ;;  %3050 = vmatprep.subr.mxu0 %v5946_v58 }
 0xa92   :  { %2980 = vmatpush1.msra.mxu1 %v6260_v43  ;;  %3051 = vmatpush1.msra.mxu0 %v5949_v11 }
 0xa93   :  { %2981 = vmatprep.subr.mxu1 %v6264_v46  ;;  %3052 = vmatprep.subr.mxu0 %v5953_v47 }
 0xa94   :  { %2982 = vmatpush1.msra.mxu1 %v6268_v23  ;;  %3053 = vmatpush1.msra.mxu0 %v5958_v63 }
 0xa95   :  { %2983 = vmatprep.subr.mxu1 %v6272_v5  ;;  %3054 = vmatprep.subr.mxu0 %v5962_v27 }
 0xa96   :  { %2984 = vmatpush1.msra.mxu1 %v6276_v7  ;;  %3055 = vmatpush1.msra.mxu0 %v5965_v28 }
 0xa97   :  { %2985 = vmatprep.subr.mxu1 %v6280_v54  ;;  %3056 = vmatprep.subr.mxu0 %v5968_v17 }
 0xa98   :  { %2986 = vmatpush1.msra.mxu1 %v6284_v39  ;;  %3057 = vmatpush1.msra.mxu0 %v5972_v51 }
 0xa99   :  { %2987 = vmatprep.subr.mxu1 %v6288_v15  ;;  %3058 = vmatprep.subr.mxu0 %v7223_v21 }
 0xa9a   :  { %2988 = vmatpush1.msra.mxu1 %v6292_v29  ;;  %3059 = vmatpush1.msra.mxu0 %v7225_v1 }
 0xa9b   :  { %2989 = vmatprep.subr.mxu1 %v6296_v45  ;;  %3060 = vmatprep.subr.mxu0 %v7227_v34 }
 0xa9c   :  { %2990 = vmatpush1.msra.mxu1 %v6300_v10  ;;  %3061 = vmatpush1.msra.mxu0 %v7229_v37  ;;  %v6316_v10 = vld [vmem:[#allocation13 + $0x40] sm:$0xff] }
 0xa9d   :  { %2991 = vmatprep.subr.mxu1 %v6304_v42  ;;  %3062 = vmatprep.subr.mxu0 %v7231_v41  ;;  %7256 = vst [vmem:[#allocation52_spill] sm:$0xff] %v6316_v10  ;;  %v6320_v42 = vld [vmem:[#allocation13 + $0x28] sm:$0xff]  ;;  %v7263_v41 = vld [vmem:[#allocation68_spill] sm:$0xff] }
 0xa9e   :  { %2992 = vmatpush1.msra.mxu1 %v6308_v30  ;;  %3063 = vmatpush1.msra.mxu0 %v7233_v44  ;;  %7257 = vst [vmem:[#allocation50_spill] sm:$0xff] %v6320_v42  ;;  %v6324_v30 = vld [vmem:[#allocation13 + $0x20] sm:$0xff] }
 0xa9f   :  { %2993 = vmatprep.subr.mxu1 %v6312_v52  ;;  %3064 = vmatprep.subr.mxu0 %v7235_v26  ;;  %7258 = vst [vmem:[#allocation53_spill] sm:$0xff] %v6324_v30  ;;  %v6328_v52 = vld [vmem:[#allocation13 + $0x8] sm:$0xff] }
 0xaa0   :  { %2994 = vmatpush1.msra.mxu1 %v6316_v10  ;;  %3065 = vmatpush1.msra.mxu0 %v7237_v12  ;;  %7259 = vst [vmem:[#allocation55_spill] sm:$0xff] %v6328_v52  ;;  %v6332_v10 = vld [vmem:[#allocation13] sm:$0xff] }
 0xaa1   :  { %2995 = vmatprep.subr.mxu1 %v6320_v42  ;;  %3066 = vmatprep.subr.mxu0 %v7239_v9  ;;  %7260 = vst [vmem:[#allocation56_spill] sm:$0xff] %v6332_v10 }
 0xaa2   :  { %2996 = vmatpush1.msra.mxu1 %v6324_v30  ;;  %3067 = vmatpush1.msra.mxu0 %v7241_v53  ;;  %v7261_v53 = vld [vmem:[#allocation33_spill] sm:$0xff] }
 0xaa3   :  { %2997 = vmatprep.subr.mxu1 %v6328_v52  ;;  %3068 = vmatprep.subr.mxu0 %v7243_v19  ;;  %v2198_v30 = vadd.f32 %v7261_v53, %v6095_v56  ;;  %v7262_v19 = vld [vmem:[#allocation32_spill] sm:$0xff] }
 0xaa4   :  { %2998 = vmatpush1.msra.mxu1 %v6332_v10  ;;  %3031 = vmatprep.mubr.f32.mxu1 %v7245_v35  ;;  %v2200_v9 = vadd.f32 %v7262_v19, %v7250_v22 }
 0xaa5   :  { %3069 = vmatpush1.msra.mxu0 %v7246_v18  ;;  %3102 = vmatprep.mubr.f32.mxu0 %v7245_v35 }
 0xaa6   :  { %3141 = vmatprep.subr.mxu1 %v6198_v3  ;;  %3212 = vmatprep.subr.mxu0 %v7248_v25 }
 0xb45   :  { %v2859_v52 = vpop.f32.mrf.mxu1  ;;  %v2930_v44 = vpop.f32.mrf.mxu0 }
 0xb46   :  { %v2935_v42 = vadd.f32 %v2859_v52, %v2198_v30  ;;  %v2937_v25 = vadd.f32 %v2930_v44, %v7263_v41 }
 0xb47   :  { %v2861_v12 = vpop.f32.mrf.mxu1  ;;  %v2932_v35 = vpop.f32.mrf.mxu0 }
 0xb48   :  { %v3978_v10 = vmul.f32 -1.442695, %v2935_v42  ;;  %v2936_v26 = vadd.f32 %v2861_v12, %v2200_v9  ;;  %v2938_v3 = vadd.f32 %v2932_v35, %v6109_v38  ;;  %v7287_v35 = vld [vmem:[#allocation35_spill] sm:$0xff] }
 0xb4a   :  { %4274 = vpow2.f32 %v3978_v10  ;;  %v3979_v18 = vmul.f32 -1.442695, %v2936_v26  ;;  %v3980_v37 = vmul.f32 -1.442695, %v2938_v3 }
 0xb4c   :  { %4276 = vpow2.f32 %v3979_v18 }
 0xb4d   :  { %4278 = vtanh.f32 %v2937_v25 }
 0xb4e   :  { %4280 = vpow2.f32 %v3980_v37  ;;  %v7286_v37 = vld [vmem:[#allocation67_spill] sm:$0xff] }
 0xb4f   :  { %v2204_v3 = vadd.f32 %v7287_v35, %v7286_v37 }
 0xb57   :  { %v4275_v34 = vpop.eup %4274 }
 0xb58   :  { %v2942_v53 = vadd.f32 1.0, %v4275_v34 }
 0xb59   :  { %v4277_v56 = vpop.eup %4276 }
 0xb5a   :  { %4282 = vrcp.f32 %v2942_v53  ;;  %v2948_v52 = vadd.f32 1.0, %v4277_v56  ;;  %v4279_v19 = vpop.eup %4278  ;;  %v7264_v56 = vld [vmem:[#allocation46_spill] sm:$0xff] }
 0xb5b   :  { %v4281_v12 = vpop.eup %4280 }
 0xb5c   :  { %4284 = vrcp.f32 %v2948_v52  ;;  %v2955_v18 = vadd.f32 1.0, %v4281_v12 }
 0xb5e   :  { %4286 = vrcp.f32 %v2955_v18  ;;  %v7289_v18 = vld [vmem:[#allocation73_spill] sm:$0xff] }
 0xb67   :  { %v4283_v9 = vpop.eup %4282 }
 0xb68   :  { %v2959_v10 = vmul.f32 %v4283_v9, %v4279_v19 }
 0xb69   :  { %v4285_v26 = vpop.eup %4284 }
 0xb6a   :  { %v2958_v42 = vmul.f32 %v4285_v26, %v6209_v50  ;;  %v7288_v50 = vld [vmem:[#allocation34_spill] sm:$0xff] }
 0xb6b   :  { %v4287_v34 = vpop.eup %4286  ;;  %v2206_v30 = vadd.f32 %v7288_v50, %v7250_v22 }
 0xb6c   :  { %v6347_v38 = vadd.f32 %v2959_v10, %v2958_v42 }
 0xb6e   :  { %4288 = vtanh.f32 %v6347_v38 }
 0xb7b   :  { %v4289_v41 = vpop.eup %4288 }
 0xb7c   :  { %v2962_v44 = vmul.f32 %v4289_v41, %v4287_v34  ;;  %v7290_v34 = vld [vmem:[#allocation66_spill] sm:$0xff] }
 0xb7e   :  { %3032 = vmatmul.mubr.f32.vlgmr.msra.gmra.mxu1 %v2962_v44  ;;  %3103 = vmatmul.mubr.f32.vlgmr.msra.gmra.mxu0 %v2962_v44 }
 0xb7f   :  { %3142 = vmatpush1.msra.mxu1 %v6212_v55  ;;  %3213 = vmatpush1.msra.mxu0 %v5902_v48  ;;  %v7265_v48 = vld [vmem:[#allocation60_spill] sm:$0xff] }
 0xb80   :  { %3143 = vmatprep.subr.mxu1 %v6216_v2  ;;  %3214 = vmatprep.subr.mxu0 %v5905_v14  ;;  %v7266_v14 = vld [vmem:[#allocation26_spill] sm:$0xff] }
 0xb81   :  { %3144 = vmatpush1.msra.mxu1 %v6220_v16  ;;  %3215 = vmatpush1.msra.mxu0 %v5910_v6  ;;  %v7267_v6 = vld [vmem:[#allocation49_spill] sm:$0xff] }
 0xb82   :  { %3145 = vmatprep.subr.mxu1 %v6224_v57  ;;  %3216 = vmatprep.subr.mxu0 %v5914_v8  ;;  %v7268_v8 = vld [vmem:[#allocation25_spill] sm:$0xff] }
 0xb83   :  { %3146 = vmatpush1.msra.mxu1 %v6228_v20  ;;  %3217 = vmatpush1.msra.mxu0 %v5917_v49  ;;  %v7269_v49 = vld [vmem:[#allocation58_spill] sm:$0xff] }
 0xb84   :  { %3147 = vmatprep.subr.mxu1 %v6232_v62  ;;  %3218 = vmatprep.subr.mxu0 %v5921_v61  ;;  %v7270_v61 = vld [vmem:[#allocation61_spill] sm:$0xff] }
 0xb85   :  { %3148 = vmatpush1.msra.mxu1 %v6236_v13  ;;  %3219 = vmatpush1.msra.mxu0 %v5926_v31  ;;  %v7271_v31 = vld [vmem:[#allocation51_spill] sm:$0xff] }
 0xb86   :  { %3149 = vmatprep.subr.mxu1 %v6240_v32  ;;  %3220 = vmatprep.subr.mxu0 %v5930_v0  ;;  %v7272_v0 = vld [vmem:[#allocation63_spill] sm:$0xff] }
 0xb87   :  { %3150 = vmatpush1.msra.mxu1 %v6244_v24  ;;  %3221 = vmatpush1.msra.mxu0 %v5933_v59  ;;  %v7273_v59 = vld [vmem:[#allocation52_spill] sm:$0xff] }
 0xb88   :  { %3151 = vmatprep.subr.mxu1 %v6248_v33  ;;  %3222 = vmatprep.subr.mxu0 %v5937_v60  ;;  %v7274_v60 = vld [vmem:[#allocation64_spill] sm:$0xff] }
 0xb89   :  { %3152 = vmatpush1.msra.mxu1 %v6252_v36  ;;  %3223 = vmatpush1.msra.mxu0 %v5942_v4  ;;  %v7275_v4 = vld [vmem:[#allocation50_spill] sm:$0xff] }
 0xb8a   :  { %3153 = vmatprep.subr.mxu1 %v6256_v40  ;;  %3224 = vmatprep.subr.mxu0 %v5946_v58  ;;  %v7276_v58 = vld [vmem:[#allocation62_spill] sm:$0xff] }
 0xb8b   :  { %3154 = vmatpush1.msra.mxu1 %v6260_v43  ;;  %3225 = vmatpush1.msra.mxu0 %v5949_v11  ;;  %v7277_v11 = vld [vmem:[#allocation53_spill] sm:$0xff] }
 0xb8c   :  { %3155 = vmatprep.subr.mxu1 %v6264_v46  ;;  %3226 = vmatprep.subr.mxu0 %v5953_v47  ;;  %v7278_v47 = vld [vmem:[#allocation48_spill] sm:$0xff] }
 0xb8d   :  { %3156 = vmatpush1.msra.mxu1 %v6268_v23  ;;  %3227 = vmatpush1.msra.mxu0 %v5958_v63  ;;  %v7279_v63 = vld [vmem:[#allocation55_spill] sm:$0xff] }
 0xb8e   :  { %3157 = vmatprep.subr.mxu1 %v6272_v5  ;;  %3228 = vmatprep.subr.mxu0 %v5962_v27  ;;  %v7280_v27 = vld [vmem:[#allocation29_spill] sm:$0xff] }
 0xb8f   :  { %3158 = vmatpush1.msra.mxu1 %v6276_v7  ;;  %3229 = vmatpush1.msra.mxu0 %v5965_v28  ;;  %v7281_v28 = vld [vmem:[#allocation56_spill] sm:$0xff] }
 0xb90   :  { %3159 = vmatprep.subr.mxu1 %v6280_v54  ;;  %3230 = vmatprep.subr.mxu0 %v5968_v17  ;;  %v7282_v17 = vmov 0.0  }
 0xb91   :  { %3160 = vmatpush1.msra.mxu1 %v6284_v39  ;;  %3231 = vmatpush1.msra.mxu0 %v5972_v51  ;;  %v7283_v51 = vld [vmem:[#allocation28_spill] sm:$0xff] }
 0xb92   :  { %3161 = vmatprep.subr.mxu1 %v6288_v15  ;;  %3232 = vmatprep.subr.mxu0 %v7223_v21  ;;  %v7284_v21 = vld [vmem:[#allocation45_spill] sm:$0xff] }
 0xb93   :  { %3162 = vmatpush1.msra.mxu1 %v6292_v29  ;;  %3233 = vmatpush1.msra.mxu0 %v7225_v1  ;;  %v7285_v1 = vld [vmem:[#allocation59_spill] sm:$0xff] }
 0xb94   :  { %3163 = vmatprep.subr.mxu1 %v6296_v45  ;;  %3234 = vmatprep.subr.mxu0 %v7264_v56 }
 0xb95   :  { %3164 = vmatpush1.msra.mxu1 %v7265_v48  ;;  %3235 = vmatpush1.msra.mxu0 %v7266_v14 }
 0xb96   :  { %3165 = vmatprep.subr.mxu1 %v7267_v6  ;;  %3236 = vmatprep.subr.mxu0 %v7268_v8 }
 0xb97   :  { %3166 = vmatpush1.msra.mxu1 %v7269_v49  ;;  %3237 = vmatpush1.msra.mxu0 %v7270_v61 }
 0xb98   :  { %3167 = vmatprep.subr.mxu1 %v7271_v31  ;;  %3238 = vmatprep.subr.mxu0 %v7272_v0 }
 0xb99   :  { %3168 = vmatpush1.msra.mxu1 %v7273_v59  ;;  %3239 = vmatpush1.msra.mxu0 %v7274_v60 }
 0xb9a   :  { %3169 = vmatprep.subr.mxu1 %v7275_v4  ;;  %3240 = vmatprep.subr.mxu0 %v7276_v58 }
 0xb9b   :  { %3170 = vmatpush1.msra.mxu1 %v7277_v11  ;;  %3241 = vmatpush1.msra.mxu0 %v7278_v47 }
 0xb9c   :  { %3171 = vmatprep.subr.mxu1 %v7279_v63  ;;  %3242 = vmatprep.subr.mxu0 %v7280_v27 }
 0xb9d   :  { %3172 = vmatpush1.msra.mxu1 %v7281_v28  ;;  %3205 = vmatprep.mubr.f32.mxu1 %v7282_v17 }
 0xb9e   :  { %3243 = vmatpush1.msra.mxu0 %v7283_v51  ;;  %3276 = vmatprep.mubr.f32.mxu0 %v7282_v17 }
 0xb9f   :  { %3315 = vmatprep.subr.mxu1 %v7284_v21  ;;  %3386 = vmatprep.subr.mxu0 %v7285_v1 }
 0xc3e   :  { %v3033_v25 = vpop.f32.mrf.mxu1  ;;  %v3104_v9 = vpop.f32.mrf.mxu0 }
 0xc3f   :  { %v3109_v53 = vadd.f32 %v3033_v25, %v2204_v3  ;;  %v3111_v41 = vadd.f32 %v3104_v9, %v7290_v34  ;;  %v6427_v9 = vld [vmem:[#allocation13 + $0x1f0] sm:$0xff] }
 0xc40   :  { %v3035_v52 = vpop.f32.mrf.mxu1  ;;  %v3106_v26 = vpop.f32.mrf.mxu0  ;;  %v6451_v34 = vld [vmem:[#allocation13 + $0x190] sm:$0xff] }
 0xc41   :  { %v3981_v19 = vmul.f32 -1.442695, %v3109_v53  ;;  %v3110_v12 = vadd.f32 %v3035_v52, %v2206_v30  ;;  %v3112_v42 = vadd.f32 %v3106_v26, %v7289_v18  ;;  %v6439_v26 = vld [vmem:[#allocation13 + $0x1b8] sm:$0xff]  ;;  %v6443_v18 = vld [vmem:[#allocation13 + $0x1b0] sm:$0xff] }
 0xc43   :  { %4290 = vpow2.f32 %v3981_v19  ;;  %v3982_v10 = vmul.f32 -1.442695, %v3110_v12  ;;  %v3983_v44 = vmul.f32 -1.442695, %v3112_v42  ;;  %v6447_v42 = vld [vmem:[#allocation13 + $0x198] sm:$0xff] }
 0xc45   :  { %4292 = vpow2.f32 %v3982_v10  ;;  %v6431_v10 = vld [vmem:[#allocation13 + $0x1d8] sm:$0xff] }
 0xc46   :  { %4294 = vtanh.f32 %v3111_v41  ;;  %v6455_v41 = vld [vmem:[#allocation13 + $0x178] sm:$0xff] }
 0xc47   :  { %4296 = vpow2.f32 %v3983_v44  ;;  %v6459_v44 = vld [vmem:[#allocation13 + $0x170] sm:$0xff] }
 0xc50   :  { %v4291_v56 = vpop.eup %4290 }
 0xc51   :  { %v3116_v14 = vadd.f32 1.0, %v4291_v56  ;;  %v6463_v56 = vld [vmem:[#allocation13 + $0x158] sm:$0xff] }
 0xc52   :  { %v4293_v8 = vpop.eup %4292 }
 0xc53   :  { %4298 = vrcp.f32 %v3116_v14  ;;  %v3122_v61 = vadd.f32 1.0, %v4293_v8  ;;  %v4295_v0 = vpop.eup %4294  ;;  %v6467_v14 = vld [vmem:[#allocation13 + $0x150] sm:$0xff]  ;;  %v6471_v8 = vld [vmem:[#allocation13 + $0x138] sm:$0xff] }
 0xc54   :  { %v4297_v1 = vpop.eup %4296 }
 0xc55   :  { %4300 = vrcp.f32 %v3122_v61  ;;  %v3129_v50 = vadd.f32 1.0, %v4297_v1  ;;  %v6475_v61 = vld [vmem:[#allocation13 + $0x130] sm:$0xff] }
 0xc56   :  { %v6483_v1 = vld [vmem:[#allocation13 + $0x110] sm:$0xff] }
 0xc57   :  { %4302 = vrcp.f32 %v3129_v50  ;;  %v6499_v50 = vld [vmem:[#allocation13 + $0xd0] sm:$0xff] }
 0xc60   :  { %v4299_v35 = vpop.eup %4298 }
 0xc61   :  { %v3133_v3 = vmul.f32 %v4299_v35, %v4295_v0  ;;  %v6479_v0 = vld [vmem:[#allocation13 + $0x118] sm:$0xff] }
 0xc62   :  { %v4301_v25 = vpop.eup %4300  ;;  %v6487_v35 = vld [vmem:[#allocation13 + $0xf8] sm:$0xff] }
 0xc63   :  { %v3132_v30 = vmul.f32 %v4301_v25, %v6347_v38  ;;  %v6435_v38 = vld [vmem:[#allocation13 + $0x1d0] sm:$0xff]  ;;  %v6495_v25 = vld [vmem:[#allocation13 + $0xd8] sm:$0xff] }
 0xc64   :  { %v4303_v52 = vpop.eup %4302 }
 0xc65   :  { %v6423_v53 = vadd.f32 %v3133_v3, %v3132_v30  ;;  %v6491_v3 = vld [vmem:[#allocation13 + $0xf0] sm:$0xff]  ;;  %v6503_v30 = vld [vmem:[#allocation13 + $0xb8] sm:$0xff] }
 0xc66   :  { %7291 = vst [vmem:[#allocation54_spill] sm:$0xff] %v6503_v30 }
 0xc67   :  { %4304 = vtanh.f32 %v6423_v53 }
 0xc74   :  { %v4305_v19 = vpop.eup %4304 }
 0xc75   :  { %v3136_v12 = vmul.f32 %v4305_v19, %v4303_v52  ;;  %v6507_v52 = vld [vmem:[#allocation13 + $0xb0] sm:$0xff]  ;;  %v6511_v19 = vld [vmem:[#allocation13 + $0x98] sm:$0xff] }
 0xc76   :  { %7292 = vst [vmem:[#allocation22_spill] sm:$0xff] %v6507_v52  ;;  %7293 = vst [vmem:[#allocation23_spill] sm:$0xff] %v6511_v19 }
 0xc77   :  { %3206 = vmatmul.mubr.f32.vlgmr.msra.gmra.mxu1 %v3136_v12  ;;  %3277 = vmatmul.mubr.f32.vlgmr.msra.gmra.mxu0 %v3136_v12  ;;  %v6515_v12 = vld [vmem:[#allocation13 + $0x90] sm:$0xff] }
 0xc78   :  { %3316 = vmatpush1.msra.mxu1 %v6212_v55  ;;  %3387 = vmatpush1.msra.mxu0 %v6427_v9  ;;  %7294 = vst [vmem:[#allocation57_spill] sm:$0xff] %v6515_v12 }
 0xc79   :  { %3317 = vmatprep.subr.mxu1 %v6216_v2  ;;  %3388 = vmatprep.subr.mxu0 %v6431_v10 }
 0xc7a   :  { %3318 = vmatpush1.msra.mxu1 %v6220_v16  ;;  %3389 = vmatpush1.msra.mxu0 %v6435_v38 }
 0xc7b   :  { %3319 = vmatprep.subr.mxu1 %v6224_v57  ;;  %3390 = vmatprep.subr.mxu0 %v6439_v26 }
 0xc7c   :  { %3320 = vmatpush1.msra.mxu1 %v6228_v20  ;;  %3391 = vmatpush1.msra.mxu0 %v6443_v18 }
 0xc7d   :  { %3321 = vmatprep.subr.mxu1 %v6232_v62  ;;  %3392 = vmatprep.subr.mxu0 %v6447_v42 }
 0xc7e   :  { %3322 = vmatpush1.msra.mxu1 %v6236_v13  ;;  %3393 = vmatpush1.msra.mxu0 %v6451_v34 }
 0xc7f   :  { %3323 = vmatprep.subr.mxu1 %v6240_v32  ;;  %3394 = vmatprep.subr.mxu0 %v6455_v41 }
 0xc80   :  { %3324 = vmatpush1.msra.mxu1 %v6244_v24  ;;  %3395 = vmatpush1.msra.mxu0 %v6459_v44 }
 0xc81   :  { %3325 = vmatprep.subr.mxu1 %v6248_v33  ;;  %3396 = vmatprep.subr.mxu0 %v6463_v56 }
 0xc82   :  { %3326 = vmatpush1.msra.mxu1 %v6252_v36  ;;  %3397 = vmatpush1.msra.mxu0 %v6467_v14 }
 0xc83   :  { %3327 = vmatprep.subr.mxu1 %v6256_v40  ;;  %3398 = vmatprep.subr.mxu0 %v6471_v8 }
 0xc84   :  { %3328 = vmatpush1.msra.mxu1 %v6260_v43  ;;  %3399 = vmatpush1.msra.mxu0 %v6475_v61 }
 0xc85   :  { %3329 = vmatprep.subr.mxu1 %v6264_v46  ;;  %3400 = vmatprep.subr.mxu0 %v6479_v0 }
 0xc86   :  { %3330 = vmatpush1.msra.mxu1 %v6268_v23  ;;  %3401 = vmatpush1.msra.mxu0 %v6483_v1 }
 0xc87   :  { %3331 = vmatprep.subr.mxu1 %v6272_v5  ;;  %3402 = vmatprep.subr.mxu0 %v6487_v35 }
 0xc88   :  { %3332 = vmatpush1.msra.mxu1 %v6276_v7  ;;  %3403 = vmatpush1.msra.mxu0 %v6491_v3 }
 0xc89   :  { %3333 = vmatprep.subr.mxu1 %v6280_v54  ;;  %3404 = vmatprep.subr.mxu0 %v6495_v25 }
 0xc8a   :  { %3334 = vmatpush1.msra.mxu1 %v6284_v39  ;;  %3405 = vmatpush1.msra.mxu0 %v6499_v50 }
 0xc8b   :  { %3335 = vmatprep.subr.mxu1 %v6288_v15  ;;  %3406 = vmatprep.subr.mxu0 %v6503_v30  ;;  %v6519_v30 = vld [vmem:[#allocation13 + $0x78] sm:$0xff] }
 0xc8c   :  { %3336 = vmatpush1.msra.mxu1 %v6292_v29  ;;  %3407 = vmatpush1.msra.mxu0 %v6507_v52  ;;  %7295 = vst [vmem:[#allocation31_spill] sm:$0xff] %v6519_v30  ;;  %v6523_v52 = vld [vmem:[#allocation13 + $0x70] sm:$0xff] }
 0xc8d   :  { %3337 = vmatprep.subr.mxu1 %v6296_v45  ;;  %3408 = vmatprep.subr.mxu0 %v6511_v19  ;;  %7296 = vst [vmem:[#allocation65_spill] sm:$0xff] %v6523_v52  ;;  %v6527_v19 = vld [vmem:[#allocation13 + $0x58] sm:$0xff] }
 0xc8e   :  { %3338 = vmatpush1.msra.mxu1 %v7265_v48  ;;  %3409 = vmatpush1.msra.mxu0 %v6515_v12  ;;  %7297 = vst [vmem:[#allocation30_spill] sm:$0xff] %v6527_v19 }
 0xc8f   :  { %3339 = vmatprep.subr.mxu1 %v7267_v6  ;;  %3410 = vmatprep.subr.mxu0 %v6519_v30 }
 0xc90   :  { %3340 = vmatpush1.msra.mxu1 %v7269_v49  ;;  %3411 = vmatpush1.msra.mxu0 %v6523_v52  ;;  %v7302_v49 = vld [vmem:[#allocation24_spill] sm:$0xff] }
 0xc91   :  { %3341 = vmatprep.subr.mxu1 %v7271_v31  ;;  %3412 = vmatprep.subr.mxu0 %v6527_v19  ;;  %v7301_v31 = vld [vmem:[#allocation27_spill] sm:$0xff] }
 0xc92   :  { %3342 = vmatpush1.msra.mxu1 %v7273_v59  ;;  %3413 = vmatpush1.msra.mxu0 %v7274_v60  ;;  %v6543_v60 = vld [vmem:[#allocation13 + $0x1f8] sm:$0xff] }
 0xc93   :  { %3343 = vmatprep.subr.mxu1 %v7275_v4  ;;  %3414 = vmatprep.subr.mxu0 %v7276_v58  ;;  %7298 = vst [vmem:[#allocation33_spill] sm:$0xff] %v6543_v60  ;;  %v7299_v58 = vld [vmem:[#allocation37_spill] sm:$0xff] }
 0xc94   :  { %3344 = vmatpush1.msra.mxu1 %v7277_v11  ;;  %3415 = vmatpush1.msra.mxu0 %v7278_v47  ;;  %v2210_v47 = vadd.f32 %v7299_v58, %v7286_v37 }
 0xc95   :  { %3345 = vmatprep.subr.mxu1 %v7279_v63  ;;  %3416 = vmatprep.subr.mxu0 %v7280_v27  ;;  %v7300_v27 = vld [vmem:[#allocation36_spill] sm:$0xff] }
 0xc96   :  { %3346 = vmatpush1.msra.mxu1 %v7281_v28  ;;  %3379 = vmatprep.mubr.f32.mxu1 %v7282_v17  ;;  %v2212_v11 = vadd.f32 %v7300_v27, %v7250_v22  ;;  %v7308_v27 = vld [vmem:[#allocation58_spill] sm:$0xff] }
 0xc97   :  { %3417 = vmatpush1.msra.mxu0 %v7283_v51  ;;  %3450 = vmatprep.mubr.f32.mxu0 %v7282_v17 }
 0xc98   :  { %3489 = vmatprep.subr.mxu1 %v7284_v21  ;;  %3560 = vmatprep.subr.mxu0 %v6543_v60 }
 0xd37   :  { %v3207_v63 = vpop.f32.mrf.mxu1  ;;  %v3278_v51 = vpop.f32.mrf.mxu0 }
 0xd38   :  { %v3283_v28 = vadd.f32 %v3207_v63, %v2210_v47  ;;  %v3285_v60 = vadd.f32 %v3278_v51, %v7302_v49  ;;  %v7309_v51 = vld [vmem:[#allocation65_spill] sm:$0xff] }
 0xd39   :  { %v3209_v4 = vpop.f32.mrf.mxu1  ;;  %v3280_v21 = vpop.f32.mrf.mxu0 }
 0xd3a   :  { %v3984_v59 = vmul.f32 -1.442695, %v3283_v28  ;;  %v3284_v19 = vadd.f32 %v3209_v4, %v2212_v11  ;;  %v3286_v52 = vadd.f32 %v3280_v21, %v7301_v31 }
 0xd3c   :  { %4306 = vpow2.f32 %v3984_v59  ;;  %v3985_v17 = vmul.f32 -1.442695, %v3284_v19  ;;  %v3986_v30 = vmul.f32 -1.442695, %v3286_v52  ;;  %v7306_v52 = vld [vmem:[#allocation49_spill] sm:$0xff] }
 0xd3e   :  { %4308 = vpow2.f32 %v3985_v17 }
 0xd3f   :  { %4310 = vtanh.f32 %v3285_v60  ;;  %v7307_v60 = vld [vmem:[#allocation31_spill] sm:$0xff] }
 0xd40   :  { %4312 = vpow2.f32 %v3986_v30  ;;  %v7305_v30 = vld [vmem:[#allocation23_spill] sm:$0xff] }
 0xd49   :  { %v4307_v6 = vpop.eup %4306 }
 0xd4a   :  { %v3290_v58 = vadd.f32 1.0, %v4307_v6 }
 0xd4b   :  { %v4309_v37 = vpop.eup %4308 }
 0xd4c   :  { %4314 = vrcp.f32 %v3290_v58  ;;  %v3296_v63 = vadd.f32 1.0, %v4309_v37  ;;  %v4311_v28 = vpop.eup %4310  ;;  %v7303_v37 = vld [vmem:[#allocation54_spill] sm:$0xff]  ;;  %v7310_v58 = vld [vmem:[#allocation51_spill] sm:$0xff] }
 0xd4d   :  { %v4313_v4 = vpop.eup %4312 }
 0xd4e   :  { %4316 = vrcp.f32 %v3296_v63  ;;  %v3303_v17 = vadd.f32 1.0, %v4313_v4  ;;  %v7311_v63 = vld [vmem:[#allocation30_spill] sm:$0xff] }
 0xd4f   :  { %v6609_v4 = vld [vmem:[#allocation13 + $0x50] sm:$0xff] }
 0xd50   :  { %4318 = vrcp.f32 %v3303_v17  ;;  %7313 = vst [vmem:[#allocation32_spill] sm:$0xff] %v6609_v4  ;;  %v6617_v17 = vld [vmem:[#allocation13 + $0x30] sm:$0xff] }
 0xd51   :  { %7317 = vst [vmem:[#allocation46_spill] sm:$0xff] %v6617_v17 }
 0xd59   :  { %v4315_v59 = vpop.eup %4314 }
 0xd5a   :  { %v3307_v11 = vmul.f32 %v4315_v59, %v4311_v28  ;;  %v7312_v28 = vld [vmem:[#allocation52_spill] sm:$0xff]  ;;  %v7314_v59 = vld [vmem:[#allocation50_spill] sm:$0xff] }
 0xd5b   :  { %v4317_v19 = vpop.eup %4316 }
 0xd5c   :  { %v3306_v47 = vmul.f32 %v4317_v19, %v6423_v53  ;;  %v7304_v53 = vld [vmem:[#allocation22_spill] sm:$0xff]  ;;  %v7316_v19 = vld [vmem:[#allocation53_spill] sm:$0xff] }
 0xd5d   :  { %v4319_v6 = vpop.eup %4318 }
 0xd5e   :  { %v6553_v31 = vadd.f32 %v3307_v11, %v3306_v47  ;;  %v6613_v11 = vld [vmem:[#allocation13 + $0x38] sm:$0xff] }
 0xd5f   :  { %7315 = vst [vmem:[#allocation68_spill] sm:$0xff] %v6613_v11  ;;  %v7318_v47 = vld [vmem:[#allocation55_spill] sm:$0xff] }
 0xd60   :  { %4320 = vtanh.f32 %v6553_v31 }
 0xd6d   :  { %v4321_v49 = vpop.eup %4320 }
 0xd6e   :  { %v3310_v21 = vmul.f32 %v4321_v49, %v4319_v6  ;;  %v6621_v6 = vld [vmem:[#allocation13 + $0x18] sm:$0xff]  ;;  %v7320_v49 = vld [vmem:[#allocation56_spill] sm:$0xff] }
 0xd6f   :  { %7319 = vst [vmem:[#allocation26_spill] sm:$0xff] %v6621_v6 }
 0xd70   :  { %3380 = vmatmul.mubr.f32.vlgmr.msra.gmra.mxu1 %v3310_v21  ;;  %3451 = vmatmul.mubr.f32.vlgmr.msra.gmra.mxu0 %v3310_v21  ;;  %v7321_v21 = vmov 0.0  }
 0xd71   :  { %3490 = vmatpush1.msra.mxu1 %v6212_v55  ;;  %3561 = vmatpush1.msra.mxu0 %v6427_v9 }
 0xd72   :  { %3491 = vmatprep.subr.mxu1 %v6216_v2  ;;  %3562 = vmatprep.subr.mxu0 %v6431_v10 }
 0xd73   :  { %3492 = vmatpush1.msra.mxu1 %v6220_v16  ;;  %3563 = vmatpush1.msra.mxu0 %v6435_v38 }
 0xd74   :  { %3493 = vmatprep.subr.mxu1 %v6224_v57  ;;  %3564 = vmatprep.subr.mxu0 %v6439_v26 }
 0xd75   :  { %3494 = vmatpush1.msra.mxu1 %v6228_v20  ;;  %3565 = vmatpush1.msra.mxu0 %v6443_v18 }
 0xd76   :  { %3495 = vmatprep.subr.mxu1 %v6232_v62  ;;  %3566 = vmatprep.subr.mxu0 %v6447_v42 }
 0xd77   :  { %3496 = vmatpush1.msra.mxu1 %v6236_v13  ;;  %3567 = vmatpush1.msra.mxu0 %v6451_v34 }
 0xd78   :  { %3497 = vmatprep.subr.mxu1 %v6240_v32  ;;  %3568 = vmatprep.subr.mxu0 %v6455_v41 }
 0xd79   :  { %3498 = vmatpush1.msra.mxu1 %v6244_v24  ;;  %3569 = vmatpush1.msra.mxu0 %v6459_v44 }
 0xd7a   :  { %3499 = vmatprep.subr.mxu1 %v6248_v33  ;;  %3570 = vmatprep.subr.mxu0 %v6463_v56 }
 0xd7b   :  { %3500 = vmatpush1.msra.mxu1 %v6252_v36  ;;  %3571 = vmatpush1.msra.mxu0 %v6467_v14 }
 0xd7c   :  { %3501 = vmatprep.subr.mxu1 %v6256_v40  ;;  %3572 = vmatprep.subr.mxu0 %v6471_v8 }
 0xd7d   :  { %3502 = vmatpush1.msra.mxu1 %v6260_v43  ;;  %3573 = vmatpush1.msra.mxu0 %v6475_v61 }
 0xd7e   :  { %3503 = vmatprep.subr.mxu1 %v6264_v46  ;;  %3574 = vmatprep.subr.mxu0 %v6479_v0 }
 0xd7f   :  { %3504 = vmatpush1.msra.mxu1 %v6268_v23  ;;  %3575 = vmatpush1.msra.mxu0 %v6483_v1 }
 0xd80   :  { %3505 = vmatprep.subr.mxu1 %v6272_v5  ;;  %3576 = vmatprep.subr.mxu0 %v6487_v35 }
 0xd81   :  { %3506 = vmatpush1.msra.mxu1 %v6276_v7  ;;  %3577 = vmatpush1.msra.mxu0 %v6491_v3 }
 0xd82   :  { %3507 = vmatprep.subr.mxu1 %v6280_v54  ;;  %3578 = vmatprep.subr.mxu0 %v6495_v25 }
 0xd83   :  { %3508 = vmatpush1.msra.mxu1 %v6284_v39  ;;  %3579 = vmatpush1.msra.mxu0 %v6499_v50 }
 0xd84   :  { %3509 = vmatprep.subr.mxu1 %v6288_v15  ;;  %3580 = vmatprep.subr.mxu0 %v7303_v37 }
 0xd85   :  { %3510 = vmatpush1.msra.mxu1 %v6292_v29  ;;  %3581 = vmatpush1.msra.mxu0 %v7304_v53 }
 0xd86   :  { %3511 = vmatprep.subr.mxu1 %v6296_v45  ;;  %3582 = vmatprep.subr.mxu0 %v7305_v30 }
 0xd87   :  { %3512 = vmatpush1.msra.mxu1 %v7265_v48  ;;  %3583 = vmatpush1.msra.mxu0 %v6515_v12  ;;  %v7329_v12 = vld [vmem:[#allocation47_spill] sm:$0xff] }
 0xd88   :  { %3513 = vmatprep.subr.mxu1 %v7306_v52  ;;  %3584 = vmatprep.subr.mxu0 %v7307_v60  ;;  %v7328_v52 = vld [vmem:[#allocation44_spill] sm:$0xff] }
 0xd89   :  { %3514 = vmatpush1.msra.mxu1 %v7308_v27  ;;  %3585 = vmatpush1.msra.mxu0 %v7309_v51 }
 0xd8a   :  { %3515 = vmatprep.subr.mxu1 %v7310_v58  ;;  %3586 = vmatprep.subr.mxu0 %v7311_v63 }
 0xd8b   :  { %3516 = vmatpush1.msra.mxu1 %v7312_v28  ;;  %3587 = vmatpush1.msra.mxu0 %v6609_v4 }
 0xd8c   :  { %3517 = vmatprep.subr.mxu1 %v7314_v59  ;;  %3588 = vmatprep.subr.mxu0 %v6613_v11  ;;  %v6626_v59 = vld [vmem:[#allocation13 + $0x10] sm:$0xff]  ;;  %v7324_v11 = vld [vmem:[#allocation33_spill] sm:$0xff] }
 0xd8d   :  { %3518 = vmatpush1.msra.mxu1 %v7316_v19  ;;  %3589 = vmatpush1.msra.mxu0 %v6617_v17  ;;  %7322 = vst [vmem:[#allocation25_spill] sm:$0xff] %v6626_v59  ;;  %v7323_v19 = vld [vmem:[#allocation45_spill] sm:$0xff]  ;;  %v7325_v17 = vld [vmem:[#allocation67_spill] sm:$0xff] }
 0xd8e   :  { %3519 = vmatprep.subr.mxu1 %v7318_v47  ;;  %3590 = vmatprep.subr.mxu0 %v6621_v6  ;;  %v7326_v47 = vld [vmem:[#allocation39_spill] sm:$0xff]  ;;  %v7327_v6 = vld [vmem:[#allocation38_spill] sm:$0xff] }
 0xd8f   :  { %3520 = vmatpush1.msra.mxu1 %v7320_v49  ;;  %3553 = vmatprep.mubr.f32.mxu1 %v7321_v21  ;;  %v2216_v4 = vadd.f32 %v7326_v47, %v7325_v17  ;;  %v2218_v63 = vadd.f32 %v7327_v6, %v7250_v22 }
 0xd90   :  { %3591 = vmatpush1.msra.mxu0 %v6626_v59  ;;  %3624 = vmatprep.mubr.f32.mxu0 %v7321_v21 }
 0xd91   :  { %3663 = vmatprep.subr.mxu1 %v7323_v19  ;;  %3734 = vmatprep.subr.mxu0 %v7324_v11 }
 0xe30   :  { %v3381_v28 = vpop.f32.mrf.mxu1  ;;  %v3452_v60 = vpop.f32.mrf.mxu0 }
 0xe31   :  { %v3457_v49 = vadd.f32 %v3381_v28, %v2216_v4  ;;  %v3459_v11 = vadd.f32 %v3452_v60, %v7329_v12 }
 0xe32   :  { %v3383_v58 = vpop.f32.mrf.mxu1  ;;  %v3454_v21 = vpop.f32.mrf.mxu0 }
 0xe33   :  { %v3987_v51 = vmul.f32 -1.442695, %v3457_v49  ;;  %v3458_v27 = vadd.f32 %v3383_v58, %v2218_v63  ;;  %v3460_v19 = vadd.f32 %v3454_v21, %v7328_v52 }
 0xe35   :  { %4322 = vpow2.f32 %v3987_v51  ;;  %v3988_v59 = vmul.f32 -1.442695, %v3458_v27  ;;  %v3989_v48 = vmul.f32 -1.442695, %v3460_v19 }
 0xe37   :  { %4324 = vpow2.f32 %v3988_v59 }
 0xe38   :  { %4326 = vtanh.f32 %v3459_v11 }
 0xe39   :  { %4328 = vpow2.f32 %v3989_v48 }
 0xe42   :  { %v4323_v30 = vpop.eup %4322 }
 0xe43   :  { %v3464_v47 = vadd.f32 1.0, %v4323_v30 }
 0xe44   :  { %v4325_v17 = vpop.eup %4324 }
 0xe45   :  { %4330 = vrcp.f32 %v3464_v47  ;;  %v3470_v28 = vadd.f32 1.0, %v4325_v17  ;;  %v4327_v4 = vpop.eup %4326 }
 0xe46   :  { %v4329_v58 = vpop.eup %4328 }
 0xe47   :  { %4332 = vrcp.f32 %v3470_v28  ;;  %v3477_v59 = vadd.f32 1.0, %v4329_v58  ;;  %v3848_v58 = vld [vmem:[#allocation14 + $0x78] sm:$0xff] }
 0xe49   :  { %4334 = vrcp.f32 %v3477_v59  ;;  %v3844_v59 = vld [vmem:[#allocation14 + $0x58] sm:$0xff] }
 0xe52   :  { %v4331_v51 = vpop.eup %4330 }
 0xe53   :  { %v3481_v63 = vmul.f32 %v4331_v51, %v4327_v4  ;;  %v3847_v51 = vld [vmem:[#allocation14 + $0x70] sm:$0xff] }
 0xe54   :  { %v4333_v27 = vpop.eup %4332 }
 0xe55   :  { %v3480_v6 = vmul.f32 %v4333_v27, %v6553_v31  ;;  %v3845_v27 = vld [vmem:[#allocation14 + $0x60] sm:$0xff] }
 0xe56   :  { %v4335_v12 = vpop.eup %4334 }
 0xe57   :  { %v6639_v52 = vadd.f32 %v3481_v63, %v3480_v6  ;;  %v3846_v63 = vld [vmem:[#allocation14 + $0x68] sm:$0xff]  ;;  %v3843_v6 = vld [vmem:[#allocation14 + $0x50] sm:$0xff] }
 0xe59   :  { %4336 = vtanh.f32 %v6639_v52 }
 0xe66   :  { %v4337_v30 = vpop.eup %4336 }
 0xe67   :  { %v3484_v60 = vmul.f32 %v4337_v30, %v4335_v12  ;;  %v3841_v12 = vld [vmem:[#allocation14 + $0x40] sm:$0xff]  ;;  %v3840_v30 = vld [vmem:[#allocation14 + $0x38] sm:$0xff] }
 0xe69   :  { %3554 = vmatmul.mubr.f32.vlgmr.msra.gmra.mxu1 %v3484_v60  ;;  %3625 = vmatmul.mubr.f32.vlgmr.msra.gmra.mxu0 %v3484_v60  ;;  %v3839_v60 = vld [vmem:[#allocation14 + $0x30] sm:$0xff] }
 0xe6a   :  { %3664 = vmatpush1.msra.mxu1 %v6212_v55  ;;  %3735 = vmatpush1.msra.mxu0 %v6427_v9  ;;  %v7330_v55 = vld [vmem:[#allocation23_spill] sm:$0xff] }
 0xe6b   :  { %3665 = vmatprep.subr.mxu1 %v6216_v2  ;;  %3736 = vmatprep.subr.mxu0 %v6431_v10  ;;  %v7331_v2 = vld [vmem:[#allocation60_spill] sm:$0xff] }
 0xe6c   :  { %3666 = vmatpush1.msra.mxu1 %v6220_v16  ;;  %3737 = vmatpush1.msra.mxu0 %v6435_v38  ;;  %v7332_v16 = vld [vmem:[#allocation57_spill] sm:$0xff]  ;;  %v7352_v10 = vld [vmem:[#allocation40_spill] sm:$0xff] }
 0xe6d   :  { %3667 = vmatprep.subr.mxu1 %v6224_v57  ;;  %3738 = vmatprep.subr.mxu0 %v6439_v26  ;;  %v7333_v57 = vld [vmem:[#allocation49_spill] sm:$0xff]  ;;  %v2224_v38 = vadd.f32 %v7352_v10, %v7250_v22 }
 0xe6e   :  { %3668 = vmatpush1.msra.mxu1 %v6228_v20  ;;  %3739 = vmatpush1.msra.mxu0 %v6443_v18  ;;  %v7334_v20 = vld [vmem:[#allocation31_spill] sm:$0xff] }
 0xe6f   :  { %3669 = vmatprep.subr.mxu1 %v6232_v62  ;;  %3740 = vmatprep.subr.mxu0 %v6447_v42  ;;  %v7335_v62 = vld [vmem:[#allocation58_spill] sm:$0xff] }
 0xe70   :  { %3670 = vmatpush1.msra.mxu1 %v6236_v13  ;;  %3741 = vmatpush1.msra.mxu0 %v6451_v34  ;;  %v7336_v13 = vld [vmem:[#allocation65_spill] sm:$0xff] }
 0xe71   :  { %3671 = vmatprep.subr.mxu1 %v6240_v32  ;;  %3742 = vmatprep.subr.mxu0 %v6455_v41  ;;  %v7337_v32 = vld [vmem:[#allocation51_spill] sm:$0xff] }
 0xe72   :  { %3672 = vmatpush1.msra.mxu1 %v6244_v24  ;;  %3743 = vmatpush1.msra.mxu0 %v6459_v44  ;;  %v7338_v24 = vld [vmem:[#allocation30_spill] sm:$0xff] }
 0xe73   :  { %3673 = vmatprep.subr.mxu1 %v6248_v33  ;;  %3744 = vmatprep.subr.mxu0 %v6463_v56  ;;  %v7339_v33 = vld [vmem:[#allocation52_spill] sm:$0xff] }
 0xe74   :  { %3674 = vmatpush1.msra.mxu1 %v6252_v36  ;;  %3745 = vmatpush1.msra.mxu0 %v6467_v14  ;;  %v7340_v36 = vld [vmem:[#allocation32_spill] sm:$0xff]  ;;  %v7353_v14 = vld [vmem:[#allocation71_spill] sm:$0xff] }
 0xe75   :  { %3675 = vmatprep.subr.mxu1 %v6256_v40  ;;  %3746 = vmatprep.subr.mxu0 %v6471_v8  ;;  %v7341_v40 = vld [vmem:[#allocation50_spill] sm:$0xff] }
 0xe76   :  { %3676 = vmatpush1.msra.mxu1 %v6260_v43  ;;  %3747 = vmatpush1.msra.mxu0 %v6475_v61  ;;  %v7342_v43 = vld [vmem:[#allocation68_spill] sm:$0xff]  ;;  %v7354_v61 = vld [vmem:[#allocation69_spill] sm:$0xff] }
 0xe77   :  { %3677 = vmatprep.subr.mxu1 %v6264_v46  ;;  %3748 = vmatprep.subr.mxu0 %v6479_v0  ;;  %v7343_v46 = vld [vmem:[#allocation53_spill] sm:$0xff] }
 0xe78   :  { %3678 = vmatpush1.msra.mxu1 %v6268_v23  ;;  %3749 = vmatpush1.msra.mxu0 %v6483_v1  ;;  %v7344_v23 = vld [vmem:[#allocation46_spill] sm:$0xff] }
 0xe79   :  { %3679 = vmatprep.subr.mxu1 %v6272_v5  ;;  %3750 = vmatprep.subr.mxu0 %v6487_v35  ;;  %v7345_v5 = vld [vmem:[#allocation55_spill] sm:$0xff] }
 0xe7a   :  { %3680 = vmatpush1.msra.mxu1 %v6276_v7  ;;  %3751 = vmatpush1.msra.mxu0 %v6491_v3  ;;  %v7346_v7 = vld [vmem:[#allocation26_spill] sm:$0xff] }
 0xe7b   :  { %3681 = vmatprep.subr.mxu1 %v6280_v54  ;;  %3752 = vmatprep.subr.mxu0 %v6495_v25  ;;  %v7347_v54 = vld [vmem:[#allocation56_spill] sm:$0xff] }
 0xe7c   :  { %3682 = vmatpush1.msra.mxu1 %v6284_v39  ;;  %3753 = vmatpush1.msra.mxu0 %v6499_v50  ;;  %v7348_v39 = vmov 0.0  }
 0xe7d   :  { %3683 = vmatprep.subr.mxu1 %v6288_v15  ;;  %3754 = vmatprep.subr.mxu0 %v7303_v37  ;;  %v7349_v15 = vld [vmem:[#allocation25_spill] sm:$0xff] }
 0xe7e   :  { %3684 = vmatpush1.msra.mxu1 %v6292_v29  ;;  %3755 = vmatpush1.msra.mxu0 %v7304_v53  ;;  %v7350_v29 = vld [vmem:[#allocation67_spill] sm:$0xff] }
 0xe7f   :  { %3685 = vmatprep.subr.mxu1 %v6296_v45  ;;  %3756 = vmatprep.subr.mxu0 %v7330_v55  ;;  %v7351_v45 = vld [vmem:[#allocation41_spill] sm:$0xff] }
 0xe80   :  { %3686 = vmatpush1.msra.mxu1 %v7331_v2  ;;  %3757 = vmatpush1.msra.mxu0 %v7332_v16  ;;  %v2222_v48 = vadd.f32 %v7351_v45, %v7350_v29  ;;  %v3838_v55 = vld [vmem:[#allocation14 + $0x28] sm:$0xff]  ;;  %v3837_v2 = vld [vmem:[#allocation14 + $0x20] sm:$0xff]  ;;  %v3836_v16 = vld [vmem:[#allocation14 + $0x18] sm:$0xff] }
 0xe81   :  { %3687 = vmatprep.subr.mxu1 %v7333_v57  ;;  %3758 = vmatprep.subr.mxu0 %v7334_v20  ;;  %v3835_v57 = vld [vmem:[#allocation14 + $0x10] sm:$0xff]  ;;  %v3834_v20 = vld [vmem:[#allocation14 + $0x8] sm:$0xff] }
 0xe82   :  { %3688 = vmatpush1.msra.mxu1 %v7335_v62  ;;  %3759 = vmatpush1.msra.mxu0 %v7336_v13  ;;  %v3833_v62 = vld [vmem:[#allocation14] sm:$0xff]  ;;  %v7355_v13 = vld [vmem:[#allocation43_spill] sm:$0xff] }
 0xe83   :  { %3689 = vmatprep.subr.mxu1 %v7337_v32  ;;  %3760 = vmatprep.subr.mxu0 %v7338_v24  ;;  %v2228_v32 = vadd.f32 %v7355_v13, %v7350_v29 }
 0xe84   :  { %3690 = vmatpush1.msra.mxu1 %v7339_v33  ;;  %3761 = vmatpush1.msra.mxu0 %v7340_v36  ;;  %v7356_v33 = vld [vmem:[#allocation42_spill] sm:$0xff] }
 0xe85   :  { %3691 = vmatprep.subr.mxu1 %v7341_v40  ;;  %3762 = vmatprep.subr.mxu0 %v7342_v43  ;;  %v2230_v36 = vadd.f32 %v7356_v33, %v7250_v22 }
 0xe86   :  { %3692 = vmatpush1.msra.mxu1 %v7343_v46  ;;  %3763 = vmatpush1.msra.mxu0 %v7344_v23 }
 0xe87   :  { %3693 = vmatprep.subr.mxu1 %v7345_v5  ;;  %3764 = vmatprep.subr.mxu0 %v7346_v7 }
 0xe88   :  { %3694 = vmatpush1.msra.mxu1 %v7347_v54  ;;  %3727 = vmatprep.mubr.f32.mxu1 %v7348_v39 }
 0xe89   :  { %3765 = vmatpush1.msra.mxu0 %v7349_v15  ;;  %3798 = vmatprep.mubr.f32.mxu0 %v7348_v39  ;;  %v7357_v15 = vld [vmem:[#allocation70_spill] sm:$0xff] }
 0xe8a   :  { %4066 = vmatprep.subr.mxu1 %v7348_v39 }
 0xf29   :  { %v3555_v9 = vpop.f32.mrf.mxu1  ;;  %v3626_v41 = vpop.f32.mrf.mxu0 }
 0xf2a   :  { %v3631_v26 = vadd.f32 %v3555_v9, %v2222_v48  ;;  %v3633_v0 = vadd.f32 %v3626_v41, %v7354_v61 }
 0xf2b   :  { %v3557_v18 = vpop.f32.mrf.mxu1  ;;  %v3628_v56 = vpop.f32.mrf.mxu0 }
 0xf2c   :  { %v3990_v42 = vmul.f32 -1.442695, %v3631_v26  ;;  %v3632_v34 = vadd.f32 %v3557_v18, %v2224_v38  ;;  %v3634_v8 = vadd.f32 %v3628_v56, %v7353_v14 }
 0xf2e   :  { %4338 = vpow2.f32 %v3990_v42  ;;  %v3991_v44 = vmul.f32 -1.442695, %v3632_v34  ;;  %v3992_v1 = vmul.f32 -1.442695, %v3634_v8 }
 0xf30   :  { %4340 = vpow2.f32 %v3991_v44 }
 0xf31   :  { %4342 = vtanh.f32 %v3633_v0 }
 0xf32   :  { %4344 = vpow2.f32 %v3992_v1  ;;  %v3996_v1 = vld [vmem:[%s6758_s8] ss:$0 sm:$0xff] }
 0xf3b   :  { %v4339_v35 = vpop.eup %4338 }
 0xf3c   :  { %v3638_v3 = vadd.f32 1.0, %v4339_v35 }
 0xf3d   :  { %v4341_v25 = vpop.eup %4340 }
 0xf3e   :  { %4346 = vrcp.f32 %v3638_v3  ;;  %v3644_v50 = vadd.f32 1.0, %v4341_v25  ;;  %v4343_v31 = vpop.eup %4342 }
 0xf3f   :  { %v4345_v37 = vpop.eup %4344 }
 0xf40   :  { %4348 = vrcp.f32 %v3644_v50  ;;  %v3651_v21 = vadd.f32 1.0, %v4345_v37 }
 0xf42   :  { %4350 = vrcp.f32 %v3651_v21 }
 0xf4b   :  { %v4347_v53 = vpop.eup %4346 }
 0xf4c   :  { %v3655_v17 = vmul.f32 %v4347_v53, %v4343_v31 }
 0xf4d   :  { %v4349_v49 = vpop.eup %4348 }
 0xf4e   :  { %v3654_v19 = vmul.f32 %v4349_v49, %v6639_v52  ;;  %v3842_v52 = vld [vmem:[#allocation14 + $0x48] sm:$0xff] }
 0xf4f   :  { %v4351_v47 = vpop.eup %4350 }
 0xf50   :  { %v6714_v11 = vadd.f32 %v3655_v17, %v3654_v19 }
 0xf52   :  { %4352 = vtanh.f32 %v6714_v11 }
 0xf5f   :  { %v4353_v28 = vpop.eup %4352 }
 0xf60   :  { %v3658_v4 = vmul.f32 %v4353_v28, %v4351_v47 }
 0xf62   :  { %3728 = vmatmul.mubr.f32.vlgmr.msra.gmra.mxu1 %v3658_v4  ;;  %3799 = vmatmul.mubr.f32.vlgmr.msra.gmra.mxu0 %v3658_v4 }
 0xf63   :  { %4098 = vmatprep.mubr.msk.f32.mxu1 %vm4659_vm0, %v7348_v39  ;;  %4067 = vmatpush3.msra.mxu1 %v3848_v58 }
 0xf64   :  { %4068 = vmatprep.subr.mxu1 %v7348_v39 }
 0xf65   :  { %4069 = vmatpush3.msra.mxu1 %v3847_v51 }
 0xf66   :  { %4070 = vmatprep.subr.mxu1 %v7348_v39 }
 0xf67   :  { %4071 = vmatpush3.msra.mxu1 %v3846_v63 }
 0xf68   :  { %4072 = vmatprep.subr.mxu1 %v7348_v39 }
 0xf69   :  { %4073 = vmatpush3.msra.mxu1 %v3845_v27 }
 0xf6a   :  { %4074 = vmatprep.subr.mxu1 %v7348_v39 }
 0xf6b   :  { %4075 = vmatpush3.msra.mxu1 %v3844_v59 }
 0xf6c   :  { %4076 = vmatprep.subr.mxu1 %v7348_v39 }
 0xf6d   :  { %4077 = vmatpush3.msra.mxu1 %v3843_v6 }
 0xf6e   :  { %4078 = vmatprep.subr.mxu1 %v7348_v39 }
 0xf6f   :  { %4079 = vmatpush3.msra.mxu1 %v3842_v52 }
 0xf70   :  { %4080 = vmatprep.subr.mxu1 %v7348_v39 }
 0xf71   :  { %4081 = vmatpush3.msra.mxu1 %v3841_v12 }
 0xf72   :  { %4082 = vmatprep.subr.mxu1 %v7348_v39 }
 0xf73   :  { %4083 = vmatpush3.msra.mxu1 %v3840_v30 }
 0xf74   :  { %4084 = vmatprep.subr.mxu1 %v7348_v39 }
 0xf75   :  { %4085 = vmatpush3.msra.mxu1 %v3839_v60 }
 0xf76   :  { %4086 = vmatprep.subr.mxu1 %v7348_v39 }
 0xf77   :  { %4087 = vmatpush3.msra.mxu1 %v3838_v55 }
 0xf78   :  { %4088 = vmatprep.subr.mxu1 %v7348_v39 }
 0xf79   :  { %4089 = vmatpush3.msra.mxu1 %v3837_v2 }
 0xf7a   :  { %4090 = vmatprep.subr.mxu1 %v7348_v39 }
 0xf7b   :  { %4091 = vmatpush3.msra.mxu1 %v3836_v16 }
 0xf7c   :  { %4092 = vmatprep.subr.mxu1 %v7348_v39 }
 0xf7d   :  { %4093 = vmatpush3.msra.mxu1 %v3835_v57 }
 0xf7e   :  { %4094 = vmatprep.subr.mxu1 %v7348_v39 }
 0xf7f   :  { %4095 = vmatpush3.msra.mxu1 %v3834_v20 }
 0xf80   :  { %4096 = vmatprep.subr.mxu1 %v7348_v39  ;;  %v7358_v39 = vld [vmem:[#allocation72_spill] sm:$0xff] }
 0xf81   :  { %4097 = vmatpush3.msra.mxu1 %v3833_v62 }
0x1022   :  { %v3729_v24 = vpop.f32.mrf.mxu1  ;;  %v3800_v5 = vpop.f32.mrf.mxu0 }
0x1023   :  { %v3805_v40 = vadd.f32 %v3729_v24, %v2228_v32  ;;  %v3807_v48 = vadd.f32 %v3800_v5, %v7358_v39 }
0x1024   :  { %v3731_v43 = vpop.f32.mrf.mxu1  ;;  %v3802_v54 = vpop.f32.mrf.mxu0 }
0x1025   :  { %v3993_v46 = vmul.f32 -1.442695, %v3805_v40  ;;  %v3806_v23 = vadd.f32 %v3731_v43, %v2230_v36  ;;  %v3808_v45 = vadd.f32 %v3802_v54, %v7357_v15 }
0x1027   :  { %4354 = vpow2.f32 %v3993_v46  ;;  %v3994_v7 = vmul.f32 -1.442695, %v3806_v23  ;;  %v3995_v9 = vmul.f32 -1.442695, %v3808_v45 }
0x1029   :  { %4356 = vpow2.f32 %v3994_v7 }
0x102a   :  { %4358 = vtanh.f32 %v3807_v48 }
0x102b   :  { %4360 = vpow2.f32 %v3995_v9 }
0x1034   :  { %v4355_v10 = vpop.eup %4354 }
0x1035   :  { %v3812_v29 = vadd.f32 1.0, %v4355_v10 }
0x1036   :  { %v4357_v38 = vpop.eup %4356 }
0x1037   :  { %4362 = vrcp.f32 %v3812_v29  ;;  %v3818_v22 = vadd.f32 1.0, %v4357_v38  ;;  %v4359_v26 = vpop.eup %4358 }
0x1038   :  { %v4361_v18 = vpop.eup %4360 }
0x1039   :  { %4364 = vrcp.f32 %v3818_v22  ;;  %v3825_v44 = vadd.f32 1.0, %v4361_v18 }
0x103b   :  { %4366 = vrcp.f32 %v3825_v44 }
0x1044   :  { %v4363_v42 = vpop.eup %4362 }
0x1045   :  { %v3829_v34 = vmul.f32 %v4363_v42, %v4359_v26 }
0x1046   :  { %v4365_v41 = vpop.eup %4364 }
0x1047   :  { %v3828_v56 = vmul.f32 %v4365_v41, %v6714_v11 }
0x1048   :  { %v4367_v8 = vpop.eup %4366 }
0x1049   :  { %v3830_v14 = vadd.f32 %v3829_v34, %v3828_v56 }
0x104b   :  { %4368 = vtanh.f32 %v3830_v14 }
0x1058   :  { %v4369_v61 = vpop.eup %4368 }
0x1059   :  { %v3832_v0 = vmul.f32 %v4369_v61, %v4367_v8 }
0x105b   :  { %4099 = vmatmul.mubr.f32.vlgmr.msra.gmra.mxu1 %v3832_v0 }
0x111b   :  { %v3922_v35 = vpop.f32.mrf.mxu1 }
0x111c   :  { %v3923_v3 = vadd.f32 %v3996_v1, %v3922_v35 }
0x111d   :  { %v4100_v25 = vpop.f32.mrf.mxu1 }
0x111e   :  { %3926 = vst [vmem:[#allocation16 + $0x8] sm:$0xff] %v3923_v3 }
0x111f   :  { %4629 = shalt.err (!%p4626_p6)
}
0x1120   :  { %3938 = dma.vmem_to_hbm [thread:$0]  %s3933_s1, 256, %s6759_s9, [#allocation7], %s4653_s23, %s4653_s23, %s4654_s24  }
0x1121   :  { %4646 = dma.done.wait [#allocation7], 256  }
0x1122   :  { %4647 = vsyncadd [#allocation7], 4294967040 }
0x1123   :  { %3942 = vsyncpa [#allocation6], 1 }
0x1124   :  { %3943 = vsyncpa [#allocation9], 1 }
0x1125   :  { %3944 = vsyncpa [#allocation12], 1 }
0x1126   :  { %3945 = vsyncpa [#allocation15], 1 }
0x1127   :  { %3946 = vsyncpa [#allocation7], 1 }

</bundles_post_ra>
